<compile_context>
chip_gen: v6e
topology: v6e:2x2x1
jax: 0.10.0
libtpu: 0.0.40
codegen_flags: <defaults>
</compile_context>

<pallas_src>
from functools import partial

import jax
import jax.numpy as jnp
from jax.experimental import pallas as pl
from jax.experimental.pallas import tpu as pltpu

# ---- small, forward-consistent sizes ----
N_NODES = 8        # n_stocks (== GRU sequence length)
N_FEAT = 8         # n_features
HIDDEN = 16        # GATv2 out_channels per head
HEADS = 2          # attention heads (concat=True)
GRU_HIDDEN = 32    # GRU hidden size
BATCH = 4          # states evaluated per pallas_call
D_CAT = HEADS * HIDDEN          # 32  (GAT output width / GRU input width)

# ---- parameter-slab layout (row offsets, all params start at lane 0, 8-row aligned) ----
SLAB_LANES = 128


def _align8(r):
    return ((r + 7) // 8) * 8


_r = 0
R_WLR = _r;   _r = _align8(_r + N_FEAT)        # [F, 2*D]  fused lin_l | lin_r weight
R_BLR = _r;   _r = _align8(_r + 1)             # [1, 2*D]  fused bias
R_ATT = _r;   _r = _align8(_r + HEADS)         # [H, D]    att vector, other head's lanes zeroed
R_HMASK = _r; _r = _align8(_r + HEADS)         # [H, D]    per-head lane indicator
R_GBIAS = _r; _r = _align8(_r + 1)             # [1, D]    GATv2 output bias
R_WIH = _r;   _r = _align8(_r + D_CAT)         # [D, 3*GH] GRU W_ih^T (gate order r,z,n)
R_BIH = _r;   _r = _align8(_r + 1)             # [1, 3*GH]
R_WHH = _r;   _r = _align8(_r + GRU_HIDDEN)    # [GH, 3*GH] GRU W_hh^T
R_BHH = _r;   _r = _align8(_r + 1)             # [1, 3*GH]
R_WV = _r;    _r = _align8(_r + 1)             # [1, GH]   value head weight (row vector)
R_BV = _r;    _r = _align8(_r + 1)             # [1, 1]
R_ADJ = _r;   _r = _align8(_r + N_NODES)       # [N, N]    in-edge mask incl. self loops
SLAB_ROWS = _r                                  # 144 rows -> 72 KiB, one DMA


def critic_kernel(x_ref, slab_ref, out_ref, *, batch, n_nodes, n_feat,
                  heads, hidden, gru_hidden):
    f32 = jnp.float32
    B, N, F, H, C, GH = batch, n_nodes, n_feat, heads, hidden, gru_hidden
    D = H * C

    x = x_ref[...].reshape(B * N, F)                       # all states of this step at once

    # ---- static slices of the packed parameter slab (brought in by a single DMA) ----
    wlr = slab_ref[R_WLR:R_WLR + F, 0:2 * D]               # [F, 2D]
    blr = slab_ref[R_BLR:R_BLR + 1, 0:2 * D]               # [1, 2D]
    attm = slab_ref[R_ATT:R_ATT + H, 0:D]                  # [H, D]
    hmask = slab_ref[R_HMASK:R_HMASK + H, 0:D]             # [H, D]
    gbias = slab_ref[R_GBIAS:R_GBIAS + 1, 0:D]             # [1, D]
    wih = slab_ref[R_WIH:R_WIH + D, 0:3 * GH]              # [D, 3GH]
    bih = slab_ref[R_BIH:R_BIH + 1, 0:3 * GH]              # [1, 3GH]
    whh = slab_ref[R_WHH:R_WHH + GH, 0:3 * GH]             # [GH, 3GH]
    bhh = slab_ref[R_BHH:R_BHH + 1, 0:3 * GH]              # [1, 3GH]
    wv = slab_ref[R_WV:R_WV + 1, 0:GH]                     # [1, GH]
    bv = slab_ref[R_BV:R_BV + 1, 0:1]                      # [1, 1]
    adj = slab_ref[R_ADJ:R_ADJ + N, 0:N]                   # [N, N]; adj[i,j]==1 iff edge j->i

    # ------------- GATv2Conv (concat=True, negative_slope=0.2, eval-mode dropout) -------------
    # one fused projection matmul: [B*N, F] x [F, 2D] -> lin_l | lin_r, single bias add
    xlr = jnp.dot(x, wlr, preferred_element_type=f32) + blr
    xl = xlr[:, 0:D].reshape(B, N, D)                      # lin_l(x): source / message proj
    xr = xlr[:, D:2 * D].reshape(B, N, D)                  # lin_r(x): target proj

    # s[b, i, j, :] = xl[b, j] + xr[b, i]; heads fused on lanes, one LeakyReLU
    s = xl[:, None, :, :] + xr[:, :, None, :]              # [B, N, N, D]
    s = jnp.where(s >= 0, s, 0.2 * s)                      # LeakyReLU(0.2)

    adj3 = adj[None, :, :]                                 # [1, N, N]
    gat = None
    for h in range(H):                                     # heads tiny & static -> unrolled
        # attention logits: att already zero on the other head's lanes -> plain lane reduce
        e = jnp.sum(s * attm[h:h + 1, :], axis=-1)         # [B, N, N]
        # masked softmax over in-neighbours j (self loops guarantee a nonzero denominator)
        e = jnp.where(adj3 > 0, e, jnp.float32(-1e30))
        e = e - jnp.max(e, axis=-1, keepdims=True)
        p = jnp.exp(e) * adj3
        alpha = p / jnp.sum(p, axis=-1, keepdims=True)     # dropout(0.1): eval-mode identity
        # aggregate directly into the head-concat lane layout (no concatenate / gather):
        # hmask zeroes the other head's lanes, so summing head results == concat.
        xl_h = xl * hmask[h:h + 1, :]                      # [B, N, D]
        part = jnp.einsum('bij,bjd->bid', alpha, xl_h, preferred_element_type=f32)
        gat = part if gat is None else gat + part
    gat = gat + gbias                                      # [B, N, D] == concat(head outputs)

    # ------------- GRU (single layer, batch_first, h0 = 0), batched over the folded states ----
    # input projection hoisted out of the recurrence (one [B*N, D] x [D, 3GH] matmul),
    # gate slicing of gx / W_hh / b_hh hoisted out of the loop.
    gx = jnp.dot(gat.reshape(B * N, D), wih, preferred_element_type=f32) + bih
    gx = gx.reshape(B, N, 3 * GH)
    gx_r = gx[:, :, 0:GH]
    gx_z = gx[:, :, GH:2 * GH]
    gx_n = gx[:, :, 2 * GH:3 * GH]
    whh_r, whh_z, whh_n = whh[:, 0:GH], whh[:, GH:2 * GH], whh[:, 2 * GH:3 * GH]
    bhh_r, bhh_z, bhh_n = bhh[:, 0:GH], bhh[:, GH:2 * GH], bhh[:, 2 * GH:3 * GH]

    h_t = jnp.zeros((B, GH), f32)
    for t in range(N):                                     # short fixed sequence -> unrolled
        gr = jnp.dot(h_t, whh_r, preferred_element_type=f32) + bhh_r
        gz = jnp.dot(h_t, whh_z, preferred_element_type=f32) + bhh_z
        gn = jnp.dot(h_t, whh_n, preferred_element_type=f32) + bhh_n
        r = jax.nn.sigmoid(gx_r[:, t, :] + gr)
        z = jax.nn.sigmoid(gx_z[:, t, :] + gz)
        n = jnp.tanh(gx_n[:, t, :] + r * gn)
        h_t = (1.0 - z) * n + z * h_t
    # gru_output[:, -1, :] == h_t after the last step

    # ------------- value head: value = h_T @ wv + bv, all B values stored at once -------------
    value = jnp.sum(h_t * wv, axis=-1, keepdims=True) + bv   # [B, 1]
    out_ref[...] = value.reshape(B, 1, 1)


def build_adjacency(edge_index, n_nodes):
    # PyG GATv2Conv default: remove existing self loops, then add self loops for all nodes.
    # Called ONCE per (static) graph, outside the jitted forward path.
    src, dst = edge_index[0], edge_index[1]
    adj = jnp.zeros((n_nodes, n_nodes), jnp.float32).at[dst, src].set(1.0)
    eye = jnp.eye(n_nodes, dtype=jnp.float32)
    return adj * (1.0 - eye) + eye


def init_params(key):
    ks = jax.random.split(key, 12)
    f32 = jnp.float32
    D = HEADS * HIDDEN
    s = 0.1
    wl = s * jax.random.normal(ks[0], (N_FEAT, D), f32)      # lin_l weight (pre-transposed)
    bl = s * jax.random.normal(ks[1], (1, D), f32)
    wr = s * jax.random.normal(ks[2], (N_FEAT, D), f32)      # lin_r weight
    br = s * jax.random.normal(ks[3], (1, D), f32)
    att = s * jax.random.normal(ks[4], (HEADS, HIDDEN), f32)  # PyG `att` is [1, H, C]
    head_mask = (jnp.arange(D)[None, :] // HIDDEN
                 == jnp.arange(HEADS)[:, None]).astype(f32)   # [H, D] lane indicator per head
    att_masked = att.reshape(1, D) * head_mask                # att on own lanes, 0 elsewhere
    return dict(
        wlr=jnp.concatenate([wl, wr], axis=1),                # fused lin_l | lin_r  [F, 2D]
        blr=jnp.concatenate([bl, br], axis=1),                # [1, 2D]
        att_masked=att_masked,
        head_mask=head_mask,
        gat_bias=s * jax.random.normal(ks[5], (1, D), f32),
        # GRU weights stored pre-transposed for x @ W; gate order r, z, n like torch
        wih_t=s * jax.random.normal(ks[6], (D, 3 * GRU_HIDDEN), f32),
        whh_t=s * jax.random.normal(ks[7], (GRU_HIDDEN, 3 * GRU_HIDDEN), f32),
        bih=s * jax.random.normal(ks[8], (1, 3 * GRU_HIDDEN), f32),
        bhh=s * jax.random.normal(ks[9], (1, 3 * GRU_HIDDEN), f32),
        wv_row=s * jax.random.normal(ks[10], (1, GRU_HIDDEN), f32),   # value_fc weight
        bv=s * jax.random.normal(ks[11], (1, 1), f32),
    )


def pack_slab(params, adj):
    """Pack all weights + adjacency into a single [SLAB_ROWS, 128] fp32 slab (one DMA)."""
    slab = jnp.zeros((SLAB_ROWS, SLAB_LANES), jnp.float32)

    def put(s, row, a):
        a = jnp.asarray(a, jnp.float32)
        return s.at[row:row + a.shape[0], 0:a.shape[1]].set(a)

    slab = put(slab, R_WLR, params['wlr'])
    slab = put(slab, R_BLR, params['blr'])
    slab = put(slab, R_ATT, params['att_masked'])
    slab = put(slab, R_HMASK, params['head_mask'])
    slab = put(slab, R_GBIAS, params['gat_bias'])
    slab = put(slab, R_WIH, params['wih_t'])
    slab = put(slab, R_BIH, params['bih'])
    slab = put(slab, R_WHH, params['whh_t'])
    slab = put(slab, R_BHH, params['bhh'])
    slab = put(slab, R_WV, params['wv_row'])
    slab = put(slab, R_BV, params['bv'])
    slab = put(slab, R_ADJ, adj)
    return slab


@partial(jax.jit, static_argnames=("grid_steps",))
def critic_forward(x_batch, slab, grid_steps=1):
    """x_batch: [B, N, F]; slab: packed parameters + adjacency; returns [B] state values.

    grid_steps=1 on v5e/v6e (single TensorCore: the grid is a serial loop, so one step).
    grid_steps=2 on v7x to split the folded batch across the two TensorCores ("parallel").
    """
    B, N, F = x_batch.shape
    assert B % grid_steps == 0
    BB = B // grid_steps

    kern = partial(critic_kernel, batch=BB, n_nodes=N, n_feat=F,
                   heads=HEADS, hidden=HIDDEN, gru_hidden=GRU_HIDDEN)
    out = pl.pallas_call(
        kern,
        grid=(grid_steps,),
        out_shape=jax.ShapeDtypeStruct((B, 1, 1), jnp.float32),
        in_specs=[
            pl.BlockSpec((BB, N, F), lambda g: (g, 0, 0)),              # BB states per step
            pl.BlockSpec((SLAB_ROWS, SLAB_LANES), lambda g: (0, 0)),    # whole slab, resident
        ],
        out_specs=pl.BlockSpec((BB, 1, 1), lambda g: (g, 0, 0)),        # one store per step
        compiler_params=pltpu.CompilerParams(
            dimension_semantics=("parallel",)),
    )(x_batch, slab)
    return out[:, 0, 0]   # torch .squeeze() per state -> [B] scalars


if __name__ == "__main__":
    key = jax.random.PRNGKey(0)
    k_x, k_p = jax.random.split(key)

    # batch of states (the torch module processes one state per forward; batching here just
    # evaluates BATCH independent forwards in a single pallas_call grid step)
    x_batch = jax.random.normal(k_x, (BATCH, N_NODES, N_FEAT), jnp.float32)

    # simple bidirectional ring graph over the stocks: edge_index shape [2, 2*N]
    idx = jnp.arange(N_NODES, dtype=jnp.int32)
    src = jnp.concatenate([idx, (idx + 1) % N_NODES])
    dst = jnp.concatenate([(idx + 1) % N_NODES, idx])
    edge_index = jnp.stack([src, dst], axis=0)

    # static trading graph + static weights -> slab packed once, outside the jitted forward
    adj = build_adjacency(edge_index, N_NODES)
    params = init_params(k_p)
    slab = pack_slab(params, adj)

    values = critic_forward(x_batch, slab)   # grid_steps=1 (use 2 on v7x)
    jax.block_until_ready(values)
    assert values.shape == (BATCH,) and values.dtype == jnp.float32
    assert bool(jnp.all(jnp.isfinite(values)))
    print("KERNEL_OK")
</pallas_src>

<mosaic_0001>
module attributes {stable_mosaic.version = 11 : i64} {
  func.func @critic_kernel(%arg0: i32, %arg1: memref<4x8x8xf32, #tpu.memory_space<vmem>>, %arg2: memref<144x128xf32, #tpu.memory_space<vmem>>, %arg3: memref<4x1x1xf32, #tpu.memory_space<vmem>>) attributes {dimension_semantics = [#tpu.dimension_semantics<parallel>], iteration_bounds = array<i64: 1>, scalar_prefetch = 0 : i64, scratch_operands = 0 : i64, tpu.core_type = #tpu.core_type<tc>, window_params = [{transform_indices = @transform_0, window_bounds = array<i64: 4, 8, 8>}, {pipeline_mode = #tpu.pipeline_mode<synchronous>, transform_indices = @transform_1, window_bounds = array<i64: 144, 128>}, {transform_indices = @transform_2, window_bounds = array<i64: 4, 1, 1>}]} {
    %c0 = arith.constant 0 : index
    %c0_0 = arith.constant 0 : index
    %c0_1 = arith.constant 0 : index
    %0 = vector.load %arg1[%c0, %c0_0, %c0_1] : memref<4x8x8xf32, #tpu.memory_space<vmem>>, vector<4x8x8xf32>
    %1 = vector.shape_cast %0 : vector<4x8x8xf32> to vector<32x8xf32>
    %c0_2 = arith.constant 0 : index
    %c0_3 = arith.constant 0 : index
    %2 = vector.load %arg2[%c0_2, %c0_3] : memref<144x128xf32, #tpu.memory_space<vmem>>, vector<8x64xf32>
    %c8 = arith.constant 8 : index
    %c0_4 = arith.constant 0 : index
    %3 = vector.load %arg2[%c8, %c0_4] : memref<144x128xf32, #tpu.memory_space<vmem>>, vector<1x64xf32>
    %c16 = arith.constant 16 : index
    %c0_5 = arith.constant 0 : index
    %4 = vector.load %arg2[%c16, %c0_5] : memref<144x128xf32, #tpu.memory_space<vmem>>, vector<2x32xf32>
    %c24 = arith.constant 24 : index
    %c0_6 = arith.constant 0 : index
    %5 = vector.load %arg2[%c24, %c0_6] : memref<144x128xf32, #tpu.memory_space<vmem>>, vector<2x32xf32>
    %c32 = arith.constant 32 : index
    %c0_7 = arith.constant 0 : index
    %6 = vector.load %arg2[%c32, %c0_7] : memref<144x128xf32, #tpu.memory_space<vmem>>, vector<1x32xf32>
    %c40 = arith.constant 40 : index
    %c0_8 = arith.constant 0 : index
    %7 = vector.load %arg2[%c40, %c0_8] : memref<144x128xf32, #tpu.memory_space<vmem>>, vector<32x96xf32>
    %c72 = arith.constant 72 : index
    %c0_9 = arith.constant 0 : index
    %8 = vector.load %arg2[%c72, %c0_9] : memref<144x128xf32, #tpu.memory_space<vmem>>, vector<1x96xf32>
    %c80 = arith.constant 80 : index
    %c0_10 = arith.constant 0 : index
    %9 = vector.load %arg2[%c80, %c0_10] : memref<144x128xf32, #tpu.memory_space<vmem>>, vector<32x96xf32>
    %c112 = arith.constant 112 : index
    %c0_11 = arith.constant 0 : index
    %10 = vector.load %arg2[%c112, %c0_11] : memref<144x128xf32, #tpu.memory_space<vmem>>, vector<1x96xf32>
    %c120 = arith.constant 120 : index
    %c0_12 = arith.constant 0 : index
    %11 = vector.load %arg2[%c120, %c0_12] : memref<144x128xf32, #tpu.memory_space<vmem>>, vector<1x32xf32>
    %c128 = arith.constant 128 : index
    %c0_13 = arith.constant 0 : index
    %12 = vector.load %arg2[%c128, %c0_13] : memref<144x128xf32, #tpu.memory_space<vmem>>, vector<1x1xf32>
    %c136 = arith.constant 136 : index
    %c0_14 = arith.constant 0 : index
    %13 = vector.load %arg2[%c136, %c0_14] : memref<144x128xf32, #tpu.memory_space<vmem>>, vector<8x8xf32>
    %cst = arith.constant dense<0.000000e+00> : vector<32x64xf32>
    %14 = tpu.matmul %1, %2, %cst {dimension_numbers = #tpu.dot_dimension_numbers<[1], [0], [0], [1], [0, 0, 1, 1], [], []>} : vector<32x8xf32>, vector<8x64xf32>, vector<32x64xf32> -> vector<32x64xf32>
    %15 = vector.broadcast %3 : vector<1x64xf32> to vector<32x64xf32>
    %16 = arith.addf %14, %15 : vector<32x64xf32>
    %17 = vector.extract_strided_slice %16 {offsets = [0, 0], sizes = [32, 32], strides = [1, 1]} : vector<32x64xf32> to vector<32x32xf32>
    %18 = vector.shape_cast %17 : vector<32x32xf32> to vector<4x8x32xf32>
    %19 = vector.extract_strided_slice %16 {offsets = [0, 32], sizes = [32, 32], strides = [1, 1]} : vector<32x64xf32> to vector<32x32xf32>
    %20 = vector.shape_cast %19 : vector<32x32xf32> to vector<4x8x32xf32>
    %21 = vector.shape_cast %18 : vector<4x8x32xf32> to vector<4x1x8x32xf32>
    %22 = vector.shape_cast %20 : vector<4x8x32xf32> to vector<4x8x1x32xf32>
    %23 = vector.broadcast %21 : vector<4x1x8x32xf32> to vector<4x8x8x32xf32>
    %24 = vector.broadcast %22 : vector<4x8x1x32xf32> to vector<4x8x8x32xf32>
    %25 = arith.addf %23, %24 : vector<4x8x8x32xf32>
    %cst_15 = arith.constant 0.000000e+00 : f32
    %26 = vector.broadcast %cst_15 : f32 to vector<4x8x8x32xf32>
    %27 = arith.cmpf oge, %25, %26 : vector<4x8x8x32xf32>
    %cst_16 = arith.constant 2.000000e-01 : f32
    %28 = vector.broadcast %cst_16 : f32 to vector<4x8x8x32xf32>
    %29 = arith.mulf %28, %25 : vector<4x8x8x32xf32>
    %30 = arith.select %27, %25, %29 : vector<4x8x8x32xi1>, vector<4x8x8x32xf32>
    %31 = vector.shape_cast %13 : vector<8x8xf32> to vector<1x8x8xf32>
    %32 = vector.extract_strided_slice %4 {offsets = [0, 0], sizes = [1, 32], strides = [1, 1]} : vector<2x32xf32> to vector<1x32xf32>
    %33 = vector.shape_cast %32 : vector<1x32xf32> to vector<1x1x1x32xf32>
    %34 = vector.broadcast %33 : vector<1x1x1x32xf32> to vector<4x8x8x32xf32>
    %35 = arith.mulf %30, %34 : vector<4x8x8x32xf32>
    %cst_17 = arith.constant dense<0.000000e+00> : vector<4x8x8xf32>
    %36 = vector.multi_reduction <add>, %35, %cst_17 [3] : vector<4x8x8x32xf32> to vector<4x8x8xf32>
    %cst_18 = arith.constant 0.000000e+00 : f32
    %37 = vector.broadcast %cst_18 : f32 to vector<1x8x8xf32>
    %38 = arith.cmpf ogt, %31, %37 : vector<1x8x8xf32>
    %cst_19 = arith.constant -1.000000e+30 : f32
    %39 = vector.shape_cast %38 : vector<1x8x8xi1> to vector<1x8x8xi1>
    %40 = vector.broadcast %39 : vector<1x8x8xi1> to vector<4x8x8xi1>
    %41 = vector.broadcast %cst_19 : f32 to vector<4x8x8xf32>
    %42 = arith.select %40, %36, %41 : vector<4x8x8xi1>, vector<4x8x8xf32>
    %cst_20 = arith.constant dense<0xFF800000> : vector<4x8xf32>
    %43 = vector.multi_reduction <maximumf>, %42, %cst_20 [2] : vector<4x8x8xf32> to vector<4x8xf32>
    %44 = vector.shape_cast %43 : vector<4x8xf32> to vector<4x8x1xf32>
    %45 = vector.broadcast %44 : vector<4x8x1xf32> to vector<4x8x8xf32>
    %46 = arith.subf %42, %45 : vector<4x8x8xf32>
    %47 = math.exp %46 : vector<4x8x8xf32>
    %48 = vector.broadcast %31 : vector<1x8x8xf32> to vector<4x8x8xf32>
    %49 = arith.mulf %47, %48 : vector<4x8x8xf32>
    %cst_21 = arith.constant dense<0.000000e+00> : vector<4x8xf32>
    %50 = vector.multi_reduction <add>, %49, %cst_21 [2] : vector<4x8x8xf32> to vector<4x8xf32>
    %51 = vector.shape_cast %50 : vector<4x8xf32> to vector<4x8x1xf32>
    %52 = vector.broadcast %51 : vector<4x8x1xf32> to vector<4x8x8xf32>
    %53 = arith.divf %49, %52 : vector<4x8x8xf32>
    %54 = vector.extract_strided_slice %5 {offsets = [0, 0], sizes = [1, 32], strides = [1, 1]} : vector<2x32xf32> to vector<1x32xf32>
    %55 = vector.shape_cast %54 : vector<1x32xf32> to vector<1x1x32xf32>
    %56 = vector.broadcast %55 : vector<1x1x32xf32> to vector<4x8x32xf32>
    %57 = arith.mulf %18, %56 : vector<4x8x32xf32>
    "tpu.trace_start"() <{level = 10 : i32, message = "bij,bjd->bid"}> : () -> ()
    %cst_22 = arith.constant dense<0.000000e+00> : vector<4x8x32xf32>
    %58 = tpu.matmul %53, %57, %cst_22 {dimension_numbers = #tpu.dot_dimension_numbers<[2], [1], [1], [2], [0, 0, 0, 1, 1, 2], [0], [0]>} : vector<4x8x8xf32>, vector<4x8x32xf32>, vector<4x8x32xf32> -> vector<4x8x32xf32>
    "tpu.trace_stop"() : () -> ()
    %59 = vector.extract_strided_slice %4 {offsets = [1, 0], sizes = [1, 32], strides = [1, 1]} : vector<2x32xf32> to vector<1x32xf32>
    %60 = vector.shape_cast %59 : vector<1x32xf32> to vector<1x1x1x32xf32>
    %61 = vector.broadcast %60 : vector<1x1x1x32xf32> to vector<4x8x8x32xf32>
    %62 = arith.mulf %30, %61 : vector<4x8x8x32xf32>
    %cst_23 = arith.constant dense<0.000000e+00> : vector<4x8x8xf32>
    %63 = vector.multi_reduction <add>, %62, %cst_23 [3] : vector<4x8x8x32xf32> to vector<4x8x8xf32>
    %cst_24 = arith.constant 0.000000e+00 : f32
    %64 = vector.broadcast %cst_24 : f32 to vector<1x8x8xf32>
    %65 = arith.cmpf ogt, %31, %64 : vector<1x8x8xf32>
    %cst_25 = arith.constant -1.000000e+30 : f32
    %66 = vector.shape_cast %65 : vector<1x8x8xi1> to vector<1x8x8xi1>
    %67 = vector.broadcast %66 : vector<1x8x8xi1> to vector<4x8x8xi1>
    %68 = vector.broadcast %cst_25 : f32 to vector<4x8x8xf32>
    %69 = arith.select %67, %63, %68 : vector<4x8x8xi1>, vector<4x8x8xf32>
    %cst_26 = arith.constant dense<0xFF800000> : vector<4x8xf32>
    %70 = vector.multi_reduction <maximumf>, %69, %cst_26 [2] : vector<4x8x8xf32> to vector<4x8xf32>
    %71 = vector.shape_cast %70 : vector<4x8xf32> to vector<4x8x1xf32>
    %72 = vector.broadcast %71 : vector<4x8x1xf32> to vector<4x8x8xf32>
    %73 = arith.subf %69, %72 : vector<4x8x8xf32>
    %74 = math.exp %73 : vector<4x8x8xf32>
    %75 = vector.broadcast %31 : vector<1x8x8xf32> to vector<4x8x8xf32>
    %76 = arith.mulf %74, %75 : vector<4x8x8xf32>
    %cst_27 = arith.constant dense<0.000000e+00> : vector<4x8xf32>
    %77 = vector.multi_reduction <add>, %76, %cst_27 [2] : vector<4x8x8xf32> to vector<4x8xf32>
    %78 = vector.shape_cast %77 : vector<4x8xf32> to vector<4x8x1xf32>
    %79 = vector.broadcast %78 : vector<4x8x1xf32> to vector<4x8x8xf32>
    %80 = arith.divf %76, %79 : vector<4x8x8xf32>
    %81 = vector.extract_strided_slice %5 {offsets = [1, 0], sizes = [1, 32], strides = [1, 1]} : vector<2x32xf32> to vector<1x32xf32>
    %82 = vector.shape_cast %81 : vector<1x32xf32> to vector<1x1x32xf32>
    %83 = vector.broadcast %82 : vector<1x1x32xf32> to vector<4x8x32xf32>
    %84 = arith.mulf %18, %83 : vector<4x8x32xf32>
    "tpu.trace_start"() <{level = 10 : i32, message = "bij,bjd->bid"}> : () -> ()
    %cst_28 = arith.constant dense<0.000000e+00> : vector<4x8x32xf32>
    %85 = tpu.matmul %80, %84, %cst_28 {dimension_numbers = #tpu.dot_dimension_numbers<[2], [1], [1], [2], [0, 0, 0, 1, 1, 2], [0], [0]>} : vector<4x8x8xf32>, vector<4x8x32xf32>, vector<4x8x32xf32> -> vector<4x8x32xf32>
    "tpu.trace_stop"() : () -> ()
    %86 = arith.addf %58, %85 : vector<4x8x32xf32>
    %87 = vector.shape_cast %6 : vector<1x32xf32> to vector<1x1x32xf32>
    %88 = vector.broadcast %87 : vector<1x1x32xf32> to vector<4x8x32xf32>
    %89 = arith.addf %86, %88 : vector<4x8x32xf32>
    %90 = vector.shape_cast %89 : vector<4x8x32xf32> to vector<32x32xf32>
    %cst_29 = arith.constant dense<0.000000e+00> : vector<32x96xf32>
    %91 = tpu.matmul %90, %7, %cst_29 {dimension_numbers = #tpu.dot_dimension_numbers<[1], [0], [0], [1], [0, 0, 1, 1], [], []>} : vector<32x32xf32>, vector<32x96xf32>, vector<32x96xf32> -> vector<32x96xf32>
    %92 = vector.broadcast %8 : vector<1x96xf32> to vector<32x96xf32>
    %93 = arith.addf %91, %92 : vector<32x96xf32>
    %94 = vector.shape_cast %93 : vector<32x96xf32> to vector<4x8x96xf32>
    %95 = vector.extract_strided_slice %94 {offsets = [0, 0, 0], sizes = [4, 8, 32], strides = [1, 1, 1]} : vector<4x8x96xf32> to vector<4x8x32xf32>
    %96 = vector.extract_strided_slice %94 {offsets = [0, 0, 32], sizes = [4, 8, 32], strides = [1, 1, 1]} : vector<4x8x96xf32> to vector<4x8x32xf32>
    %97 = vector.extract_strided_slice %94 {offsets = [0, 0, 64], sizes = [4, 8, 32], strides = [1, 1, 1]} : vector<4x8x96xf32> to vector<4x8x32xf32>
    %98 = vector.extract_strided_slice %9 {offsets = [0, 0], sizes = [32, 32], strides = [1, 1]} : vector<32x96xf32> to vector<32x32xf32>
    %99 = vector.extract_strided_slice %9 {offsets = [0, 32], sizes = [32, 32], strides = [1, 1]} : vector<32x96xf32> to vector<32x32xf32>
    %100 = vector.extract_strided_slice %9 {offsets = [0, 64], sizes = [32, 32], strides = [1, 1]} : vector<32x96xf32> to vector<32x32xf32>
    %101 = vector.extract_strided_slice %10 {offsets = [0, 0], sizes = [1, 32], strides = [1, 1]} : vector<1x96xf32> to vector<1x32xf32>
    %102 = vector.extract_strided_slice %10 {offsets = [0, 32], sizes = [1, 32], strides = [1, 1]} : vector<1x96xf32> to vector<1x32xf32>
    %103 = vector.extract_strided_slice %10 {offsets = [0, 64], sizes = [1, 32], strides = [1, 1]} : vector<1x96xf32> to vector<1x32xf32>
    %cst_30 = arith.constant 0.000000e+00 : f32
    %104 = vector.broadcast %cst_30 : f32 to vector<4x32xf32>
    %cst_31 = arith.constant dense<0.000000e+00> : vector<4x32xf32>
    %105 = tpu.matmul %104, %98, %cst_31 {dimension_numbers = #tpu.dot_dimension_numbers<[1], [0], [0], [1], [0, 0, 1, 1], [], []>} : vector<4x32xf32>, vector<32x32xf32>, vector<4x32xf32> -> vector<4x32xf32>
    %106 = vector.broadcast %101 : vector<1x32xf32> to vector<4x32xf32>
    %107 = arith.addf %105, %106 : vector<4x32xf32>
    %cst_32 = arith.constant dense<0.000000e+00> : vector<4x32xf32>
    %108 = tpu.matmul %104, %99, %cst_32 {dimension_numbers = #tpu.dot_dimension_numbers<[1], [0], [0], [1], [0, 0, 1, 1], [], []>} : vector<4x32xf32>, vector<32x32xf32>, vector<4x32xf32> -> vector<4x32xf32>
    %109 = vector.broadcast %102 : vector<1x32xf32> to vector<4x32xf32>
    %110 = arith.addf %108, %109 : vector<4x32xf32>
    %cst_33 = arith.constant dense<0.000000e+00> : vector<4x32xf32>
    %111 = tpu.matmul %104, %100, %cst_33 {dimension_numbers = #tpu.dot_dimension_numbers<[1], [0], [0], [1], [0, 0, 1, 1], [], []>} : vector<4x32xf32>, vector<32x32xf32>, vector<4x32xf32> -> vector<4x32xf32>
    %112 = vector.broadcast %103 : vector<1x32xf32> to vector<4x32xf32>
    %113 = arith.addf %111, %112 : vector<4x32xf32>
    %114 = vector.extract_strided_slice %95 {offsets = [0, 0, 0], sizes = [4, 1, 32], strides = [1, 1, 1]} : vector<4x8x32xf32> to vector<4x1x32xf32>
    %115 = vector.shape_cast %114 : vector<4x1x32xf32> to vector<4x32xf32>
    %116 = arith.addf %115, %107 : vector<4x32xf32>
    %117 = arith.negf %116 : vector<4x32xf32>
    %118 = math.exp %117 : vector<4x32xf32>
    %cst_34 = arith.constant 1.000000e+00 : f32
    %119 = vector.broadcast %cst_34 : f32 to vector<4x32xf32>
    %120 = arith.addf %119, %118 : vector<4x32xf32>
    %121 = arith.divf %119, %120 : vector<4x32xf32>
    %122 = vector.extract_strided_slice %96 {offsets = [0, 0, 0], sizes = [4, 1, 32], strides = [1, 1, 1]} : vector<4x8x32xf32> to vector<4x1x32xf32>
    %123 = vector.shape_cast %122 : vector<4x1x32xf32> to vector<4x32xf32>
    %124 = arith.addf %123, %110 : vector<4x32xf32>
    %125 = arith.negf %124 : vector<4x32xf32>
    %126 = math.exp %125 : vector<4x32xf32>
    %cst_35 = arith.constant 1.000000e+00 : f32
    %127 = vector.broadcast %cst_35 : f32 to vector<4x32xf32>
    %128 = arith.addf %127, %126 : vector<4x32xf32>
    %129 = arith.divf %127, %128 : vector<4x32xf32>
    %130 = vector.extract_strided_slice %97 {offsets = [0, 0, 0], sizes = [4, 1, 32], strides = [1, 1, 1]} : vector<4x8x32xf32> to vector<4x1x32xf32>
    %131 = vector.shape_cast %130 : vector<4x1x32xf32> to vector<4x32xf32>
    %132 = arith.mulf %121, %113 : vector<4x32xf32>
    %133 = arith.addf %131, %132 : vector<4x32xf32>
    %134 = math.tanh %133 : vector<4x32xf32>
    %cst_36 = arith.constant 1.000000e+00 : f32
    %135 = vector.broadcast %cst_36 : f32 to vector<4x32xf32>
    %136 = arith.subf %135, %129 : vector<4x32xf32>
    %137 = arith.mulf %136, %134 : vector<4x32xf32>
    %138 = arith.mulf %129, %104 : vector<4x32xf32>
    %139 = arith.addf %137, %138 : vector<4x32xf32>
    %cst_37 = arith.constant dense<0.000000e+00> : vector<4x32xf32>
    %140 = tpu.matmul %139, %98, %cst_37 {dimension_numbers = #tpu.dot_dimension_numbers<[1], [0], [0], [1], [0, 0, 1, 1], [], []>} : vector<4x32xf32>, vector<32x32xf32>, vector<4x32xf32> -> vector<4x32xf32>
    %141 = vector.broadcast %101 : vector<1x32xf32> to vector<4x32xf32>
    %142 = arith.addf %140, %141 : vector<4x32xf32>
    %cst_38 = arith.constant dense<0.000000e+00> : vector<4x32xf32>
    %143 = tpu.matmul %139, %99, %cst_38 {dimension_numbers = #tpu.dot_dimension_numbers<[1], [0], [0], [1], [0, 0, 1, 1], [], []>} : vector<4x32xf32>, vector<32x32xf32>, vector<4x32xf32> -> vector<4x32xf32>
    %144 = vector.broadcast %102 : vector<1x32xf32> to vector<4x32xf32>
    %145 = arith.addf %143, %144 : vector<4x32xf32>
    %cst_39 = arith.constant dense<0.000000e+00> : vector<4x32xf32>
    %146 = tpu.matmul %139, %100, %cst_39 {dimension_numbers = #tpu.dot_dimension_numbers<[1], [0], [0], [1], [0, 0, 1, 1], [], []>} : vector<4x32xf32>, vector<32x32xf32>, vector<4x32xf32> -> vector<4x32xf32>
    %147 = vector.broadcast %103 : vector<1x32xf32> to vector<4x32xf32>
    %148 = arith.addf %146, %147 : vector<4x32xf32>
    %149 = vector.extract_strided_slice %95 {offsets = [0, 1, 0], sizes = [4, 1, 32], strides = [1, 1, 1]} : vector<4x8x32xf32> to vector<4x1x32xf32>
    %150 = vector.shape_cast %149 : vector<4x1x32xf32> to vector<4x32xf32>
    %151 = arith.addf %150, %142 : vector<4x32xf32>
    %152 = arith.negf %151 : vector<4x32xf32>
    %153 = math.exp %152 : vector<4x32xf32>
    %cst_40 = arith.constant 1.000000e+00 : f32
    %154 = vector.broadcast %cst_40 : f32 to vector<4x32xf32>
    %155 = arith.addf %154, %153 : vector<4x32xf32>
    %156 = arith.divf %154, %155 : vector<4x32xf32>
    %157 = vector.extract_strided_slice %96 {offsets = [0, 1, 0], sizes = [4, 1, 32], strides = [1, 1, 1]} : vector<4x8x32xf32> to vector<4x1x32xf32>
    %158 = vector.shape_cast %157 : vector<4x1x32xf32> to vector<4x32xf32>
    %159 = arith.addf %158, %145 : vector<4x32xf32>
    %160 = arith.negf %159 : vector<4x32xf32>
    %161 = math.exp %160 : vector<4x32xf32>
    %cst_41 = arith.constant 1.000000e+00 : f32
    %162 = vector.broadcast %cst_41 : f32 to vector<4x32xf32>
    %163 = arith.addf %162, %161 : vector<4x32xf32>
    %164 = arith.divf %162, %163 : vector<4x32xf32>
    %165 = vector.extract_strided_slice %97 {offsets = [0, 1, 0], sizes = [4, 1, 32], strides = [1, 1, 1]} : vector<4x8x32xf32> to vector<4x1x32xf32>
    %166 = vector.shape_cast %165 : vector<4x1x32xf32> to vector<4x32xf32>
    %167 = arith.mulf %156, %148 : vector<4x32xf32>
    %168 = arith.addf %166, %167 : vector<4x32xf32>
    %169 = math.tanh %168 : vector<4x32xf32>
    %cst_42 = arith.constant 1.000000e+00 : f32
    %170 = vector.broadcast %cst_42 : f32 to vector<4x32xf32>
    %171 = arith.subf %170, %164 : vector<4x32xf32>
    %172 = arith.mulf %171, %169 : vector<4x32xf32>
    %173 = arith.mulf %164, %139 : vector<4x32xf32>
    %174 = arith.addf %172, %173 : vector<4x32xf32>
    %cst_43 = arith.constant dense<0.000000e+00> : vector<4x32xf32>
    %175 = tpu.matmul %174, %98, %cst_43 {dimension_numbers = #tpu.dot_dimension_numbers<[1], [0], [0], [1], [0, 0, 1, 1], [], []>} : vector<4x32xf32>, vector<32x32xf32>, vector<4x32xf32> -> vector<4x32xf32>
    %176 = vector.broadcast %101 : vector<1x32xf32> to vector<4x32xf32>
    %177 = arith.addf %175, %176 : vector<4x32xf32>
    %cst_44 = arith.constant dense<0.000000e+00> : vector<4x32xf32>
    %178 = tpu.matmul %174, %99, %cst_44 {dimension_numbers = #tpu.dot_dimension_numbers<[1], [0], [0], [1], [0, 0, 1, 1], [], []>} : vector<4x32xf32>, vector<32x32xf32>, vector<4x32xf32> -> vector<4x32xf32>
    %179 = vector.broadcast %102 : vector<1x32xf32> to vector<4x32xf32>
    %180 = arith.addf %178, %179 : vector<4x32xf32>
    %cst_45 = arith.constant dense<0.000000e+00> : vector<4x32xf32>
    %181 = tpu.matmul %174, %100, %cst_45 {dimension_numbers = #tpu.dot_dimension_numbers<[1], [0], [0], [1], [0, 0, 1, 1], [], []>} : vector<4x32xf32>, vector<32x32xf32>, vector<4x32xf32> -> vector<4x32xf32>
    %182 = vector.broadcast %103 : vector<1x32xf32> to vector<4x32xf32>
    %183 = arith.addf %181, %182 : vector<4x32xf32>
    %184 = vector.extract_strided_slice %95 {offsets = [0, 2, 0], sizes = [4, 1, 32], strides = [1, 1, 1]} : vector<4x8x32xf32> to vector<4x1x32xf32>
    %185 = vector.shape_cast %184 : vector<4x1x32xf32> to vector<4x32xf32>
    %186 = arith.addf %185, %177 : vector<4x32xf32>
    %187 = arith.negf %186 : vector<4x32xf32>
    %188 = math.exp %187 : vector<4x32xf32>
    %cst_46 = arith.constant 1.000000e+00 : f32
    %189 = vector.broadcast %cst_46 : f32 to vector<4x32xf32>
    %190 = arith.addf %189, %188 : vector<4x32xf32>
    %191 = arith.divf %189, %190 : vector<4x32xf32>
    %192 = vector.extract_strided_slice %96 {offsets = [0, 2, 0], sizes = [4, 1, 32], strides = [1, 1, 1]} : vector<4x8x32xf32> to vector<4x1x32xf32>
    %193 = vector.shape_cast %192 : vector<4x1x32xf32> to vector<4x32xf32>
    %194 = arith.addf %193, %180 : vector<4x32xf32>
    %195 = arith.negf %194 : vector<4x32xf32>
    %196 = math.exp %195 : vector<4x32xf32>
    %cst_47 = arith.constant 1.000000e+00 : f32
    %197 = vector.broadcast %cst_47 : f32 to vector<4x32xf32>
    %198 = arith.addf %197, %196 : vector<4x32xf32>
    %199 = arith.divf %197, %198 : vector<4x32xf32>
    %200 = vector.extract_strided_slice %97 {offsets = [0, 2, 0], sizes = [4, 1, 32], strides = [1, 1, 1]} : vector<4x8x32xf32> to vector<4x1x32xf32>
    %201 = vector.shape_cast %200 : vector<4x1x32xf32> to vector<4x32xf32>
    %202 = arith.mulf %191, %183 : vector<4x32xf32>
    %203 = arith.addf %201, %202 : vector<4x32xf32>
    %204 = math.tanh %203 : vector<4x32xf32>
    %cst_48 = arith.constant 1.000000e+00 : f32
    %205 = vector.broadcast %cst_48 : f32 to vector<4x32xf32>
    %206 = arith.subf %205, %199 : vector<4x32xf32>
    %207 = arith.mulf %206, %204 : vector<4x32xf32>
    %208 = arith.mulf %199, %174 : vector<4x32xf32>
    %209 = arith.addf %207, %208 : vector<4x32xf32>
    %cst_49 = arith.constant dense<0.000000e+00> : vector<4x32xf32>
    %210 = tpu.matmul %209, %98, %cst_49 {dimension_numbers = #tpu.dot_dimension_numbers<[1], [0], [0], [1], [0, 0, 1, 1], [], []>} : vector<4x32xf32>, vector<32x32xf32>, vector<4x32xf32> -> vector<4x32xf32>
    %211 = vector.broadcast %101 : vector<1x32xf32> to vector<4x32xf32>
    %212 = arith.addf %210, %211 : vector<4x32xf32>
    %cst_50 = arith.constant dense<0.000000e+00> : vector<4x32xf32>
    %213 = tpu.matmul %209, %99, %cst_50 {dimension_numbers = #tpu.dot_dimension_numbers<[1], [0], [0], [1], [0, 0, 1, 1], [], []>} : vector<4x32xf32>, vector<32x32xf32>, vector<4x32xf32> -> vector<4x32xf32>
    %214 = vector.broadcast %102 : vector<1x32xf32> to vector<4x32xf32>
    %215 = arith.addf %213, %214 : vector<4x32xf32>
    %cst_51 = arith.constant dense<0.000000e+00> : vector<4x32xf32>
    %216 = tpu.matmul %209, %100, %cst_51 {dimension_numbers = #tpu.dot_dimension_numbers<[1], [0], [0], [1], [0, 0, 1, 1], [], []>} : vector<4x32xf32>, vector<32x32xf32>, vector<4x32xf32> -> vector<4x32xf32>
    %217 = vector.broadcast %103 : vector<1x32xf32> to vector<4x32xf32>
    %218 = arith.addf %216, %217 : vector<4x32xf32>
    %219 = vector.extract_strided_slice %95 {offsets = [0, 3, 0], sizes = [4, 1, 32], strides = [1, 1, 1]} : vector<4x8x32xf32> to vector<4x1x32xf32>
    %220 = vector.shape_cast %219 : vector<4x1x32xf32> to vector<4x32xf32>
    %221 = arith.addf %220, %212 : vector<4x32xf32>
    %222 = arith.negf %221 : vector<4x32xf32>
    %223 = math.exp %222 : vector<4x32xf32>
    %cst_52 = arith.constant 1.000000e+00 : f32
    %224 = vector.broadcast %cst_52 : f32 to vector<4x32xf32>
    %225 = arith.addf %224, %223 : vector<4x32xf32>
    %226 = arith.divf %224, %225 : vector<4x32xf32>
    %227 = vector.extract_strided_slice %96 {offsets = [0, 3, 0], sizes = [4, 1, 32], strides = [1, 1, 1]} : vector<4x8x32xf32> to vector<4x1x32xf32>
    %228 = vector.shape_cast %227 : vector<4x1x32xf32> to vector<4x32xf32>
    %229 = arith.addf %228, %215 : vector<4x32xf32>
    %230 = arith.negf %229 : vector<4x32xf32>
    %231 = math.exp %230 : vector<4x32xf32>
    %cst_53 = arith.constant 1.000000e+00 : f32
    %232 = vector.broadcast %cst_53 : f32 to vector<4x32xf32>
    %233 = arith.addf %232, %231 : vector<4x32xf32>
    %234 = arith.divf %232, %233 : vector<4x32xf32>
    %235 = vector.extract_strided_slice %97 {offsets = [0, 3, 0], sizes = [4, 1, 32], strides = [1, 1, 1]} : vector<4x8x32xf32> to vector<4x1x32xf32>
    %236 = vector.shape_cast %235 : vector<4x1x32xf32> to vector<4x32xf32>
    %237 = arith.mulf %226, %218 : vector<4x32xf32>
    %238 = arith.addf %236, %237 : vector<4x32xf32>
    %239 = math.tanh %238 : vector<4x32xf32>
    %cst_54 = arith.constant 1.000000e+00 : f32
    %240 = vector.broadcast %cst_54 : f32 to vector<4x32xf32>
    %241 = arith.subf %240, %234 : vector<4x32xf32>
    %242 = arith.mulf %241, %239 : vector<4x32xf32>
    %243 = arith.mulf %234, %209 : vector<4x32xf32>
    %244 = arith.addf %242, %243 : vector<4x32xf32>
    %cst_55 = arith.constant dense<0.000000e+00> : vector<4x32xf32>
    %245 = tpu.matmul %244, %98, %cst_55 {dimension_numbers = #tpu.dot_dimension_numbers<[1], [0], [0], [1], [0, 0, 1, 1], [], []>} : vector<4x32xf32>, vector<32x32xf32>, vector<4x32xf32> -> vector<4x32xf32>
    %246 = vector.broadcast %101 : vector<1x32xf32> to vector<4x32xf32>
    %247 = arith.addf %245, %246 : vector<4x32xf32>
    %cst_56 = arith.constant dense<0.000000e+00> : vector<4x32xf32>
    %248 = tpu.matmul %244, %99, %cst_56 {dimension_numbers = #tpu.dot_dimension_numbers<[1], [0], [0], [1], [0, 0, 1, 1], [], []>} : vector<4x32xf32>, vector<32x32xf32>, vector<4x32xf32> -> vector<4x32xf32>
    %249 = vector.broadcast %102 : vector<1x32xf32> to vector<4x32xf32>
    %250 = arith.addf %248, %249 : vector<4x32xf32>
    %cst_57 = arith.constant dense<0.000000e+00> : vector<4x32xf32>
    %251 = tpu.matmul %244, %100, %cst_57 {dimension_numbers = #tpu.dot_dimension_numbers<[1], [0], [0], [1], [0, 0, 1, 1], [], []>} : vector<4x32xf32>, vector<32x32xf32>, vector<4x32xf32> -> vector<4x32xf32>
    %252 = vector.broadcast %103 : vector<1x32xf32> to vector<4x32xf32>
    %253 = arith.addf %251, %252 : vector<4x32xf32>
    %254 = vector.extract_strided_slice %95 {offsets = [0, 4, 0], sizes = [4, 1, 32], strides = [1, 1, 1]} : vector<4x8x32xf32> to vector<4x1x32xf32>
    %255 = vector.shape_cast %254 : vector<4x1x32xf32> to vector<4x32xf32>
    %256 = arith.addf %255, %247 : vector<4x32xf32>
    %257 = arith.negf %256 : vector<4x32xf32>
    %258 = math.exp %257 : vector<4x32xf32>
    %cst_58 = arith.constant 1.000000e+00 : f32
    %259 = vector.broadcast %cst_58 : f32 to vector<4x32xf32>
    %260 = arith.addf %259, %258 : vector<4x32xf32>
    %261 = arith.divf %259, %260 : vector<4x32xf32>
    %262 = vector.extract_strided_slice %96 {offsets = [0, 4, 0], sizes = [4, 1, 32], strides = [1, 1, 1]} : vector<4x8x32xf32> to vector<4x1x32xf32>
    %263 = vector.shape_cast %262 : vector<4x1x32xf32> to vector<4x32xf32>
    %264 = arith.addf %263, %250 : vector<4x32xf32>
    %265 = arith.negf %264 : vector<4x32xf32>
    %266 = math.exp %265 : vector<4x32xf32>
    %cst_59 = arith.constant 1.000000e+00 : f32
    %267 = vector.broadcast %cst_59 : f32 to vector<4x32xf32>
    %268 = arith.addf %267, %266 : vector<4x32xf32>
    %269 = arith.divf %267, %268 : vector<4x32xf32>
    %270 = vector.extract_strided_slice %97 {offsets = [0, 4, 0], sizes = [4, 1, 32], strides = [1, 1, 1]} : vector<4x8x32xf32> to vector<4x1x32xf32>
    %271 = vector.shape_cast %270 : vector<4x1x32xf32> to vector<4x32xf32>
    %272 = arith.mulf %261, %253 : vector<4x32xf32>
    %273 = arith.addf %271, %272 : vector<4x32xf32>
    %274 = math.tanh %273 : vector<4x32xf32>
    %cst_60 = arith.constant 1.000000e+00 : f32
    %275 = vector.broadcast %cst_60 : f32 to vector<4x32xf32>
    %276 = arith.subf %275, %269 : vector<4x32xf32>
    %277 = arith.mulf %276, %274 : vector<4x32xf32>
    %278 = arith.mulf %269, %244 : vector<4x32xf32>
    %279 = arith.addf %277, %278 : vector<4x32xf32>
    %cst_61 = arith.constant dense<0.000000e+00> : vector<4x32xf32>
    %280 = tpu.matmul %279, %98, %cst_61 {dimension_numbers = #tpu.dot_dimension_numbers<[1], [0], [0], [1], [0, 0, 1, 1], [], []>} : vector<4x32xf32>, vector<32x32xf32>, vector<4x32xf32> -> vector<4x32xf32>
    %281 = vector.broadcast %101 : vector<1x32xf32> to vector<4x32xf32>
    %282 = arith.addf %280, %281 : vector<4x32xf32>
    %cst_62 = arith.constant dense<0.000000e+00> : vector<4x32xf32>
    %283 = tpu.matmul %279, %99, %cst_62 {dimension_numbers = #tpu.dot_dimension_numbers<[1], [0], [0], [1], [0, 0, 1, 1], [], []>} : vector<4x32xf32>, vector<32x32xf32>, vector<4x32xf32> -> vector<4x32xf32>
    %284 = vector.broadcast %102 : vector<1x32xf32> to vector<4x32xf32>
    %285 = arith.addf %283, %284 : vector<4x32xf32>
    %cst_63 = arith.constant dense<0.000000e+00> : vector<4x32xf32>
    %286 = tpu.matmul %279, %100, %cst_63 {dimension_numbers = #tpu.dot_dimension_numbers<[1], [0], [0], [1], [0, 0, 1, 1], [], []>} : vector<4x32xf32>, vector<32x32xf32>, vector<4x32xf32> -> vector<4x32xf32>
    %287 = vector.broadcast %103 : vector<1x32xf32> to vector<4x32xf32>
    %288 = arith.addf %286, %287 : vector<4x32xf32>
    %289 = vector.extract_strided_slice %95 {offsets = [0, 5, 0], sizes = [4, 1, 32], strides = [1, 1, 1]} : vector<4x8x32xf32> to vector<4x1x32xf32>
    %290 = vector.shape_cast %289 : vector<4x1x32xf32> to vector<4x32xf32>
    %291 = arith.addf %290, %282 : vector<4x32xf32>
    %292 = arith.negf %291 : vector<4x32xf32>
    %293 = math.exp %292 : vector<4x32xf32>
    %cst_64 = arith.constant 1.000000e+00 : f32
    %294 = vector.broadcast %cst_64 : f32 to vector<4x32xf32>
    %295 = arith.addf %294, %293 : vector<4x32xf32>
    %296 = arith.divf %294, %295 : vector<4x32xf32>
    %297 = vector.extract_strided_slice %96 {offsets = [0, 5, 0], sizes = [4, 1, 32], strides = [1, 1, 1]} : vector<4x8x32xf32> to vector<4x1x32xf32>
    %298 = vector.shape_cast %297 : vector<4x1x32xf32> to vector<4x32xf32>
    %299 = arith.addf %298, %285 : vector<4x32xf32>
    %300 = arith.negf %299 : vector<4x32xf32>
    %301 = math.exp %300 : vector<4x32xf32>
    %cst_65 = arith.constant 1.000000e+00 : f32
    %302 = vector.broadcast %cst_65 : f32 to vector<4x32xf32>
    %303 = arith.addf %302, %301 : vector<4x32xf32>
    %304 = arith.divf %302, %303 : vector<4x32xf32>
    %305 = vector.extract_strided_slice %97 {offsets = [0, 5, 0], sizes = [4, 1, 32], strides = [1, 1, 1]} : vector<4x8x32xf32> to vector<4x1x32xf32>
    %306 = vector.shape_cast %305 : vector<4x1x32xf32> to vector<4x32xf32>
    %307 = arith.mulf %296, %288 : vector<4x32xf32>
    %308 = arith.addf %306, %307 : vector<4x32xf32>
    %309 = math.tanh %308 : vector<4x32xf32>
    %cst_66 = arith.constant 1.000000e+00 : f32
    %310 = vector.broadcast %cst_66 : f32 to vector<4x32xf32>
    %311 = arith.subf %310, %304 : vector<4x32xf32>
    %312 = arith.mulf %311, %309 : vector<4x32xf32>
    %313 = arith.mulf %304, %279 : vector<4x32xf32>
    %314 = arith.addf %312, %313 : vector<4x32xf32>
    %cst_67 = arith.constant dense<0.000000e+00> : vector<4x32xf32>
    %315 = tpu.matmul %314, %98, %cst_67 {dimension_numbers = #tpu.dot_dimension_numbers<[1], [0], [0], [1], [0, 0, 1, 1], [], []>} : vector<4x32xf32>, vector<32x32xf32>, vector<4x32xf32> -> vector<4x32xf32>
    %316 = vector.broadcast %101 : vector<1x32xf32> to vector<4x32xf32>
    %317 = arith.addf %315, %316 : vector<4x32xf32>
    %cst_68 = arith.constant dense<0.000000e+00> : vector<4x32xf32>
    %318 = tpu.matmul %314, %99, %cst_68 {dimension_numbers = #tpu.dot_dimension_numbers<[1], [0], [0], [1], [0, 0, 1, 1], [], []>} : vector<4x32xf32>, vector<32x32xf32>, vector<4x32xf32> -> vector<4x32xf32>
    %319 = vector.broadcast %102 : vector<1x32xf32> to vector<4x32xf32>
    %320 = arith.addf %318, %319 : vector<4x32xf32>
    %cst_69 = arith.constant dense<0.000000e+00> : vector<4x32xf32>
    %321 = tpu.matmul %314, %100, %cst_69 {dimension_numbers = #tpu.dot_dimension_numbers<[1], [0], [0], [1], [0, 0, 1, 1], [], []>} : vector<4x32xf32>, vector<32x32xf32>, vector<4x32xf32> -> vector<4x32xf32>
    %322 = vector.broadcast %103 : vector<1x32xf32> to vector<4x32xf32>
    %323 = arith.addf %321, %322 : vector<4x32xf32>
    %324 = vector.extract_strided_slice %95 {offsets = [0, 6, 0], sizes = [4, 1, 32], strides = [1, 1, 1]} : vector<4x8x32xf32> to vector<4x1x32xf32>
    %325 = vector.shape_cast %324 : vector<4x1x32xf32> to vector<4x32xf32>
    %326 = arith.addf %325, %317 : vector<4x32xf32>
    %327 = arith.negf %326 : vector<4x32xf32>
    %328 = math.exp %327 : vector<4x32xf32>
    %cst_70 = arith.constant 1.000000e+00 : f32
    %329 = vector.broadcast %cst_70 : f32 to vector<4x32xf32>
    %330 = arith.addf %329, %328 : vector<4x32xf32>
    %331 = arith.divf %329, %330 : vector<4x32xf32>
    %332 = vector.extract_strided_slice %96 {offsets = [0, 6, 0], sizes = [4, 1, 32], strides = [1, 1, 1]} : vector<4x8x32xf32> to vector<4x1x32xf32>
    %333 = vector.shape_cast %332 : vector<4x1x32xf32> to vector<4x32xf32>
    %334 = arith.addf %333, %320 : vector<4x32xf32>
    %335 = arith.negf %334 : vector<4x32xf32>
    %336 = math.exp %335 : vector<4x32xf32>
    %cst_71 = arith.constant 1.000000e+00 : f32
    %337 = vector.broadcast %cst_71 : f32 to vector<4x32xf32>
    %338 = arith.addf %337, %336 : vector<4x32xf32>
    %339 = arith.divf %337, %338 : vector<4x32xf32>
    %340 = vector.extract_strided_slice %97 {offsets = [0, 6, 0], sizes = [4, 1, 32], strides = [1, 1, 1]} : vector<4x8x32xf32> to vector<4x1x32xf32>
    %341 = vector.shape_cast %340 : vector<4x1x32xf32> to vector<4x32xf32>
    %342 = arith.mulf %331, %323 : vector<4x32xf32>
    %343 = arith.addf %341, %342 : vector<4x32xf32>
    %344 = math.tanh %343 : vector<4x32xf32>
    %cst_72 = arith.constant 1.000000e+00 : f32
    %345 = vector.broadcast %cst_72 : f32 to vector<4x32xf32>
    %346 = arith.subf %345, %339 : vector<4x32xf32>
    %347 = arith.mulf %346, %344 : vector<4x32xf32>
    %348 = arith.mulf %339, %314 : vector<4x32xf32>
    %349 = arith.addf %347, %348 : vector<4x32xf32>
    %cst_73 = arith.constant dense<0.000000e+00> : vector<4x32xf32>
    %350 = tpu.matmul %349, %98, %cst_73 {dimension_numbers = #tpu.dot_dimension_numbers<[1], [0], [0], [1], [0, 0, 1, 1], [], []>} : vector<4x32xf32>, vector<32x32xf32>, vector<4x32xf32> -> vector<4x32xf32>
    %351 = vector.broadcast %101 : vector<1x32xf32> to vector<4x32xf32>
    %352 = arith.addf %350, %351 : vector<4x32xf32>
    %cst_74 = arith.constant dense<0.000000e+00> : vector<4x32xf32>
    %353 = tpu.matmul %349, %99, %cst_74 {dimension_numbers = #tpu.dot_dimension_numbers<[1], [0], [0], [1], [0, 0, 1, 1], [], []>} : vector<4x32xf32>, vector<32x32xf32>, vector<4x32xf32> -> vector<4x32xf32>
    %354 = vector.broadcast %102 : vector<1x32xf32> to vector<4x32xf32>
    %355 = arith.addf %353, %354 : vector<4x32xf32>
    %cst_75 = arith.constant dense<0.000000e+00> : vector<4x32xf32>
    %356 = tpu.matmul %349, %100, %cst_75 {dimension_numbers = #tpu.dot_dimension_numbers<[1], [0], [0], [1], [0, 0, 1, 1], [], []>} : vector<4x32xf32>, vector<32x32xf32>, vector<4x32xf32> -> vector<4x32xf32>
    %357 = vector.broadcast %103 : vector<1x32xf32> to vector<4x32xf32>
    %358 = arith.addf %356, %357 : vector<4x32xf32>
    %359 = vector.extract_strided_slice %95 {offsets = [0, 7, 0], sizes = [4, 1, 32], strides = [1, 1, 1]} : vector<4x8x32xf32> to vector<4x1x32xf32>
    %360 = vector.shape_cast %359 : vector<4x1x32xf32> to vector<4x32xf32>
    %361 = arith.addf %360, %352 : vector<4x32xf32>
    %362 = arith.negf %361 : vector<4x32xf32>
    %363 = math.exp %362 : vector<4x32xf32>
    %cst_76 = arith.constant 1.000000e+00 : f32
    %364 = vector.broadcast %cst_76 : f32 to vector<4x32xf32>
    %365 = arith.addf %364, %363 : vector<4x32xf32>
    %366 = arith.divf %364, %365 : vector<4x32xf32>
    %367 = vector.extract_strided_slice %96 {offsets = [0, 7, 0], sizes = [4, 1, 32], strides = [1, 1, 1]} : vector<4x8x32xf32> to vector<4x1x32xf32>
    %368 = vector.shape_cast %367 : vector<4x1x32xf32> to vector<4x32xf32>
    %369 = arith.addf %368, %355 : vector<4x32xf32>
    %370 = arith.negf %369 : vector<4x32xf32>
    %371 = math.exp %370 : vector<4x32xf32>
    %cst_77 = arith.constant 1.000000e+00 : f32
    %372 = vector.broadcast %cst_77 : f32 to vector<4x32xf32>
    %373 = arith.addf %372, %371 : vector<4x32xf32>
    %374 = arith.divf %372, %373 : vector<4x32xf32>
    %375 = vector.extract_strided_slice %97 {offsets = [0, 7, 0], sizes = [4, 1, 32], strides = [1, 1, 1]} : vector<4x8x32xf32> to vector<4x1x32xf32>
    %376 = vector.shape_cast %375 : vector<4x1x32xf32> to vector<4x32xf32>
    %377 = arith.mulf %366, %358 : vector<4x32xf32>
    %378 = arith.addf %376, %377 : vector<4x32xf32>
    %379 = math.tanh %378 : vector<4x32xf32>
    %cst_78 = arith.constant 1.000000e+00 : f32
    %380 = vector.broadcast %cst_78 : f32 to vector<4x32xf32>
    %381 = arith.subf %380, %374 : vector<4x32xf32>
    %382 = arith.mulf %381, %379 : vector<4x32xf32>
    %383 = arith.mulf %374, %349 : vector<4x32xf32>
    %384 = arith.addf %382, %383 : vector<4x32xf32>
    %385 = vector.broadcast %11 : vector<1x32xf32> to vector<4x32xf32>
    %386 = arith.mulf %384, %385 : vector<4x32xf32>
    %cst_79 = arith.constant dense<0.000000e+00> : vector<4xf32>
    %387 = vector.multi_reduction <add>, %386, %cst_79 [1] : vector<4x32xf32> to vector<4xf32>
    %388 = vector.shape_cast %387 : vector<4xf32> to vector<4x1xf32>
    %389 = vector.broadcast %12 : vector<1x1xf32> to vector<4x1xf32>
    %390 = arith.addf %388, %389 : vector<4x1xf32>
    %391 = vector.shape_cast %390 : vector<4x1xf32> to vector<4x1x1xf32>
    %c0_80 = arith.constant 0 : index
    %c0_81 = arith.constant 0 : index
    %c0_82 = arith.constant 0 : index
    %392 = vector.load %arg3[%c0_80, %c0_81, %c0_82] : memref<4x1x1xf32, #tpu.memory_space<vmem>>, vector<4x1x1xf32>
    tpu.vector_store %arg3[%c0_80, %c0_81, %c0_82], %391 {strides = array<i32>} : memref<4x1x1xf32, #tpu.memory_space<vmem>>, vector<4x1x1xf32>,
    return
  }
  func.func @transform_0(%arg0: i32) -> (i32, i32, i32) {
    %c0_i32 = arith.constant 0 : i32
    %c0_i32_0 = arith.constant 0 : i32
    %c0_i32_1 = arith.constant 0 : i32
    return %arg0, %c0_i32, %c0_i32_0 : i32, i32, i32
  }
  func.func @transform_1(%arg0: i32) -> (i32, i32) {
    %c0_i32 = arith.constant 0 : i32
    %c0_i32_0 = arith.constant 0 : i32
    %c0_i32_1 = arith.constant 0 : i32
    return %c0_i32, %c0_i32_0 : i32, i32
  }
  func.func @transform_2(%arg0: i32) -> (i32, i32, i32) {
    %c0_i32 = arith.constant 0 : i32
    %c0_i32_0 = arith.constant 0 : i32
    %c0_i32_1 = arith.constant 0 : i32
    return %arg0, %c0_i32, %c0_i32_0 : i32, i32, i32
  }
}

</mosaic_0001>

<bundles_post_ra>
// kernel: critic_forward.1
= control target key start
LH: loop header
LB: loop body
LE: loop exit
PB: predicated region body
PF: predicated region fallthrough
CT: control target
= control target key end

     0   :  { %7 = vsyncpa [#allocation3], 0  ;;  %s7852_s0 = inlined_call_operand.hbm [shape: f32[4,8,8], index: 0, kind: input, shape index: {}]   ;;  %s7853_s1 = inlined_call_operand.hbm [shape: f32[144,128], index: 1, kind: input, shape index: {}]   ;;  %s7854_s2 = inlined_call_operand.vmem [shape: f32[4,1,1], index: 2, kind: output, shape index: {}]  }
   0x1   :  { %8 = vsyncpa [#allocation5], 0  ;;  %s6360_s9 = smov [#allocation2]  }
   0x2   :  { %s14_s10 = sshll.u32 %s6360_s9, 4  ;;  %s15_s10 = int_to_ptr.vmem [resolvable:$true] %s14_s10 }
   0x3   :  { %s6324_s11 = scalar_lea.vmem %s15_s10, 512  ;;  %p6329_p1 = scmp.lt.s32.totalorder %s15_s10, %s15_s10 }
   0x4   :  { %p6325_p0 = scmp.ne.s32.totalorder %s15_s10, %s6324_s11  ;;  %p6330_p2 = scmp.lt.s32.totalorder %s6324_s11, %s6324_s11 }
   0x6   :  { %p6331_p3 = por %p6330_p2, %p6329_p1 }
   0x8   :  { %p6332_p4 = pnand %p6331_p3, %p6325_p0 }
   0xa   :  { %6335 = shalt.err (!%p6332_p4)
}
   0xb   :  { %s6361_s12 = smov 128   ;;  %s6362_s13 = smov 8  }
   0xc   :  { %20 = dma.hbm_to_vmem [thread:$0]  %s7852_s0, 512, %s15_s10, [#allocation3], %s6361_s12, %s6361_s12, %s6362_s13  }
   0xd   :  { %s6363_s16 = smov [#allocation4]  }
   0xe   :  { %s26_s17 = sshll.u32 %s6363_s16, 4  ;;  %s27_s17 = int_to_ptr.vmem [resolvable:$true] %s26_s17 }
   0xf   :  { %s6344_s18 = scalar_lea.vmem %s27_s17, 2304  ;;  %p6349_p6 = scmp.lt.s32.totalorder %s27_s17, %s27_s17 }
  0x10   :  { %p6345_p5 = scmp.ne.s32.totalorder %s27_s17, %s6344_s18  ;;  %p6350_p7 = scmp.lt.s32.totalorder %s6344_s18, %s6344_s18 }
  0x12   :  { %p6351_p8 = por %p6350_p7, %p6349_p6 }
  0x14   :  { %p6352_p9 = pnand %p6351_p8, %p6345_p5 }
  0x16   :  { %6355 = shalt.err (!%p6352_p9)
}
  0x17   :  { %32 = dma.hbm_to_vmem [thread:$0]  %s7853_s1, 2304, %s27_s17, [#allocation5], %s6361_s12, %s6361_s12, %s6362_s13  }
  0x18   :  { %6356 = dma.done.wait [#allocation3], 512  }
  0x19   :  { %6357 = vsyncadd [#allocation3], 4294966784 }
  0x1a   :  { %6358 = dma.done.wait [#allocation5], 2304  }
  0x1b   :  { %6359 = vsyncadd [#allocation5], 4294964992  ;;  %v43_v0 = vld [vmem:[#allocation4] sm:$0xff]  ;;  %vm65_vm0 = vcmask 64512   ;;  %v41_v2 = vld [vmem:[#allocation2 + $0x10] sm:$0xff]  ;;  %v171_v5 = vlaneseq  ;;  %v6364_v8 = vmov 0.0  }
  0x1c   :  { %v39_v1 = vld [vmem:[#allocation2] sm:$0xff]  ;;  %5615 = vmatprep.subr.mxu0 %v43_v0  ;;  %5941 = vmatprep.subr.mxu1 %v43_v0  ;;  %v40_v3 = vld [vmem:[#allocation2 + $0x8] sm:$0xff]  ;;  %v42_v4 = vld [vmem:[#allocation2 + $0x18] sm:$0xff]  ;;  %v6365_v10 = vmov 1966171168   ;;  %s6366_s0 = smov 96  }
  0x1d   :  { %5616 = vmatpush3.msra.mxu0 %v43_v0  ;;  %5942 = vmatpush3.msra.mxu1 %v43_v0  ;;  %v6395_v6 = vshrl.u32 %v171_v5, 7  ;;  %v884_v7 = vand.u32 127, %v171_v5  ;;  %v169_v11 = vunpack.c.l.s4 %v6365_v10  ;;  %v5359_v13 = vld [vmem:[#allocation4 + $0x8] ss:$0 sm:$0xff]  ;;  %v46_v15 = vld [vmem:[#allocation4 + $0x18] sm:$0x3] }
  0x1e   :  { %5617 = vmatprep.mubr.msk.f32.mxu0 %vm65_vm0, %v39_v1  ;;  %5620 = vmatprep.mubr.msk.f32.mxu1 %vm65_vm0, %v41_v2  ;;  %vm751_vm3 = vcmask 261120   ;;  %s6368_s1 = smov 64   ;;  %s6369_s21 = smov 32  }
  0x1f   :  { %5618 = vmatmul.mubr.msk.f32.vlgmr.msra.gmra.mxu0 %vm65_vm0, %v40_v3  ;;  %5621 = vmatmul.mubr.msk.f32.vlgmr.msra.gmra.mxu1 %vm65_vm0, %v42_v4  ;;  %v6400_v9 = vsub.s32 %v884_v7, %v6395_v6  ;;  %v170_v12 = vunpack.c.0.s8 %v169_v11  ;;  %v1114_v14 = vsub.s32 1, %v6395_v6  ;;  %v6425_v29 = vsub.s32 0, %v6395_v6 }
  0x20   :  { %5623 = vmatprep.subr.mxu1 %v6364_v8  ;;  %5633 = vmatprep.subr.mxu0 %v6364_v8 }
  0x21   :  { %v6404_v16 = vsub.s32 %v170_v12, %v6395_v6  ;;  %v6412_v23 = vrot.slane %v46_v15, %v1114_v14 }
  0xdf   :  { %v5619_v17 = vpop.f32.mrf.mxu0  ;;  %v5622_v18 = vpop.f32.mrf.mxu1 }
  0xe0   :  { %v6406_v19 = vadd.f32 %v5619_v17, %v5359_v13  ;;  %v6408_v20 = vadd.f32 %v5622_v18, %v5359_v13 }
  0xe1   :  { %v144_v21 = vpop.f32.mrf.mxu0  ;;  %v154_v22 = vpop.f32.mrf.mxu1 }
  0xe2   :  { %v6414_v24 = vadd.f32 %v5359_v13, %v144_v21  ;;  %v6416_v25 = vadd.f32 %v5359_v13, %v154_v22  ;;  %v321_v26 = vrot.slane %v6408_v20, %v6404_v16  ;;  %v223_v27 = vrot.slane %v6406_v19, %v6404_v16 }
  0xe3   :  { %v216_v28 = vcombine.high %v6406_v19, %v6406_v19  ;;  %v314_v47 = vcombine.high %v6408_v20, %v6408_v20 }
  0xe4   :  { %v1492_v30 = vmul.f32 %v6412_v23, %v6414_v24  ;;  %v1494_v31 = vmul.f32 %v6412_v23, %v6416_v25  ;;  %v337_v32 = vrot.slane %v321_v26, %v6404_v16  ;;  %v239_v33 = vrot.slane %v223_v27, %v6404_v16 }
  0xe5   :  { %v231_v34 = vcombine.high %v223_v27, %v223_v27  ;;  %v174_v35 = vrot.slane %v6414_v24, %v6404_v16  ;;  %v230_v40 = vrot.slane %v216_v28, %v6404_v16  ;;  %v272_v43 = vrot.slane %v6416_v25, %v6404_v16 }
  0xe6   :  { %5624 = vmatpush3.msra.mxu1 %v1492_v30  ;;  %5634 = vmatpush3.msra.mxu0 %v1494_v31  ;;  %v462_v36 = vrot.slane %v337_v32, %v6425_v29  ;;  %v398_v37 = vrot.slane %v239_v33, %v6425_v29  ;;  %v261_v41 = vcombine.high %v239_v33, %v239_v33 }
  0xe7   :  { %v253_v38 = vrot.slane %v231_v34, %v6404_v16  ;;  %v190_v39 = vrot.slane %v174_v35, %v6404_v16  ;;  %5628 = vmatprep.subr.mxu1 %v6364_v8  ;;  %5643 = vmatprep.subr.mxu0 %v6364_v8  ;;  %v329_v44 = vcombine.high %v321_v26, %v321_v26 }
  0xe8   :  { %539 = vrot.lane.b32.xlu1 %v462_v36, %s6366_s0  ;;  %507 = vrot.lane.b32.xlu0 %v398_v37, %s6366_s0  ;;  %v246_v46 = vrot.slane %v230_v40, %v6404_v16  ;;  %v406_v48 = vrot.slane %v261_v41, %v6425_v29  ;;  %v288_v49 = vrot.slane %v272_v43, %v6404_v16 }
  0xe9   :  { %v402_v42 = vrot.slane %v253_v38, %v6425_v29  ;;  %v366_v45 = vrot.slane %v190_v39, %v6425_v29  ;;  %v351_v51 = vrot.slane %v329_v44, %v6404_v16  ;;  %v328_v52 = vrot.slane %v314_v47, %v6404_v16 }
  0xea   :  { %v414_v50 = vrot.slane %v246_v46, %v6425_v29  ;;  %v359_v53 = vcombine.high %v337_v32, %v337_v32  ;;  %v430_v54 = vrot.slane %v288_v49, %v6425_v29  ;;  %v182_v57 = vcombine.high %v174_v35, %v174_v35 }
  0xeb   :  { %v466_v55 = vrot.slane %v351_v51, %v6425_v29  ;;  %v344_v56 = vrot.slane %v328_v52, %v6404_v16  ;;  %v167_v58 = vcombine.high %v6414_v24, %v6414_v24  ;;  %v212_v60 = vcombine.high %v190_v39, %v190_v39 }
  0xec   :  { %509 = vrot.lane.b32.xlu1 %v402_v42, %s6366_s0  ;;  %491 = vrot.lane.b32.xlu0 %v366_v45, %s6366_s0  ;;  %v470_v59 = vrot.slane %v359_v53, %v6425_v29  ;;  %v204_v62 = vrot.slane %v182_v57, %v6404_v16  ;;  %v263_v1 = vcombine.high %v253_v38, %v253_v38 }
  0xed   :  { %v478_v61 = vrot.slane %v344_v56, %v6425_v29  ;;  %v181_v63 = vrot.slane %v167_v58, %v6404_v16  ;;  %v374_v0 = vrot.slane %v212_v60, %v6425_v29  ;;  %v232_v2 = vcombine.high %v230_v40, %v230_v40  ;;  %v45_v60 = vld [vmem:[#allocation4 + $0x10] sm:$0x3] }
  0xee   :  { %v370_v3 = vrot.slane %v204_v62, %v6425_v29  ;;  %v280_v5 = vcombine.high %v272_v43, %v272_v43  ;;  %v410_v7 = vrot.slane %v263_v1, %v6425_v29  ;;  %v265_v11 = vcombine.high %v6416_v25, %v6416_v25 }
  0xef   :  { %v197_v4 = vrot.slane %v181_v63, %v6404_v16  ;;  %v260_v10 = vrot.slane %v232_v2, %v6404_v16  ;;  %v262_v17 = vcombine.high %v246_v46, %v246_v46  ;;  %v310_v22 = vcombine.high %v288_v49, %v288_v49 }
  0xf0   :  { %511 = vrot.lane.b32.xlu1 %v406_v48, %s6366_s0  ;;  %515 = vrot.lane.b32.xlu0 %v414_v50, %s6366_s0  ;;  %v302_v13 = vrot.slane %v280_v5, %v6404_v16  ;;  %v279_v18 = vrot.slane %v265_v11, %v6404_v16  ;;  %v361_v30 = vcombine.high %v351_v51, %v351_v51 }
  0xf1   :  { %v382_v12 = vrot.slane %v197_v4, %v6425_v29  ;;  %v418_v15 = vrot.slane %v260_v10, %v6425_v29  ;;  %v422_v26 = vrot.slane %v262_v17, %v6425_v29  ;;  %v438_v28 = vrot.slane %v310_v22, %v6425_v29 }
  0xf2   :  { %v434_v21 = vrot.slane %v302_v13, %v6425_v29  ;;  %v295_v27 = vrot.slane %v279_v18, %v6404_v16  ;;  %v330_v31 = vcombine.high %v328_v52, %v328_v52  ;;  %v214_v33 = vcombine.high %v204_v62, %v204_v62 }
  0xf3   :  { %v183_v34 = vcombine.high %v181_v63, %v181_v63  ;;  %v474_v35 = vrot.slane %v361_v30, %v6425_v29  ;;  %v281_v39 = vcombine.high %v279_v18, %v279_v18  ;;  %v360_v41 = vcombine.high %v344_v56, %v344_v56 }
  0xf4   :  { %523 = vrot.lane.b32.xlu1 %v430_v54, %s6366_s0  ;;  %541 = vrot.lane.b32.xlu0 %v466_v55, %s6366_s0  ;;  %v446_v32 = vrot.slane %v295_v27, %v6425_v29  ;;  %v358_v36 = vrot.slane %v330_v31, %v6404_v16  ;;  %v378_v37 = vrot.slane %v214_v33, %v6425_v29 }
  0xf5   :  { %v211_v38 = vrot.slane %v183_v34, %v6404_v16  ;;  %v309_v43 = vrot.slane %v281_v39, %v6404_v16  ;;  %v486_v44 = vrot.slane %v360_v41, %v6425_v29  ;;  %v213_v45 = vcombine.high %v197_v4, %v197_v4 }
  0xf6   :  { %v482_v40 = vrot.slane %v358_v36, %v6425_v29  ;;  %v311_v47 = vcombine.high %v295_v27, %v295_v27  ;;  %v312_v49 = vcombine.high %v302_v13, %v302_v13  ;;  %v362_v51 = vcombine.high %v358_v36, %v358_v36 }
  0xf7   :  { %v386_v42 = vrot.slane %v211_v38, %v6425_v29  ;;  %v450_v46 = vrot.slane %v309_v43, %v6425_v29  ;;  %v390_v48 = vrot.slane %v213_v45, %v6425_v29  ;;  %v264_v53 = vcombine.high %v260_v10, %v260_v10 }
  0xf8   :  { %543 = vrot.lane.b32.xlu1 %v470_v59, %s6366_s0  ;;  %547 = vrot.lane.b32.xlu0 %v478_v61, %s6366_s0  ;;  %v454_v50 = vrot.slane %v311_v47, %v6425_v29  ;;  %v442_v52 = vrot.slane %v312_v49, %v6425_v29  ;;  %v490_v54 = vrot.slane %v362_v51, %v6425_v29 }
  0xf9   :  { %v313_v55 = vcombine.high %v309_v43, %v309_v43  ;;  %v426_v56 = vrot.slane %v264_v53, %v6425_v29  ;;  %v215_v57 = vcombine.high %v211_v38, %v211_v38  ;;  %v6535_v11 = vrot.slane %v45_v60, %v6425_v29 }
  0xfb   :  { %v458_v58 = vrot.slane %v313_v55, %v6425_v29  ;;  %v394_v59 = vrot.slane %v215_v57, %v6425_v29 }
  0xfc   :  { %495 = vrot.lane.b32.xlu1 %v374_v0, %s6366_s0  ;;  %493 = vrot.lane.b32.xlu0 %v370_v3, %s6366_s0  ;;  %v6530_v0 = vrot.slane %v45_v60, %v1114_v14 }
 0x100   :  { %513 = vrot.lane.b32.xlu1 %v410_v7, %s6366_s0  ;;  %499 = vrot.lane.b32.xlu0 %v382_v12, %s6366_s0 }
 0x104   :  { %517 = vrot.lane.b32.xlu1 %v418_v15, %s6366_s0  ;;  %525 = vrot.lane.b32.xlu0 %v434_v21, %s6366_s0 }
 0x108   :  { %519 = vrot.lane.b32.xlu1 %v422_v26, %s6366_s0  ;;  %527 = vrot.lane.b32.xlu0 %v438_v28, %s6366_s0 }
 0x10c   :  { %531 = vrot.lane.b32.xlu1 %v446_v32, %s6366_s0  ;;  %545 = vrot.lane.b32.xlu0 %v474_v35, %s6366_s0 }
 0x110   :  { %497 = vrot.lane.b32.xlu1 %v378_v37, %s6366_s0  ;;  %549 = vrot.lane.b32.xlu0 %v482_v40, %s6366_s0 }
 0x114   :  { %501 = vrot.lane.b32.xlu1 %v386_v42, %s6366_s0  ;;  %551 = vrot.lane.b32.xlu0 %v486_v44, %s6366_s0 }
 0x118   :  { %533 = vrot.lane.b32.xlu1 %v450_v46, %s6366_s0  ;;  %503 = vrot.lane.b32.xlu0 %v390_v48, %s6366_s0 }
 0x11c   :  { %535 = vrot.lane.b32.xlu1 %v454_v50, %s6366_s0  ;;  %529 = vrot.lane.b32.xlu0 %v442_v52, %s6366_s0 }
 0x120   :  { %553 = vrot.lane.b32.xlu1 %v490_v54, %s6366_s0  ;;  %521 = vrot.lane.b32.xlu0 %v426_v56, %s6366_s0 }
 0x124   :  { %537 = vrot.lane.b32.xlu1 %v458_v58, %s6366_s0  ;;  %505 = vrot.lane.b32.xlu0 %v394_v59, %s6366_s0 }
 0x15a   :  { %v540_v61 = vpop.permute.xlu1 %539  ;;  %v508_v63 = vpop.permute.xlu0 %507 }
 0x15b   :  { %v611_v62 = vadd.f32 %v540_v61, %v6408_v20  ;;  %v595_v1 = vadd.f32 %v508_v63, %v6406_v19 }
 0x15d   :  { %v675_v2 = vmul.f32 0.2, %v611_v62  ;;  %vm643_vm1 = vcmp.ge.f32.partialorder %v611_v62, 0.0  ;;  %v659_v3 = vmul.f32 0.2, %v595_v1  ;;  %vm627_vm2 = vcmp.ge.f32.partialorder %v595_v1, 0.0 }
 0x15e   :  { %v510_v4 = vpop.permute.xlu1 %509  ;;  %v492_v7 = vpop.permute.xlu0 %491 }
 0x15f   :  { %v596_v5 = vadd.f32 %v510_v4, %v6406_v19  ;;  %v707_v10 = vsel %vm643_vm1, %v611_v62, %v675_v2  ;;  %v587_v12 = vadd.f32 %v492_v7, %v6414_v24  ;;  %v691_v6 = vsel %vm627_vm2, %v595_v1, %v659_v3 }
 0x160   :  { %v1140_v14 = vmul.f32 %v6530_v0, %v707_v10  ;;  %v1124_v15 = vmul.f32 %v6530_v0, %v691_v6  ;;  %v727_v28 = vmul.f32 %v6535_v11, %v691_v6  ;;  %v743_v37 = vmul.f32 %v6535_v11, %v707_v10 }
 0x161   :  { %v660_v13 = vmul.f32 0.2, %v596_v5  ;;  %vm628_vm4 = vcmp.ge.f32.partialorder %v596_v5, 0.0  ;;  %v651_v17 = vmul.f32 0.2, %v587_v12  ;;  %vm619_vm5 = vcmp.ge.f32.partialorder %v587_v12, 0.0 }
 0x162   :  { %v512_v18 = vpop.permute.xlu1 %511  ;;  %v1220_v21 = vsel %vm751_vm3, %v1140_v14, 0.0  ;;  %v516_v26 = vpop.permute.xlu0 %515  ;;  %v1172_v27 = vsel %vm751_vm3, %v1124_v15, 0.0  ;;  %v776_v40 = vsel %vm751_vm3, %v727_v28, 0.0  ;;  %v824_v49 = vsel %vm751_vm3, %v743_v37, 0.0 }
 0x163   :  { %v597_v22 = vadd.f32 %v512_v18, %v6406_v19  ;;  %1221 = vadd.xlane.f32.xlu0 %v1220_v21  ;;  %v599_v30 = vadd.f32 %v516_v26, %v6406_v19  ;;  %1173 = vadd.xlane.f32.xlu1 %v1172_v27  ;;  %v683_v31 = vsel %vm619_vm5, %v587_v12, %v651_v17 }
 0x164   :  { %v6545_v32 = vsel %vm628_vm4, %v596_v5, %v660_v13  ;;  %v1116_v34 = vmul.f32 %v6530_v0, %v683_v31  ;;  %v719_v21 = vmul.f32 %v6535_v11, %v683_v31 }
 0x165   :  { %v661_v33 = vmul.f32 0.2, %v597_v22  ;;  %vm629_vm6 = vcmp.ge.f32.partialorder %v597_v22, 0.0  ;;  %v663_v35 = vmul.f32 0.2, %v599_v30  ;;  %vm631_vm7 = vcmp.ge.f32.partialorder %v599_v30, 0.0 }
 0x166   :  { %v524_v36 = vpop.permute.xlu1 %523  ;;  %v542_v39 = vpop.permute.xlu0 %541  ;;  %v1148_v41 = vsel %vm751_vm3, %v1116_v34, 0.0  ;;  %v1125_v42 = vmul.f32 %v6530_v0, %v6545_v32 }
 0x167   :  { %v603_v38 = vadd.f32 %v524_v36, %v6416_v25  ;;  %v612_v43 = vadd.f32 %v542_v39, %v6408_v20  ;;  %777 = vadd.xlane.f32.xlu1 %v776_v40  ;;  %1149 = vadd.xlane.f32.xlu0 %v1148_v41  ;;  %v695_v44 = vsel %vm631_vm7, %v599_v30, %v663_v35 }
 0x168   :  { %v6555_v45 = vsel %vm629_vm6, %v597_v22, %v661_v33  ;;  %v1175_v52 = vsel %vm751_vm3, %v1125_v42, 0.0  ;;  %v1128_v53 = vmul.f32 %v6530_v0, %v695_v44  ;;  %v731_v18 = vmul.f32 %v6535_v11, %v695_v44 }
 0x169   :  { %v667_v46 = vmul.f32 0.2, %v603_v38  ;;  %vm635_vm8 = vcmp.ge.f32.partialorder %v603_v38, 0.0  ;;  %v676_v47 = vmul.f32 0.2, %v612_v43  ;;  %vm644_vm9 = vcmp.ge.f32.partialorder %v612_v43, 0.0 }
 0x16a   :  { %v544_v48 = vpop.permute.xlu1 %543  ;;  %v548_v51 = vpop.permute.xlu0 %547  ;;  %v1126_v54 = vmul.f32 %v6530_v0, %v6555_v45  ;;  %v1184_v61 = vsel %vm751_vm3, %v1128_v53, 0.0  ;;  %v788_v30 = vsel %vm751_vm3, %v731_v18, 0.0  ;;  %v752_v33 = vsel %vm751_vm3, %v719_v21, 0.0 }
 0x16b   :  { %v613_v50 = vadd.f32 %v544_v48, %v6408_v20  ;;  %v615_v55 = vadd.f32 %v548_v51, %v6408_v20  ;;  %825 = vadd.xlane.f32.xlu1 %v824_v49  ;;  %1176 = vadd.xlane.f32.xlu0 %v1175_v52  ;;  %v6564_v56 = vsel %vm644_vm9, %v612_v43, %v676_v47 }
 0x16c   :  { %v699_v57 = vsel %vm635_vm8, %v603_v38, %v667_v46  ;;  %v1178_v62 = vsel %vm751_vm3, %v1126_v54, 0.0  ;;  %v1141_v63 = vmul.f32 %v6530_v0, %v6564_v56  ;;  %v728_v35 = vmul.f32 %v6535_v11, %v6545_v32 }
 0x16d   :  { %v677_v58 = vmul.f32 0.2, %v613_v50  ;;  %vm645_vm10 = vcmp.ge.f32.partialorder %v613_v50, 0.0  ;;  %v679_v59 = vmul.f32 0.2, %v615_v55  ;;  %vm647_vm11 = vcmp.ge.f32.partialorder %v615_v55, 0.0 }
 0x16e   :  { %v494_v60 = vpop.permute.xlu0 %493  ;;  %v1132_v1 = vmul.f32 %v6530_v0, %v699_v57  ;;  %v1223_v5 = vsel %vm751_vm3, %v1141_v63, 0.0  ;;  %v496_v14 = vpop.permute.xlu1 %495  ;;  %v779_v39 = vsel %vm751_vm3, %v728_v35, 0.0  ;;  %v729_v41 = vmul.f32 %v6535_v11, %v6555_v45 }
 0x16f   :  { %1185 = vadd.xlane.f32.xlu1 %v1184_v61  ;;  %1179 = vadd.xlane.f32.xlu0 %v1178_v62  ;;  %v711_v2 = vsel %vm647_vm11, %v615_v55, %v679_v59  ;;  %v6571_v3 = vsel %vm645_vm10, %v613_v50, %v677_v58  ;;  %v588_v6 = vadd.f32 %v494_v60, %v6414_v24 }
 0x170   :  { %v1196_v7 = vsel %vm751_vm3, %v1132_v1, 0.0  ;;  %v1144_v10 = vmul.f32 %v6530_v0, %v711_v2  ;;  %v1142_v12 = vmul.f32 %v6530_v0, %v6571_v3  ;;  %v747_v34 = vmul.f32 %v6535_v11, %v711_v2 }
 0x171   :  { %v652_v22 = vmul.f32 0.2, %v588_v6  ;;  %vm620_vm12 = vcmp.ge.f32.partialorder %v588_v6, 0.0  ;;  %v782_v48 = vsel %vm751_vm3, %v729_v41, 0.0  ;;  %v735_v50 = vmul.f32 %v6535_v11, %v699_v57 }
 0x172   :  { %v500_v4 = vpop.permute.xlu0 %499  ;;  %v1232_v15 = vsel %vm751_vm3, %v1144_v10, 0.0  ;;  %v1226_v17 = vsel %vm751_vm3, %v1142_v12, 0.0  ;;  %v514_v27 = vpop.permute.xlu1 %513  ;;  %v836_v38 = vsel %vm751_vm3, %v747_v34, 0.0  ;;  %v589_v45 = vadd.f32 %v496_v14, %v6414_v24 }
 0x173   :  { %1224 = vadd.xlane.f32.xlu1 %v1223_v5  ;;  %1197 = vadd.xlane.f32.xlu0 %v1196_v7  ;;  %v591_v26 = vadd.f32 %v500_v4, %v6414_v24  ;;  %v6590_v37 = vsel %vm620_vm12, %v588_v6, %v652_v22  ;;  %v800_v58 = vsel %vm751_vm3, %v735_v50, 0.0  ;;  %v744_v57 = vmul.f32 %v6535_v11, %v6564_v56 }
 0x174   :  { %v1117_v40 = vmul.f32 %v6530_v0, %v6590_v37  ;;  %v653_v60 = vmul.f32 0.2, %v589_v45  ;;  %v598_v61 = vadd.f32 %v514_v27, %v6406_v19  ;;  %vm621_vm2 = vcmp.ge.f32.partialorder %v589_v45, 0.0 }
 0x175   :  { %v655_v36 = vmul.f32 0.2, %v591_v26  ;;  %vm623_vm13 = vcmp.ge.f32.partialorder %v591_v26, 0.0  ;;  %v827_v4 = vsel %vm751_vm3, %v744_v57, 0.0  ;;  %v745_v56 = vmul.f32 %v6535_v11, %v6571_v3 }
 0x176   :  { %v526_v13 = vpop.permute.xlu0 %525  ;;  %v518_v44 = vpop.permute.xlu1 %517  ;;  %v1151_v47 = vsel %vm751_vm3, %v1117_v40, 0.0  ;;  %v662_v7 = vmul.f32 0.2, %v598_v61  ;;  %v685_v6 = vsel %vm621_vm2, %v589_v45, %v653_v60  ;;  %vm630_vm4 = vcmp.ge.f32.partialorder %v598_v61, 0.0 }
 0x177   :  { %1233 = vadd.xlane.f32.xlu1 %v1232_v15  ;;  %1227 = vadd.xlane.f32.xlu0 %v1226_v17  ;;  %v604_v31 = vadd.f32 %v526_v13, %v6416_v25  ;;  %v6599_v43 = vsel %vm623_vm13, %v591_v26, %v655_v36  ;;  %v600_v10 = vadd.f32 %v518_v44, %v6406_v19  ;;  %v830_v17 = vsel %vm751_vm3, %v745_v56, 0.0 }
 0x178   :  { %v1120_v49 = vmul.f32 %v6530_v0, %v6599_v43  ;;  %v1118_v3 = vmul.f32 %v6530_v0, %v685_v6  ;;  %v6634_v26 = vsel %vm630_vm4, %v598_v61, %v662_v7 }
 0x179   :  { %v668_v42 = vmul.f32 0.2, %v604_v31  ;;  %vm636_vm14 = vcmp.ge.f32.partialorder %v604_v31, 0.0  ;;  %v664_v21 = vmul.f32 0.2, %v600_v10  ;;  %vm632_vm5 = vcmp.ge.f32.partialorder %v600_v10, 0.0 }
 0x17a   :  { %v528_v28 = vpop.permute.xlu0 %527  ;;  %v520_v54 = vpop.permute.xlu1 %519  ;;  %v1160_v55 = vsel %vm751_vm3, %v1120_v49, 0.0  ;;  %v1127_v34 = vmul.f32 %v6530_v0, %v6634_v26 }
 0x17b   :  { %789 = vadd.xlane.f32.xlu1 %v788_v30  ;;  %753 = vadd.xlane.f32.xlu0 %v752_v33  ;;  %v605_v32 = vadd.f32 %v528_v28, %v6416_v25  ;;  %v6608_v53 = vsel %vm636_vm14, %v604_v31, %v668_v42  ;;  %v601_v22 = vadd.f32 %v520_v54, %v6406_v19  ;;  %v1154_v30 = vsel %vm751_vm3, %v1118_v3, 0.0 }
 0x17c   :  { %v1133_v59 = vmul.f32 %v6530_v0, %v6608_v53  ;;  %v720_v33 = vmul.f32 %v6535_v11, %v6590_v37  ;;  %v696_v31 = vsel %vm632_vm5, %v600_v10, %v664_v21  ;;  %v1181_v41 = vsel %vm751_vm3, %v1127_v34, 0.0 }
 0x17d   :  { %v669_v51 = vmul.f32 0.2, %v605_v32  ;;  %vm637_vm15 = vcmp.ge.f32.partialorder %v605_v32, 0.0  ;;  %v665_v35 = vmul.f32 0.2, %v601_v22  ;;  %vm633_vm6 = vcmp.ge.f32.partialorder %v601_v22, 0.0 }
 0x17e   :  { %v546_v46 = vpop.permute.xlu0 %545  ;;  %v1199_v2 = vsel %vm751_vm3, %v1133_v59, 0.0  ;;  %v532_v14 = vpop.permute.xlu1 %531  ;;  %v755_v40 = vsel %vm751_vm3, %v720_v33, 0.0  ;;  %v1129_v37 = vmul.f32 %v6530_v0, %v696_v31  ;;  %v736_v49 = vmul.f32 %v6535_v11, %v6608_v53 }
 0x17f   :  { %837 = vadd.xlane.f32.xlu1 %v836_v38  ;;  %780 = vadd.xlane.f32.xlu0 %v779_v39  ;;  %v614_v52 = vadd.f32 %v546_v46, %v6408_v20  ;;  %v6617_v63 = vsel %vm637_vm15, %v605_v32, %v669_v51  ;;  %v607_v36 = vadd.f32 %v532_v14, %v6416_v25 }
 0x180   :  { %v1134_v5 = vmul.f32 %v6530_v0, %v6617_v63  ;;  %v723_v39 = vmul.f32 %v6535_v11, %v6599_v43  ;;  %v6650_v32 = vsel %vm633_vm6, %v601_v22, %v665_v35  ;;  %v1187_v43 = vsel %vm751_vm3, %v1129_v37, 0.0 }
 0x181   :  { %v678_v62 = vmul.f32 0.2, %v614_v52  ;;  %vm646_vm1 = vcmp.ge.f32.partialorder %v614_v52, 0.0  ;;  %v671_v42 = vmul.f32 0.2, %v607_v36  ;;  %vm639_vm7 = vcmp.ge.f32.partialorder %v607_v36, 0.0 }
 0x182   :  { %v550_v1 = vpop.permute.xlu0 %549  ;;  %v1202_v15 = vsel %vm751_vm3, %v1134_v5, 0.0  ;;  %v6636_v27 = vpop.permute.xlu1 %497  ;;  %v764_v46 = vsel %vm751_vm3, %v723_v39, 0.0  ;;  %v1130_v50 = vmul.f32 %v6530_v0, %v6650_v32  ;;  %vm1013_vm6 = vcmask 1041409  }
 0x183   :  { %1152 = vadd.xlane.f32.xlu1 %v1151_v47  ;;  %783 = vadd.xlane.f32.xlu0 %v782_v48  ;;  %v6626_v12 = vsel %vm646_vm1, %v614_v52, %v678_v62  ;;  %v616_v47 = vadd.f32 %v550_v1, %v6408_v20  ;;  %v6662_v51 = vsel %vm639_vm7, %v607_v36, %v671_v42  ;;  %vm1015_vm7 = vcmask 1042434  }
 0x184   :  { %v1143_v18 = vmul.f32 %v6530_v0, %v6626_v12  ;;  %v732_v52 = vmul.f32 %v6535_v11, %v696_v31  ;;  %v1190_v59 = vsel %vm751_vm3, %v1130_v50, 0.0  ;;  %v1136_v53 = vmul.f32 %v6530_v0, %v6662_v51 }
 0x185   :  { %v680_v54 = vmul.f32 0.2, %v616_v47  ;;  %vm648_vm8 = vcmp.ge.f32.partialorder %v616_v47, 0.0  ;;  %v721_v1 = vmul.f32 %v6535_v11, %v685_v6  ;;  %v746_v5 = vmul.f32 %v6535_v11, %v6626_v12 }
 0x186   :  { %v552_v13 = vpop.permute.xlu0 %551  ;;  %v1229_v28 = vsel %vm751_vm3, %v1143_v18, 0.0  ;;  %v6652_v44 = vpop.permute.xlu1 %501  ;;  %v590_v36 = vadd.f32 %v6636_v27, %v6414_v24  ;;  %v730_v42 = vmul.f32 %v6535_v11, %v6634_v26  ;;  %v737_v50 = vmul.f32 %v6535_v11, %v6617_v63 }
 0x187   :  { %1161 = vadd.xlane.f32.xlu1 %v1160_v55  ;;  %801 = vadd.xlane.f32.xlu0 %v800_v58  ;;  %v803_v58 = vsel %vm751_vm3, %v736_v49, 0.0  ;;  %v617_v57 = vadd.f32 %v552_v13, %v6408_v20  ;;  %v6678_v56 = vsel %vm648_vm8, %v616_v47, %v680_v54  ;;  %v833_v6 = vsel %vm751_vm3, %v746_v5, 0.0 }
 0x188   :  { %v1145_v18 = vmul.f32 %v6530_v0, %v6678_v56  ;;  %vm622_vm14 = vcmp.ge.f32.partialorder %v590_v36, 0.0  ;;  %v806_v54 = vsel %vm751_vm3, %v737_v50, 0.0  ;;  %vm1017_vm8 = vcmask 1043459  }
 0x189   :  { %v681_v7 = vmul.f32 0.2, %v617_v57  ;;  %vm649_vm11 = vcmp.ge.f32.partialorder %v617_v57, 0.0 }
 0x18a   :  { %v504_v38 = vpop.permute.xlu0 %503  ;;  %v6665_v55 = vpop.permute.xlu1 %533  ;;  %v1235_v33 = vsel %vm751_vm3, %v1145_v18, 0.0 }
 0x18b   :  { %1200 = vadd.xlane.f32.xlu1 %v1199_v2  ;;  %828 = vadd.xlane.f32.xlu0 %v827_v4  ;;  %v593_v45 = vadd.f32 %v504_v38, %v6414_v24  ;;  %v791_v2 = vsel %vm751_vm3, %v732_v52, 0.0  ;;  %v1208_v4 = vsel %vm751_vm3, %v1136_v53, 0.0  ;;  %v592_v53 = vadd.f32 %v6652_v44, %v6414_v24 }
 0x18d   :  { %v657_v60 = vmul.f32 0.2, %v593_v45  ;;  %vm625_vm9 = vcmp.ge.f32.partialorder %v593_v45, 0.0  ;;  %vm624_vm1 = vcmp.ge.f32.partialorder %v592_v53, 0.0 }
 0x18e   :  { %v530_v48 = vpop.permute.xlu0 %529 }
 0x18f   :  { %1203 = vadd.xlane.f32.xlu1 %v1202_v15  ;;  %831 = vadd.xlane.f32.xlu0 %v830_v17  ;;  %v606_v61 = vadd.f32 %v530_v48, %v6416_v25  ;;  %v6681_v13 = vsel %vm625_vm9, %v593_v45, %v657_v60  ;;  %v536_v15 = vpop.permute.xlu1 %535  ;;  %v758_v17 = vsel %vm751_vm3, %v721_v1, 0.0  ;;  %v739_v1 = vmul.f32 %v6535_v11, %v6662_v51 }
 0x190   :  { %v1122_v12 = vmul.f32 %v6530_v0, %v6681_v13  ;;  %v609_v3 = vadd.f32 %v536_v15, %v6416_v25  ;;  %vm1021_vm9 = vcmask 1045509  }
 0x191   :  { %v670_v10 = vmul.f32 0.2, %v606_v61  ;;  %vm638_vm10 = vcmp.ge.f32.partialorder %v606_v61, 0.0  ;;  %v812_v5 = vsel %vm751_vm3, %v739_v1, 0.0 }
 0x192   :  { %v522_v62 = vpop.permute.xlu0 %521  ;;  %v673_v31 = vmul.f32 0.2, %v609_v3  ;;  %vm641_vm13 = vcmp.ge.f32.partialorder %v609_v3, 0.0 }
 0x193   :  { %1230 = vadd.xlane.f32.xlu1 %v1229_v28  ;;  %1155 = vadd.xlane.f32.xlu0 %v1154_v30  ;;  %v602_v14 = vadd.f32 %v522_v62, %v6406_v19  ;;  %v702_v22 = vsel %vm638_vm10, %v606_v61, %v670_v10  ;;  %v6690_v28 = vsel %vm649_vm11, %v617_v57, %v681_v7  ;;  %v1166_v30 = vsel %vm751_vm3, %v1122_v12, 0.0  ;;  %v554_v39 = vpop.permute.xlu1 %553 }
 0x194   :  { %v1135_v34 = vmul.f32 %v6530_v0, %v702_v22  ;;  %v1146_v35 = vmul.f32 %v6530_v0, %v6690_v28  ;;  %v618_v47 = vadd.f32 %v554_v39, %v6408_v20  ;;  %v6705_v27 = vsel %vm641_vm13, %v609_v3, %v673_v31 }
 0x195   :  { %v666_v21 = vmul.f32 0.2, %v602_v14  ;;  %vm634_vm12 = vcmp.ge.f32.partialorder %v602_v14, 0.0  ;;  %v1138_v49 = vmul.f32 %v6530_v0, %v6705_v27  ;;  %v738_v7 = vmul.f32 %v6535_v11, %v702_v22 }
 0x196   :  { %v682_v45 = vmul.f32 0.2, %v618_v47  ;;  %vm650_vm15 = vcmp.ge.f32.partialorder %v618_v47, 0.0  ;;  %v506_v57 = vpop.permute.xlu0 %505  ;;  %vm1019_vm10 = vcmask 1044484   ;;  %vm1023_vm11 = vcmask 1046534  }
 0x197   :  { %756 = vadd.xlane.f32.xlu1 %v755_v40  ;;  %1182 = vadd.xlane.f32.xlu0 %v1181_v41  ;;  %v698_v38 = vsel %vm634_vm12, %v602_v14, %v666_v21  ;;  %v1205_v40 = vsel %vm751_vm3, %v1135_v34, 0.0  ;;  %v1238_v41 = vsel %vm751_vm3, %v1146_v35, 0.0  ;;  %v1214_v52 = vsel %vm751_vm3, %v1138_v49, 0.0 }
 0x198   :  { %v1131_v37 = vmul.f32 %v6530_v0, %v698_v38  ;;  %v6720_v63 = vsel %vm650_vm15, %v618_v47, %v682_v45  ;;  %v594_v44 = vadd.f32 %v506_v57, %v6414_v24  ;;  %v734_v12 = vmul.f32 %v6535_v11, %v698_v38 }
 0x199   :  { %v1147_v62 = vmul.f32 %v6530_v0, %v6720_v63  ;;  %vm1025_vm12 = vcmask 1047559   ;;  %vm5348_vm15 = vcmask 0  }
 0x19a   :  { %v1193_v48 = vsel %vm751_vm3, %v1131_v37, 0.0  ;;  %v658_v15 = vmul.f32 0.2, %v594_v44  ;;  %vm626_vm4 = vcmp.ge.f32.partialorder %v594_v44, 0.0 }
 0x19b   :  { %765 = vadd.xlane.f32.xlu1 %v764_v46  ;;  %1188 = vadd.xlane.f32.xlu0 %v1187_v43  ;;  %v654_v46 = vmul.f32 0.2, %v590_v36  ;;  %v785_v43 = vsel %vm751_vm3, %v730_v42, 0.0 }
 0x19c   :  { %v690_v22 = vsel %vm626_vm4, %v594_v44, %v658_v15 }
 0x19d   :  { %v686_v26 = vsel %vm622_vm14, %v590_v36, %v654_v46  ;;  %v1123_v35 = vmul.f32 %v6530_v0, %v690_v22  ;;  %v725_v46 = vmul.f32 %v6535_v11, %v6681_v13  ;;  %v726_v49 = vmul.f32 %v6535_v11, %v690_v22 }
 0x19e   :  { %v1119_v10 = vmul.f32 %v6530_v0, %v686_v26  ;;  %v741_v13 = vmul.f32 %v6535_v11, %v6705_v27  ;;  %vm6367_vm14 = vmmov 0  }
 0x19f   :  { %804 = vadd.xlane.f32.xlu1 %v803_v58  ;;  %1191 = vadd.xlane.f32.xlu0 %v1190_v59  ;;  %v722_v58 = vmul.f32 %v6535_v11, %v686_v26  ;;  %v733_v59 = vmul.f32 %v6535_v11, %v6650_v32  ;;  %v608_v32 = vadd.f32 %v6665_v55, %v6416_v25  ;;  %v809_v55 = vsel %vm751_vm3, %v738_v7, 0.0 }
 0x1a0   :  { %v1169_v38 = vsel %vm751_vm3, %v1123_v35, 0.0  ;;  %v773_v45 = vsel %vm751_vm3, %v726_v49, 0.0  ;;  %v818_v26 = vsel %vm751_vm3, %v741_v13, 0.0  ;;  %5625 = vmatprep.mubr.msk.f32.mxu1 %vm6367_vm14, %v6364_v8  ;;  %5635 = vmatprep.mubr.msk.f32.mxu0 %vm6367_vm14, %v6364_v8 }
 0x1a1   :  { %v761_v60 = vsel %vm751_vm3, %v722_v58, 0.0  ;;  %v794_v61 = vsel %vm751_vm3, %v733_v59, 0.0  ;;  %v672_v14 = vmul.f32 0.2, %v608_v32  ;;  %vm640_vm2 = vcmp.ge.f32.partialorder %v608_v32, 0.0 }
 0x1a2   :  { %v750_v59 = vmul.f32 %v6535_v11, %v6720_v63 }
 0x1a3   :  { %792 = vadd.xlane.f32.xlu1 %v791_v2  ;;  %1209 = vadd.xlane.f32.xlu0 %v1208_v4  ;;  %v656_v2 = vmul.f32 0.2, %v592_v53  ;;  %v1241_v4 = vsel %vm751_vm3, %v1147_v62, 0.0  ;;  %v704_v21 = vsel %vm640_vm2, %v608_v32, %v672_v14 }
 0x1a4   :  { %v1137_v34 = vmul.f32 %v6530_v0, %v704_v21  ;;  %v845_v27 = vsel %vm751_vm3, %v750_v59, 0.0 }
 0x1a5   :  { %v688_v51 = vsel %vm624_vm1, %v592_v53, %v656_v2 }
 0x1a6   :  { %v1121_v18 = vmul.f32 %v6530_v0, %v688_v51  ;;  %v1211_v31 = vsel %vm751_vm3, %v1137_v34, 0.0  ;;  %v724_v39 = vmul.f32 %v6535_v11, %v688_v51 }
 0x1a7   :  { %834 = vadd.xlane.f32.xlu1 %v833_v6  ;;  %759 = vadd.xlane.f32.xlu0 %v758_v17  ;;  %v538_v6 = vpop.permute.xlu1 %537  ;;  %v1157_v17 = vsel %vm751_vm3, %v1119_v10, 0.0 }
 0x1a8   :  { %v610_v3 = vadd.f32 %v538_v6, %v6416_v25  ;;  %v767_v37 = vsel %vm751_vm3, %v724_v39, 0.0 }
 0x1aa   :  { %v674_v36 = vmul.f32 0.2, %v610_v3  ;;  %vm642_vm5 = vcmp.ge.f32.partialorder %v610_v3, 0.0 }
 0x1ab   :  { %1167 = vadd.xlane.f32.xlu1 %v1166_v30  ;;  %1236 = vadd.xlane.f32.xlu0 %v1235_v33  ;;  %v797_v30 = vsel %vm751_vm3, %v734_v12, 0.0  ;;  %v1163_v33 = vsel %vm751_vm3, %v1121_v18, 0.0 }
 0x1af   :  { %1206 = vadd.xlane.f32.xlu1 %v1205_v40  ;;  %1239 = vadd.xlane.f32.xlu0 %v1238_v41  ;;  %v748_v40 = vmul.f32 %v6535_v11, %v6678_v56  ;;  %v706_v41 = vsel %vm642_vm5, %v610_v3, %v674_v36  ;;  %v740_v56 = vmul.f32 %v6535_v11, %v704_v21 }
 0x1b0   :  { %v1139_v47 = vmul.f32 %v6530_v0, %v706_v41  ;;  %v749_v0 = vmul.f32 %v6535_v11, %v6690_v28 }
 0x1b1   :  { %v839_v42 = vsel %vm751_vm3, %v748_v40, 0.0  ;;  %v815_v50 = vsel %vm751_vm3, %v740_v56, 0.0 }
 0x1b3   :  { %1194 = vadd.xlane.f32.xlu1 %v1193_v48  ;;  %786 = vadd.xlane.f32.xlu0 %v785_v43  ;;  %v770_v48 = vsel %vm751_vm3, %v725_v46, 0.0  ;;  %v1217_v43 = vsel %vm751_vm3, %v1139_v47, 0.0 }
 0x1b7   :  { %1215 = vadd.xlane.f32.xlu1 %v1214_v52  ;;  %807 = vadd.xlane.f32.xlu0 %v806_v54  ;;  %v842_v52 = vsel %vm751_vm3, %v749_v0, 0.0  ;;  %v742_v54 = vmul.f32 %v6535_v11, %v706_v41 }
 0x1b9   :  { %v821_v58 = vsel %vm751_vm3, %v742_v54, 0.0 }
 0x1bb   :  { %762 = vadd.xlane.f32.xlu1 %v761_v60  ;;  %795 = vadd.xlane.f32.xlu0 %v794_v61 }
 0x1bf   :  { %1242 = vadd.xlane.f32.xlu1 %v1241_v4  ;;  %813 = vadd.xlane.f32.xlu0 %v812_v5 }
 0x1c3   :  { %810 = vadd.xlane.f32.xlu1 %v809_v55  ;;  %1158 = vadd.xlane.f32.xlu0 %v1157_v17 }
 0x1c7   :  { %798 = vadd.xlane.f32.xlu1 %v797_v30  ;;  %1164 = vadd.xlane.f32.xlu0 %v1163_v33 }
 0x1cb   :  { %1212 = vadd.xlane.f32.xlu0 %v1211_v31  ;;  %1170 = vadd.xlane.f32.xlu1 %v1169_v38 }
 0x1cf   :  { %768 = vadd.xlane.f32.xlu0 %v767_v37  ;;  %840 = vadd.xlane.f32.xlu1 %v839_v42 }
 0x1d3   :  { %771 = vadd.xlane.f32.xlu0 %v770_v48  ;;  %1218 = vadd.xlane.f32.xlu1 %v1217_v43 }
 0x1d7   :  { %816 = vadd.xlane.f32.xlu0 %v815_v50  ;;  %774 = vadd.xlane.f32.xlu1 %v773_v45 }
 0x1db   :  { %819 = vadd.xlane.f32.xlu0 %v818_v26  ;;  %843 = vadd.xlane.f32.xlu1 %v842_v52  ;;  %v6841_v52 = vld [vmem:[#allocation4 + $0x88] sm:$0xff] }
 0x1dc   :  { %vm848_vm13 = vcmp.gt.f32.partialorder %v6841_v52, 0.0 }
 0x1df   :  { %822 = vadd.xlane.f32.xlu0 %v821_v58 }
 0x1e3   :  { %846 = vadd.xlane.f32.xlu0 %v845_v27 }
 0x1ec   :  { %v6771_v28 = vpop.xlane.xlu0 %1221  ;;  %v1174_v53 = vpop.xlane.xlu1 %1173 }
 0x1ed   :  { %v1311_v47 = vrot.slane %v1174_v53, %v6400_v9 }
 0x1f0   :  { %v6773_v57 = vpop.xlane.xlu1 %777  ;;  %v6775_v60 = vpop.xlane.xlu0 %1149 }
 0x1f4   :  { %v6777_v61 = vpop.xlane.xlu1 %825  ;;  %v1177_v62 = vpop.xlane.xlu0 %1176 }
 0x1f5   :  { %v1315_v41 = vrot.slane %v1177_v62, %v6400_v9 }
 0x1f7   :  { %v1411_v43 = vsel %vm1013_vm6, %v1315_v41, %v1311_v47 }
 0x1f8   :  { %v1186_v1 = vpop.xlane.xlu1 %1185  ;;  %v1180_v2 = vpop.xlane.xlu0 %1179 }
 0x1f9   :  { %v1319_v37 = vrot.slane %v1180_v2, %v6400_v9  ;;  %v1327_v0 = vrot.slane %v1186_v1, %v6400_v9 }
 0x1fb   :  { %v1412_v56 = vsel %vm1015_vm7, %v1319_v37, %v1411_v43  ;;  %v1375_v37 = vrot.slane %v6771_v28, %v6400_v9 }
 0x1fc   :  { %v6779_v32 = vpop.xlane.xlu1 %1224  ;;  %v6781_v44 = vpop.xlane.xlu0 %1197 }
 0x1fd   :  { %v1379_v1 = vrot.slane %v6779_v32, %v6400_v9 }
 0x200   :  { %v6783_v11 = vpop.xlane.xlu1 %1233  ;;  %v6785_v63 = vpop.xlane.xlu0 %1227 }
 0x204   :  { %v6787_v4 = vpop.xlane.xlu1 %789  ;;  %v6789_v5 = vpop.xlane.xlu0 %753 }
 0x208   :  { %v6791_v7 = vpop.xlane.xlu1 %837  ;;  %v6793_v10 = vpop.xlane.xlu0 %780 }
 0x20c   :  { %v6795_v14 = vpop.xlane.xlu1 %1152  ;;  %v6797_v15 = vpop.xlane.xlu0 %783 }
 0x210   :  { %v6799_v51 = vpop.xlane.xlu1 %1161  ;;  %v6801_v6 = vpop.xlane.xlu0 %801 }
 0x214   :  { %v6803_v55 = vpop.xlane.xlu1 %1200  ;;  %v6805_v17 = vpop.xlane.xlu0 %828 }
 0x218   :  { %v6807_v12 = vpop.xlane.xlu1 %1203  ;;  %v6809_v18 = vpop.xlane.xlu0 %831 }
 0x21c   :  { %v1231_v3 = vpop.xlane.xlu1 %1230  ;;  %v6811_v21 = vpop.xlane.xlu0 %1155 }
 0x21d   :  { %v1387_v47 = vrot.slane %v1231_v3, %v6400_v9  ;;  %v1391_v3 = vrot.slane %v6783_v11, %v6400_v9  ;;  %v1283_v11 = vrot.slane %v6795_v14, %v6400_v9  ;;  %v936_v14 = vrot.slane %v6787_v4, %v6400_v9 }
 0x220   :  { %v6813_v22 = vpop.xlane.xlu1 %756  ;;  %v1183_v30 = vpop.xlane.xlu0 %1182 }
 0x221   :  { %v1323_v48 = vrot.slane %v1183_v30, %v6400_v9  ;;  %v1383_v30 = vrot.slane %v6785_v63, %v6400_v9 }
 0x223   :  { %v1413_v45 = vsel %vm1017_vm8, %v1323_v48, %v1412_v56  ;;  %v1425_v48 = vsel %vm1013_vm6, %v1379_v1, %v1375_v37  ;;  %v1279_v1 = vrot.slane %v6775_v60, %v6400_v9 }
 0x224   :  { %v6815_v33 = vpop.xlane.xlu1 %765  ;;  %v1189_v34 = vpop.xlane.xlu0 %1188  ;;  %v1414_v54 = vsel %vm1019_vm10, %v1327_v0, %v1413_v45  ;;  %v1426_v63 = vsel %vm1015_vm7, %v1383_v30, %v1425_v48  ;;  %v924_v45 = vrot.slane %v6793_v10, %v6400_v9  ;;  %v928_v0 = vrot.slane %v6797_v15, %v6400_v9 }
 0x225   :  { %v1331_v13 = vrot.slane %v1189_v34, %v6400_v9 }
 0x227   :  { %v1415_v27 = vsel %vm1021_vm9, %v1331_v13, %v1414_v54  ;;  %v1427_v13 = vsel %vm1017_vm8, %v1387_v47, %v1426_v63  ;;  %v920_v54 = vrot.slane %v6773_v57, %v6400_v9  ;;  %v1287_v57 = vrot.slane %v6811_v21, %v6400_v9 }
 0x228   :  { %v6817_v35 = vpop.xlane.xlu1 %804  ;;  %v1192_v36 = vpop.xlane.xlu0 %1191  ;;  %v1404_v21 = vsel %vm1013_vm6, %v1283_v11, %v1279_v1 }
 0x229   :  { %v1335_v26 = vrot.slane %v1192_v36, %v6400_v9  ;;  %v1405_v63 = vsel %vm1015_vm7, %v1287_v57, %v1404_v21 }
 0x22b   :  { %v1416_v62 = vsel %vm1023_vm11, %v1335_v26, %v1415_v27  ;;  %v1428_v27 = vsel %vm1019_vm10, %v1391_v3, %v1427_v13  ;;  %v1295_v3 = vrot.slane %v6799_v51, %v6400_v9  ;;  %v1343_v51 = vrot.slane %v6781_v44, %v6400_v9 }
 0x22c   :  { %v6819_v31 = vpop.xlane.xlu1 %792  ;;  %v6821_v38 = vpop.xlane.xlu0 %1209 }
 0x22d   :  { %v940_v13 = vrot.slane %v6819_v31, %v6400_v9  ;;  %v1359_v21 = vrot.slane %v6821_v38, %v6400_v9 }
 0x230   :  { %v6823_v39 = vpop.xlane.xlu1 %834  ;;  %v6825_v40 = vpop.xlane.xlu0 %759 }
 0x234   :  { %v6829_v42 = vpop.xlane.xlu1 %1167  ;;  %v1237_v46 = vpop.xlane.xlu0 %1236 }
 0x235   :  { %v1395_v28 = vrot.slane %v1237_v46, %v6400_v9  ;;  %v1027_v46 = vsel %vm1013_vm6, %v924_v45, %v920_v54  ;;  %v1347_v54 = vrot.slane %v6803_v55, %v6400_v9 }
 0x238   :  { %v6835_v49 = vpop.xlane.xlu1 %1206  ;;  %v1240_v50 = vpop.xlane.xlu0 %1239 }
 0x239   :  { %v1399_v26 = vrot.slane %v1240_v50, %v6400_v9  ;;  %v1028_v50 = vsel %vm1015_vm7, %v928_v0, %v1027_v46  ;;  %v1355_v11 = vrot.slane %v6835_v49, %v6400_v9 }
 0x23c   :  { %v1195_v58 = vpop.xlane.xlu1 %1194  ;;  %v787_v59 = vpop.xlane.xlu0 %786 }
 0x23d   :  { %v1339_v53 = vrot.slane %v1195_v58, %v6400_v9  ;;  %v932_v58 = vrot.slane %v787_v59, %v6400_v9 }
 0x23f   :  { %v1417_v2 = vsel %vm1025_vm12, %v1339_v53, %v1416_v62  ;;  %v1429_v62 = vsel %vm1021_vm9, %v1395_v28, %v1428_v27 }
 0x240   :  { %v6853_v34 = vpop.xlane.xlu1 %1215  ;;  %v6855_v36 = vpop.xlane.xlu0 %807  ;;  %v6859_v41 = vsel %vm848_vm13, %v1417_v2, -1e+30  ;;  %v1430_v59 = vsel %vm1023_vm11, %v1399_v26, %v1429_v62  ;;  %v1029_v2 = vsel %vm1017_vm8, %v932_v58, %v1028_v50 }
 0x241   :  { %v1443_v32 = vsel %vm65_vm0, %v6859_v41, -inf  ;;  %v1030_v45 = vsel %vm1019_vm10, %v936_v14, %v1029_v2 }
 0x242   :  { %1444 = vmax.xlane.f32.xlu0 %v1443_v32 }
 0x244   :  { %v6868_v43 = vpop.xlane.xlu1 %762  ;;  %v796_v56 = vpop.xlane.xlu0 %795 }
 0x245   :  { %v944_v4 = vrot.slane %v796_v56, %v6400_v9  ;;  %v1031_v56 = vsel %vm1021_vm9, %v940_v13, %v1030_v45 }
 0x247   :  { %v1032_v46 = vsel %vm1023_vm11, %v944_v4, %v1031_v56  ;;  %v900_v4 = vrot.slane %v6868_v43, %v6400_v9 }
 0x248   :  { %v1243_v10 = vpop.xlane.xlu1 %1242  ;;  %v6883_v53 = vpop.xlane.xlu0 %813 }
 0x249   :  { %v1403_v15 = vrot.slane %v1243_v10, %v6400_v9  ;;  %v1351_v10 = vrot.slane %v6807_v12, %v6400_v9 }
 0x24b   :  { %v1431_v30 = vsel %vm1025_vm12, %v1403_v15, %v1430_v59  ;;  %v1303_v15 = vrot.slane %v6829_v42, %v6400_v9  ;;  %v1418_v59 = vsel %vm1013_vm6, %v1347_v54, %v1343_v51  ;;  %v892_v42 = vrot.slane %v6813_v22, %v6400_v9 }
 0x24c   :  { %v6900_v37 = vpop.xlane.xlu1 %810  ;;  %v1159_v47 = vpop.xlane.xlu0 %1158  ;;  %v6904_v32 = vsel %vm848_vm13, %v1431_v30, -1e+30  ;;  %v1419_v1 = vsel %vm1015_vm7, %v1351_v10, %v1418_v59  ;;  %v888_v22 = vrot.slane %v6789_v5, %v6400_v9  ;;  %v960_v51 = vrot.slane %v6855_v36, %v6400_v9 }
 0x24d   :  { %v1291_v48 = vrot.slane %v1159_v47, %v6400_v9  ;;  %v1449_v60 = vsel %vm65_vm0, %v6904_v32, -inf  ;;  %v1420_v30 = vsel %vm1017_vm8, %v1355_v11, %v1419_v1 }
 0x24e   :  { %1450 = vmax.xlane.f32.xlu0 %v1449_v60  ;;  %v1421_v38 = vsel %vm1019_vm10, %v1359_v21, %v1420_v30 }
 0x24f   :  { %v1406_v28 = vsel %vm1017_vm8, %v1291_v48, %v1405_v63  ;;  %v896_v48 = vrot.slane %v6825_v40, %v6400_v9  ;;  %v1014_v40 = vsel %vm1013_vm6, %v892_v42, %v888_v22 }
 0x250   :  { %v799_v0 = vpop.xlane.xlu1 %798  ;;  %v1165_v26 = vpop.xlane.xlu0 %1164  ;;  %v1407_v31 = vsel %vm1019_vm10, %v1295_v3, %v1406_v28 }
 0x251   :  { %v948_v58 = vrot.slane %v799_v0, %v6400_v9  ;;  %v1299_v27 = vrot.slane %v1165_v26, %v6400_v9  ;;  %v1016_v3 = vsel %vm1015_vm7, %v896_v48, %v1014_v40  ;;  %v1367_v0 = vrot.slane %v6853_v34, %v6400_v9 }
 0x252   :  { %v1018_v54 = vsel %vm1017_vm8, %v900_v4, %v1016_v3  ;;  %v1000_v40 = vrot.slane %v6791_v7, %v6400_v9 }
 0x253   :  { %v1408_v55 = vsel %vm1021_vm9, %v1299_v27, %v1407_v31  ;;  %v1033_v62 = vsel %vm1025_vm12, %v948_v58, %v1032_v46  ;;  %v904_v27 = vrot.slane %v6815_v33, %v6400_v9  ;;  %v956_v31 = vrot.slane %v6817_v35, %v6400_v9 }
 0x254   :  { %v1171_v50 = vpop.xlane.xlu1 %1170  ;;  %v1213_v57 = vpop.xlane.xlu0 %1212  ;;  %v6937_v12 = vsel %vm848_vm13, %v1033_v62, -1e+30  ;;  %v1409_v2 = vsel %vm1023_vm11, %v1303_v15, %v1408_v55  ;;  %v952_v46 = vrot.slane %v6801_v6, %v6400_v9  ;;  %v964_v15 = vrot.slane %v6900_v37, %v6400_v9 }
 0x255   :  { %v1307_v44 = vrot.slane %v1171_v50, %v6400_v9  ;;  %v1059_v49 = vsel %vm65_vm0, %v6937_v12, -inf  ;;  %v1363_v14 = vrot.slane %v1213_v57, %v6400_v9  ;;  %v1020_v11 = vsel %vm1019_vm10, %v904_v27, %v1018_v54 }
 0x256   :  { %1060 = vmax.xlane.f32.xlu0 %v1059_v49  ;;  %v988_v57 = vrot.slane %v6805_v17, %v6400_v9  ;;  %v1034_v59 = vsel %vm1013_vm6, %v956_v31, %v952_v46  ;;  %v984_v37 = vrot.slane %v6777_v61, %v6400_v9  ;;  %v992_v49 = vrot.slane %v6809_v18, %v6400_v9 }
 0x257   :  { %v1410_v47 = vsel %vm1025_vm12, %v1307_v44, %v1409_v2  ;;  %v1422_v28 = vsel %vm1021_vm9, %v1363_v14, %v1421_v38  ;;  %v1035_v1 = vsel %vm1015_vm7, %v960_v51, %v1034_v59  ;;  %v996_v17 = vrot.slane %v6823_v39, %v6400_v9 }
 0x258   :  { %v6954_v60 = vpop.xlane.xlu1 %840  ;;  %v769_v63 = vpop.xlane.xlu0 %768  ;;  %v6958_v45 = vsel %vm848_vm13, %v1410_v47, -1e+30  ;;  %v1423_v10 = vsel %vm1023_vm11, %v1367_v0, %v1422_v28  ;;  %v1036_v30 = vsel %vm1017_vm8, %v964_v15, %v1035_v1  ;;  %v968_v18 = vrot.slane %v6883_v53, %v6400_v9 }
 0x259   :  { %v1440_v13 = vsel %vm65_vm0, %v6958_v45, -inf  ;;  %v908_v43 = vrot.slane %v769_v63, %v6400_v9  ;;  %v1041_v21 = vsel %vm1013_vm6, %v988_v57, %v984_v37 }
 0x25a   :  { %1441 = vmax.xlane.f32.xlu1 %v1440_v13  ;;  %v1042_v63 = vsel %vm1015_vm7, %v992_v49, %v1041_v21  ;;  %v1037_v39 = vsel %vm1019_vm10, %v968_v18, %v1036_v30  ;;  %v1004_v13 = vrot.slane %v6954_v60, %v6400_v9 }
 0x25b   :  { %v1022_v35 = vsel %vm1021_vm9, %v908_v43, %v1020_v11  ;;  %v1043_v4 = vsel %vm1017_vm8, %v996_v17, %v1042_v63 }
 0x25c   :  { %v1219_v26 = vpop.xlane.xlu1 %1218  ;;  %v772_v5 = vpop.xlane.xlu0 %771 }
 0x25d   :  { %v1371_v58 = vrot.slane %v1219_v26, %v6400_v9  ;;  %v912_v56 = vrot.slane %v772_v5, %v6400_v9  ;;  %v1044_v26 = vsel %vm1019_vm10, %v1000_v40, %v1043_v4 }
 0x25e   :  { %v1045_v60 = vsel %vm1021_vm9, %v1004_v13, %v1044_v26 }
 0x25f   :  { %v1424_v34 = vsel %vm1025_vm12, %v1371_v58, %v1423_v10  ;;  %v1024_v36 = vsel %vm1023_vm11, %v912_v56, %v1022_v35 }
 0x260   :  { %v775_v55 = vpop.xlane.xlu1 %774  ;;  %v817_v62 = vpop.xlane.xlu0 %816  ;;  %v6989_v33 = vsel %vm848_vm13, %v1424_v34, -1e+30 }
 0x261   :  { %v916_v50 = vrot.slane %v775_v55, %v6400_v9  ;;  %v1446_v6 = vsel %vm65_vm0, %v6989_v33, -inf  ;;  %v972_v14 = vrot.slane %v817_v62, %v6400_v9 }
 0x262   :  { %1447 = vmax.xlane.f32.xlu1 %v1446_v6 }
 0x263   :  { %v1026_v44 = vsel %vm1025_vm12, %v916_v50, %v1024_v36  ;;  %v1038_v38 = vsel %vm1021_vm9, %v972_v14, %v1037_v39 }
 0x264   :  { %v820_v2 = vpop.xlane.xlu0 %819  ;;  %v7009_v42 = vsel %vm848_vm13, %v1026_v44, -1e+30  ;;  %v844_v48 = vpop.xlane.xlu1 %843 }
 0x265   :  { %v1056_v61 = vsel %vm65_vm0, %v7009_v42, -inf  ;;  %v976_v47 = vrot.slane %v820_v2, %v6400_v9  ;;  %v1008_v28 = vrot.slane %v844_v48, %v6400_v9 }
 0x266   :  { %1057 = vmax.xlane.f32.xlu1 %v1056_v61 }
 0x267   :  { %v1039_v3 = vsel %vm1023_vm11, %v976_v47, %v1038_v38  ;;  %v1046_v7 = vsel %vm1023_vm11, %v1008_v28, %v1045_v60  ;;  %v7091_v60 = vld [vmem:[#allocation4 + $0x68] sm:$0xff] }
 0x268   :  { %v823_v22 = vpop.xlane.xlu0 %822 }
 0x269   :  { %v980_v53 = vrot.slane %v823_v22, %v6400_v9 }
 0x26b   :  { %v1040_v0 = vsel %vm1025_vm12, %v980_v53, %v1039_v3 }
 0x26c   :  { %v847_v5 = vpop.xlane.xlu0 %846  ;;  %v1054_v54 = vsel %vm848_vm13, %v1040_v0, -1e+30 }
 0x26d   :  { %v1012_v43 = vrot.slane %v847_v5, %v6400_v9  ;;  %v1062_v58 = vsel %vm65_vm0, %v1054_v54, -inf }
 0x26e   :  { %1063 = vmax.xlane.f32.xlu1 %v1062_v58  ;;  %v7105_v58 = vld [vmem:[#allocation4 + $0x50] sm:$0xff] }
 0x26f   :  { %v1047_v27 = vsel %vm1025_vm12, %v1012_v43, %v1046_v7  ;;  %v7093_v43 = vld [vmem:[#allocation4 + $0x60] sm:$0xff] }
 0x270   :  { %v1055_v56 = vsel %vm848_vm13, %v1047_v27, -1e+30 }
 0x271   :  { %v1065_v10 = vsel %vm65_vm0, %v1055_v56, -inf }
 0x272   :  { %1066 = vmax.xlane.f32.xlu0 %v1065_v10 }
 0x2cb   :  { %v1445_v31 = vpop.xlane.xlu0 %1444 }
 0x2cc   :  { %v1453_v34 = vsub.f32 %v6859_v41, %v1445_v31 }
 0x2ce   :  { %v1458_v46 = vmul.f32 1.442695, %v1453_v34 }
 0x2d0   :  { %5953 = vpow2.f32 %v1458_v46 }
 0x2d7   :  { %v1451_v51 = vpop.xlane.xlu0 %1450 }
 0x2d8   :  { %v1455_v9 = vsub.f32 %v6904_v32, %v1451_v51 }
 0x2da   :  { %v1462_v11 = vmul.f32 1.442695, %v1455_v9 }
 0x2dc   :  { %5955 = vpow2.f32 %v1462_v11  ;;  %v1493_v11 = vmul.f32 %v6412_v23, %v6406_v19 }
 0x2dd   :  { %v5954_v55 = vpop.eup %5953 }
 0x2de   :  { %v7047_v62 = vmul.f32 %v5954_v55, %v6841_v52 }
 0x2df   :  { %v1061_v15 = vpop.xlane.xlu0 %1060 }
 0x2e0   :  { %v1069_v35 = vsub.f32 %v6937_v12, %v1061_v15  ;;  %v1471_v50 = vsel %vm65_vm0, %v7047_v62, 0.0 }
 0x2e1   :  { %1472 = vadd.xlane.f32.xlu0 %v1471_v50  ;;  %v1495_v50 = vmul.f32 %v6412_v23, %v6408_v20 }
 0x2e2   :  { %v1074_v6 = vmul.f32 1.442695, %v1069_v35 }
 0x2e3   :  { %v1442_v41 = vpop.xlane.xlu1 %1441 }
 0x2e4   :  { %5957 = vpow2.f32 %v1074_v6  ;;  %v1452_v36 = vsub.f32 %v6958_v45, %v1442_v41  ;;  %v6305_v6 = vld [vmem:[#allocation4 + $0x18] sm:$0x3] }
 0x2e5   :  { %v1107_v41 = vrot.slane %v6305_v6, %v6425_v29 }
 0x2e6   :  { %v1456_v57 = vmul.f32 1.442695, %v1452_v36 }
 0x2e7   :  { %v1108_v23 = vmul.f32 %v1107_v41, %v6414_v24  ;;  %v1109_v29 = vmul.f32 %v1107_v41, %v6406_v19  ;;  %v1110_v19 = vmul.f32 %v1107_v41, %v6416_v25 }
 0x2e8   :  { %5959 = vpow2.f32 %v1456_v57 }
 0x2e9   :  { %v5956_v32 = vpop.eup %5955 }
 0x2ea   :  { %v7054_v59 = vmul.f32 %v5956_v32, %v6841_v52 }
 0x2eb   :  { %v1448_v44 = vpop.xlane.xlu1 %1447 }
 0x2ec   :  { %v1454_v37 = vsub.f32 %v6989_v33, %v1448_v44  ;;  %v1477_v12 = vsel %vm65_vm0, %v7054_v59, 0.0 }
 0x2ed   :  { %1478 = vadd.xlane.f32.xlu0 %v1477_v12  ;;  %v1111_v12 = vmul.f32 %v1107_v41, %v6408_v20 }
 0x2ee   :  { %v1460_v49 = vmul.f32 1.442695, %v1454_v37 }
 0x2ef   :  { %v1058_v1 = vpop.xlane.xlu1 %1057 }
 0x2f0   :  { %5961 = vpow2.f32 %v1460_v49  ;;  %v1068_v2 = vsub.f32 %v7009_v42, %v1058_v1 }
 0x2f1   :  { %v5958_v17 = vpop.eup %5957 }
 0x2f2   :  { %v1072_v45 = vmul.f32 1.442695, %v1068_v2  ;;  %v7061_v30 = vmul.f32 %v5958_v17, %v6841_v52  ;;  %v51_v2 = vld [vmem:[#allocation4 + $0x40] sm:$0xff]  ;;  %v50_v17 = vld [vmem:[#allocation4 + $0x38] sm:$0xff] }
 0x2f4   :  { %5963 = vpow2.f32 %v1072_v45  ;;  %v1087_v14 = vsel %vm65_vm0, %v7061_v30, 0.0  ;;  %v49_v45 = vld [vmem:[#allocation4 + $0x30] sm:$0xff] }
 0x2f5   :  { %v5960_v61 = vpop.eup %5959  ;;  %1088 = vadd.xlane.f32.xlu0 %v1087_v14 }
 0x2f6   :  { %v1464_v33 = vmul.f32 %v5960_v61, %v6841_v52 }
 0x2f7   :  { %v1064_v18 = vpop.xlane.xlu1 %1063 }
 0x2f8   :  { %v1070_v47 = vsub.f32 %v1054_v54, %v1064_v18  ;;  %v1468_v21 = vsel %vm65_vm0, %v1464_v33, 0.0  ;;  %v7180_v18 = vld [vmem:[#allocation4 + $0x70] ss:$0 sm:$0xff] }
 0x2f9   :  { %1469 = vadd.xlane.f32.xlu1 %v1468_v21 }
 0x2fa   :  { %v1076_v48 = vmul.f32 1.442695, %v1070_v47 }
 0x2fb   :  { %v1067_v42 = vpop.xlane.xlu0 %1066 }
 0x2fc   :  { %5965 = vpow2.f32 %v1076_v48  ;;  %v1071_v63 = vsub.f32 %v1055_v56, %v1067_v42 }
 0x2fd   :  { %v5962_v39 = vpop.eup %5961 }
 0x2fe   :  { %v1078_v22 = vmul.f32 1.442695, %v1071_v63  ;;  %v7068_v4 = vmul.f32 %v5962_v39, %v6841_v52 }
 0x300   :  { %5967 = vpow2.f32 %v1078_v22  ;;  %v1474_v13 = vsel %vm65_vm0, %v7068_v4, 0.0 }
 0x301   :  { %v5964_v38 = vpop.eup %5963  ;;  %1475 = vadd.xlane.f32.xlu1 %v1474_v13 }
 0x302   :  { %v7073_v53 = vmul.f32 %v5964_v38, %v6841_v52 }
 0x304   :  { %v1084_v40 = vsel %vm65_vm0, %v7073_v53, 0.0 }
 0x305   :  { %1085 = vadd.xlane.f32.xlu1 %v1084_v40 }
 0x309   :  { %v5966_v28 = vpop.eup %5965 }
 0x30a   :  { %v7078_v3 = vmul.f32 %v5966_v28, %v6841_v52 }
 0x30c   :  { %v1090_v0 = vsel %vm65_vm0, %v7078_v3, 0.0 }
 0x30d   :  { %v5968_v26 = vpop.eup %5967  ;;  %1091 = vadd.xlane.f32.xlu1 %v1090_v0 }
 0x30e   :  { %v7083_v5 = vmul.f32 %v5968_v26, %v6841_v52  ;;  %v7099_v52 = vld [vmem:[#allocation4 + $0x58] sm:$0xff] }
 0x310   :  { %v1093_v54 = vsel %vm65_vm0, %v7083_v5, 0.0 }
 0x311   :  { %1094 = vadd.xlane.f32.xlu0 %v1093_v54 }
 0x31e   :  { %2362 = vrot.lane.b32.xlu1 %v7091_v60, %s6368_s1 }
 0x322   :  { %2358 = vrot.lane.b32.xlu1 %v7099_v52, %s6368_s1 }
 0x326   :  { %2356 = vrot.lane.b32.xlu1 %v7105_v58, %s6368_s1 }
 0x327   :  { %2360 = vrot.lane.b32.xlu0 %v7093_v43, %s6368_s1 }
 0x32a   :  { %2274 = vrot.lane.b32.xlu1 %v7093_v43, %s6366_s0 }
 0x32b   :  { %2276 = vrot.lane.b32.xlu0 %v7091_v60, %s6366_s0 }
 0x32e   :  { %2270 = vrot.lane.b32.xlu1 %v7105_v58, %s6366_s0 }
 0x32f   :  { %2272 = vrot.lane.b32.xlu0 %v7099_v52, %s6366_s0 }
 0x332   :  { %2283 = vrot.lane.b32.xlu1 %v7180_v18, %s6366_s0 }
 0x333   :  { %2368 = vrot.lane.b32.xlu0 %v7180_v18, %s6368_s1 }
 0x36a   :  { %v1473_v7 = vpop.xlane.xlu0 %1472 }
 0x376   :  { %v1479_v56 = vpop.xlane.xlu0 %1478 }
 0x37e   :  { %v1089_v10 = vpop.xlane.xlu0 %1088 }
 0x382   :  { %v1470_v27 = vpop.xlane.xlu1 %1469 }
 0x383   :  { %5969 = vrcp.f32 %v1470_v27 }
 0x384   :  { %5971 = vrcp.f32 %v1473_v7 }
 0x385   :  { %5973 = vrcp.f32 %v1479_v56 }
 0x38a   :  { %v1476_v31 = vpop.xlane.xlu1 %1475 }
 0x38b   :  { %5975 = vrcp.f32 %v1476_v31 }
 0x38c   :  { %5977 = vrcp.f32 %v1089_v10 }
 0x38e   :  { %v1086_v34 = vpop.xlane.xlu1 %1085 }
 0x38f   :  { %5979 = vrcp.f32 %v1086_v34 }
 0x390   :  { %v5970_v46 = vpop.eup %5969 }
 0x391   :  { %v1481_v51 = vmul.f32 %v5970_v46, %v1464_v33  ;;  %v5972_v9 = vpop.eup %5971 }
 0x392   :  { %v1483_v55 = vmul.f32 %v5972_v9, %v7047_v62  ;;  %v5974_v15 = vpop.eup %5973 }
 0x393   :  { %5626 = vmatmul.mubr.msk.f32.vlgmr.msra.gmra.mxu1 %vm65_vm0, %v1481_v51  ;;  %v1487_v57 = vmul.f32 %v5974_v15, %v7054_v59 }
 0x394   :  { %5629 = vmatpush3.msra.mxu1 %v1493_v11  ;;  %5630 = vmatprep.mubr.msk.f32.mxu1 %vm6367_vm14, %v6364_v8 }
 0x395   :  { %5638 = vmatprep.subr.mxu1 %v6364_v8 }
 0x396   :  { %v1092_v35 = vpop.xlane.xlu1 %1091 }
 0x397   :  { %5981 = vrcp.f32 %v1092_v35  ;;  %5631 = vmatmul.mubr.msk.f32.vlgmr.msra.gmra.mxu1 %vm65_vm0, %v1483_v55 }
 0x398   :  { %v5976_v36 = vpop.eup %5975  ;;  %5639 = vmatpush3.msra.mxu1 %v1495_v50  ;;  %5640 = vmatprep.mubr.msk.f32.mxu1 %vm6367_vm14, %v6364_v8 }
 0x399   :  { %5648 = vmatprep.subr.mxu1 %v6364_v8  ;;  %v1485_v62 = vmul.f32 %v5976_v36, %v7068_v4  ;;  %v5978_v32 = vpop.eup %5977 }
 0x39a   :  { %v1095_v44 = vpop.xlane.xlu0 %1094  ;;  %v1099_v24 = vmul.f32 %v5978_v32, %v7061_v30  ;;  %v48_v30 = vld [vmem:[#allocation4 + $0x28] sm:$0xff]  ;;  %v7170_v14 = vpop.permute.xlu1 %2362 }
 0x39b   :  { %5983 = vrcp.f32 %v1095_v44  ;;  %5636 = vmatmul.mubr.msk.f32.vlgmr.msra.gmra.mxu0 %vm65_vm0, %v1485_v62  ;;  %5641 = vmatmul.mubr.msk.f32.vlgmr.msra.gmra.mxu1 %vm65_vm0, %v1487_v57  ;;  %v5373_v62 = vld [vmem:[#allocation4 + $0x48] ss:$0 sm:$0xff] }
 0x39c   :  { %v5980_v37 = vpop.eup %5979  ;;  %5644 = vmatpush3.msra.mxu0 %v1108_v23  ;;  %5649 = vmatpush3.msra.mxu1 %v1109_v29 }
 0x39d   :  { %5645 = vmatprep.mubr.msk.f32.mxu0 %vm6367_vm14, %v6364_v8  ;;  %5650 = vmatprep.mubr.msk.f32.mxu1 %vm6367_vm14, %v6364_v8  ;;  %v1097_v59 = vmul.f32 %v5980_v37, %v7073_v53 }
 0x39e   :  { %5653 = vmatprep.subr.mxu0 %v6364_v8  ;;  %5658 = vmatprep.subr.mxu1 %v6364_v8  ;;  %v7172_v61 = vpop.permute.xlu0 %2360  ;;  %v7177_v33 = vpop.permute.xlu1 %2358 }
 0x39f   :  { %5646 = vmatmul.mubr.msk.f32.vlgmr.msra.gmra.mxu0 %vm65_vm0, %v1097_v59  ;;  %5651 = vmatmul.mubr.msk.f32.vlgmr.msra.gmra.mxu1 %vm65_vm0, %v1099_v24 }
 0x3a0   :  { %5654 = vmatpush3.msra.mxu0 %v1110_v19  ;;  %5659 = vmatpush3.msra.mxu1 %v1111_v12 }
 0x3a1   :  { %5655 = vmatprep.mubr.msk.f32.mxu0 %vm6367_vm14, %v6364_v8  ;;  %5660 = vmatprep.mubr.msk.f32.mxu1 %vm6367_vm14, %v6364_v8 }
 0x3a2   :  { %5677 = vmatprep.subr.mxu1 %v6364_v8  ;;  %5663 = vmatprep.subr.mxu0 %v51_v2  ;;  %v7188_v47 = vpop.permute.xlu1 %2356  ;;  %v7190_v21 = vpop.permute.xlu0 %2276 }
 0x3a4   :  { %v5982_v49 = vpop.eup %5981 }
 0x3a5   :  { %v1101_v1 = vmul.f32 %v5982_v49, %v7078_v3  ;;  %v5372_v3 = vld [vmem:[#allocation4 + $0x20] ss:$0 sm:$0xff] }
 0x3a6   :  { %v7198_v48 = vpop.permute.xlu1 %2274  ;;  %v7202_v42 = vpop.permute.xlu0 %2272 }
 0x3a7   :  { %5656 = vmatmul.mubr.msk.f32.vlgmr.msra.gmra.mxu0 %vm65_vm0, %v1101_v1 }
 0x3a8   :  { %v5984_v20 = vpop.eup %5983  ;;  %5664 = vmatpush3.msra.mxu0 %v51_v2 }
 0x3a9   :  { %v1103_v25 = vmul.f32 %v5984_v20, %v7083_v5  ;;  %5665 = vmatprep.subr.mxu0 %v50_v17 }
 0x3aa   :  { %5666 = vmatpush3.msra.mxu0 %v50_v17  ;;  %v7206_v63 = vpop.permute.xlu1 %2270 }
 0x3ab   :  { %5661 = vmatmul.mubr.msk.f32.vlgmr.msra.gmra.mxu1 %vm65_vm0, %v1103_v25  ;;  %5667 = vmatprep.subr.mxu0 %v49_v45  ;;  %vm5288_vm0 = vcmask 261127  }
 0x3ac   :  { %5678 = vmatpush3.msra.mxu1 %v7091_v60  ;;  %5685 = vmatprep.mubr.msk.f32.mxu1 %vm6367_vm14, %v6364_v8 }
 0x3ad   :  { %5679 = vmatprep.subr.mxu1 %v6364_v8  ;;  %5668 = vmatpush3.msra.mxu0 %v49_v45 }
 0x3ae   :  { %5680 = vmatpush3.msra.mxu1 %v7093_v43  ;;  %5669 = vmatprep.subr.mxu0 %v48_v30 }
 0x3af   :  { %5681 = vmatprep.subr.mxu1 %v6364_v8  ;;  %5670 = vmatpush3.msra.mxu0 %v48_v30 }
 0x3b0   :  { %5682 = vmatpush3.msra.mxu1 %v7099_v52  ;;  %5688 = vmatprep.subr.mxu0 %v6364_v8 }
 0x3b1   :  { %5683 = vmatprep.subr.mxu1 %v6364_v8 }
 0x3b2   :  { %5684 = vmatpush3.msra.mxu1 %v7105_v58 }
 0x3b3   :  { %5686 = vmatmul.mubr.f32.vlgmr.msra.gmra.mxu1 %v6364_v8  ;;  %5699 = vmatprep.subr.mxu1 %v6364_v8 }
 0x3b4   :  { %5707 = vmatprep.mubr.msk.f32.mxu1 %vm6367_vm14, %v6364_v8  ;;  %5700 = vmatpush3.msra.mxu1 %v7170_v14 }
 0x3b5   :  { %5701 = vmatprep.subr.mxu1 %v6364_v8 }
 0x3b6   :  { %5702 = vmatpush3.msra.mxu1 %v7172_v61 }
 0x3b7   :  { %5703 = vmatprep.subr.mxu1 %v6364_v8 }
 0x3b8   :  { %5704 = vmatpush3.msra.mxu1 %v7177_v33 }
 0x3b9   :  { %5705 = vmatprep.subr.mxu1 %v6364_v8 }
 0x3ba   :  { %5706 = vmatpush3.msra.mxu1 %v7188_v47 }
 0x3bb   :  { %5708 = vmatmul.mubr.f32.vlgmr.msra.gmra.mxu1 %v6364_v8  ;;  %5721 = vmatprep.subr.mxu1 %v6364_v8 }
 0x3bc   :  { %5722 = vmatpush3.msra.mxu1 %v7190_v21  ;;  %5729 = vmatprep.mubr.msk.f32.mxu1 %vm6367_vm14, %v6364_v8 }
 0x3bd   :  { %5723 = vmatprep.subr.mxu1 %v6364_v8 }
 0x3be   :  { %5724 = vmatpush3.msra.mxu1 %v7198_v48 }
 0x3bf   :  { %5725 = vmatprep.subr.mxu1 %v6364_v8 }
 0x3c0   :  { %5726 = vmatpush3.msra.mxu1 %v7202_v42 }
 0x3c1   :  { %5727 = vmatprep.subr.mxu1 %v6364_v8 }
 0x3c2   :  { %5728 = vmatpush3.msra.mxu1 %v7206_v63 }
 0x3c3   :  { %5743 = vmatprep.subr.mxu1 %v6364_v8 }
 0x453   :  { %v1565_v39 = vpop.f32.mrf.mxu1 }
 0x455   :  { %v5627_v22 = vpop.f32.mrf.mxu1 }
 0x457   :  { %v1638_v4 = vpop.f32.mrf.mxu1 }
 0x459   :  { %v5632_v13 = vpop.f32.mrf.mxu1 }
 0x45b   :  { %v1711_v38 = vpop.f32.mrf.mxu0  ;;  %v1784_v53 = vpop.f32.mrf.mxu1 }
 0x45d   :  { %v5637_v40 = vpop.f32.mrf.mxu0  ;;  %v5642_v28 = vpop.f32.mrf.mxu1 }
 0x45e   :  { %v7249_v28 = vpop.permute.xlu0 %2368 }
 0x45f   :  { %v1857_v0 = vpop.f32.mrf.mxu0  ;;  %v1930_v26 = vpop.f32.mrf.mxu1 }
 0x460   :  { %v1858_v5 = vadd.f32 %v1857_v0, %v1565_v39  ;;  %v1931_v54 = vadd.f32 %v1930_v26, %v1638_v4 }
 0x461   :  { %v5647_v7 = vpop.f32.mrf.mxu0  ;;  %v5652_v27 = vpop.f32.mrf.mxu1 }
 0x462   :  { %v2084_v56 = vadd.f32 %v5372_v3, %v1858_v5  ;;  %v2085_v10 = vadd.f32 %v5372_v3, %v1931_v54 }
 0x464   :  { %5671 = vmatprep.mubr.msk.f32.mxu0 %vm751_vm3, %v2084_v56  ;;  %v7252_v56 = vpop.permute.xlu1 %2283 }
 0x465   :  { %5672 = vmatmul.mubr.msk.f32.vlgmr.msra.gmra.mxu0 %vm751_vm3, %v2085_v10 }
 0x466   :  { %5689 = vmatpush3.msra.mxu0 %v7190_v21 }
 0x467   :  { %v2003_v31 = vpop.f32.mrf.mxu0  ;;  %5690 = vmatprep.subr.mxu0 %v6364_v8 }
 0x468   :  { %v2004_v34 = vadd.f32 %v2003_v31, %v1711_v38  ;;  %5691 = vmatpush3.msra.mxu0 %v7198_v48 }
 0x469   :  { %v5657_v46 = vpop.f32.mrf.mxu0  ;;  %5692 = vmatprep.subr.mxu0 %v6364_v8 }
 0x46a   :  { %v2086_v51 = vadd.f32 %v5372_v3, %v2004_v34  ;;  %5693 = vmatpush3.msra.mxu0 %v7202_v42 }
 0x46b   :  { %v2076_v9 = vpop.f32.mrf.mxu1  ;;  %5694 = vmatprep.subr.mxu0 %v6364_v8 }
 0x46c   :  { %v2077_v11 = vadd.f32 %v2076_v9, %v1784_v53  ;;  %5674 = vmatprep.mubr.msk.f32.mxu0 %vm751_vm3, %v2086_v51  ;;  %5695 = vmatpush3.msra.mxu0 %v7206_v63 }
 0x46d   :  { %v5662_v55 = vpop.f32.mrf.mxu1  ;;  %5710 = vmatprep.subr.mxu0 %v6364_v8 }
 0x46e   :  { %v2087_v15 = vadd.f32 %v5372_v3, %v2077_v11 }
 0x470   :  { %5675 = vmatmul.mubr.msk.f32.gmra.mxu0 %vm751_vm3, %v2087_v15 }
 0x471   :  { %5696 = vmatprep.mubr.msk.f32.mxu0 %vm6367_vm14, %v6364_v8 }
 0x473   :  { %v2262_v35 = vpop.f32.mrf.mxu1 }
 0x474   :  { %5697 = vmatmul.mubr.f32.vlgmr.msra.gmra.mxu0 %v6364_v8  ;;  %v2263_v36 = vadd.f32 %v7180_v18, %v2262_v35 }
 0x475   :  { %v5687_v50 = vpop.f32.mrf.mxu1  ;;  %5711 = vmatpush3.msra.mxu0 %v7091_v60  ;;  %5718 = vmatprep.mubr.msk.f32.mxu0 %vm6367_vm14, %v6364_v8 }
 0x476   :  { %5712 = vmatprep.subr.mxu0 %v6364_v8  ;;  %v2442_v57 = vrot.slane %v2263_v36, 1  ;;  %v2444_v12 = vrot.slane %v2263_v36, 3  ;;  %v2443_v1 = vrot.slane %v2263_v36, 2 }
 0x477   :  { %5713 = vmatpush3.msra.mxu0 %v7093_v43 }
 0x478   :  { %5714 = vmatprep.subr.mxu0 %v6364_v8 }
 0x479   :  { %5715 = vmatpush3.msra.mxu0 %v7099_v52 }
 0x47a   :  { %5716 = vmatprep.subr.mxu0 %v6364_v8 }
 0x47b   :  { %5717 = vmatpush3.msra.mxu0 %v7105_v58  ;;  %v2437_v6 = vpop.f32.mrf.mxu1 }
 0x47c   :  { %5732 = vmatprep.subr.mxu0 %v6364_v8  ;;  %v2438_v3 = vadd.f32 %v2437_v6, %v7249_v28 }
 0x47d   :  { %v5709_v41 = vpop.f32.mrf.mxu1 }
 0x47e   :  { %v2522_v54 = vrot.slane %v2438_v3, 1  ;;  %v2524_v9 = vrot.slane %v2438_v3, 3  ;;  %v2523_v11 = vrot.slane %v2438_v3, 2 }
 0x525   :  { %v5673_v32 = vpop.f32.mrf.mxu0 }
 0x526   :  { %v7237_v44 = vadd.f32 %v5673_v32, %v5373_v62 }
 0x527   :  { %v2170_v23 = vpop.f32.mrf.mxu0 }
 0x528   :  { %v7239_v29 = vadd.f32 %v5373_v62, %v2170_v23  ;;  %v2450_v37 = vadd.f32 %v2442_v57, %v7237_v44 }
 0x52a   :  { %v5380_v59 = vmul.f32 -1.442695, %v2450_v37  ;;  %v2449_v24 = vadd.f32 %v2263_v36, %v7239_v29 }
 0x52c   :  { %5985 = vpow2.f32 %v5380_v59  ;;  %v5379_v19 = vmul.f32 -1.442695, %v2449_v24 }
 0x52e   :  { %5987 = vpow2.f32 %v5379_v19 }
 0x530   :  { %v5676_v49 = vpop.f32.mrf.mxu0 }
 0x531   :  { %v7243_v20 = vadd.f32 %v5676_v49, %v5373_v62 }
 0x532   :  { %v2180_v25 = vpop.f32.mrf.mxu0 }
 0x533   :  { %v7245_v2 = vadd.f32 %v5373_v62, %v2180_v25  ;;  %v2452_v17 = vadd.f32 %v2444_v12, %v7243_v20 }
 0x534   :  { %v2352_v45 = vpop.f32.mrf.mxu0 }
 0x535   :  { %v2451_v30 = vadd.f32 %v2443_v1, %v7245_v2  ;;  %v5382_v39 = vmul.f32 -1.442695, %v2452_v17  ;;  %v2353_v34 = vadd.f32 %v2352_v45, %v7252_v56 }
 0x536   :  { %v5698_v22 = vpop.f32.mrf.mxu0 }
 0x537   :  { %v5381_v4 = vmul.f32 -1.442695, %v2451_v30  ;;  %5989 = vpow2.f32 %v5382_v39  ;;  %v2478_v51 = vrot.slane %v2353_v34, 1  ;;  %v2479_v6 = vrot.slane %v2353_v34, 2 }
 0x538   :  { %v2480_v41 = vrot.slane %v2353_v34, 3 }
 0x539   :  { %v5986_v13 = vpop.eup %5985  ;;  %5991 = vpow2.f32 %v5381_v4 }
 0x53a   :  { %v2466_v38 = vadd.f32 1.0, %v5986_v13 }
 0x53b   :  { %v5988_v53 = vpop.eup %5987 }
 0x53c   :  { %5993 = vrcp.f32 %v2466_v38  ;;  %v2465_v40 = vadd.f32 1.0, %v5988_v53 }
 0x53e   :  { %5995 = vrcp.f32 %v2465_v40 }
 0x544   :  { %v5990_v0 = vpop.eup %5989 }
 0x545   :  { %v2468_v26 = vadd.f32 1.0, %v5990_v0 }
 0x546   :  { %v5992_v5 = vpop.eup %5991 }
 0x547   :  { %v2467_v7 = vadd.f32 1.0, %v5992_v5  ;;  %5997 = vrcp.f32 %v2468_v26 }
 0x549   :  { %v5994_v27 = vpop.eup %5993  ;;  %5999 = vrcp.f32 %v2467_v7 }
 0x54a   :  { %v2530_v10 = vmul.f32 %v5994_v27, %v2522_v54 }
 0x54b   :  { %v5996_v31 = vpop.eup %5995 }
 0x54c   :  { %2539 = vrot.lane.b32.xlu0 %v2530_v10, %s6368_s1  ;;  %v2529_v46 = vmul.f32 %v5996_v31, %v2438_v3 }
 0x550   :  { %2537 = vrot.lane.b32.xlu0 %v2529_v46, %s6368_s1 }
 0x554   :  { %v5998_v55 = vpop.eup %5997  ;;  %2483 = vrot.lane.b32.xlu0 %v2478_v51, %s6369_s21 }
 0x555   :  { %v2532_v15 = vmul.f32 %v5998_v55, %v2524_v9 }
 0x556   :  { %v6000_v35 = vpop.eup %5999 }
 0x557   :  { %v2531_v50 = vmul.f32 %v6000_v35, %v2523_v11 }
 0x558   :  { %2481 = vrot.lane.b32.xlu0 %v2353_v34, %s6369_s21 }
 0x559   :  { %2541 = vrot.lane.b32.xlu1 %v2531_v50, %s6368_s1 }
 0x55d   :  { %2543 = vrot.lane.b32.xlu1 %v2532_v15, %s6368_s1 }
 0x561   :  { %2485 = vrot.lane.b32.xlu1 %v2479_v6, %s6369_s21 }
 0x565   :  { %2487 = vrot.lane.b32.xlu1 %v2480_v41, %s6369_s21 }
 0x5be   :  { %v2540_v36 = vpop.permute.xlu0 %2539 }
 0x5bf   :  { %v2550_v62 = vadd.f32 %v2540_v36, %v7237_v44 }
 0x5c1   :  { %6001 = vtanh.f32 %v2550_v62 }
 0x5c2   :  { %v2538_v57 = vpop.permute.xlu0 %2537 }
 0x5c3   :  { %v2549_v32 = vadd.f32 %v2538_v57, %v7239_v29 }
 0x5c5   :  { %6003 = vtanh.f32 %v2549_v32 }
 0x5c6   :  { %v2484_v25 = vpop.permute.xlu0 %2483 }
 0x5c7   :  { %v2494_v30 = vadd.f32 %v2484_v25, %v7237_v44 }
 0x5c9   :  { %v5384_v13 = vmul.f32 -1.442695, %v2494_v30 }
 0x5ca   :  { %v2482_v45 = vpop.permute.xlu0 %2481 }
 0x5cb   :  { %v2542_v23 = vpop.permute.xlu1 %2541  ;;  %v2493_v39 = vadd.f32 %v2482_v45, %v7239_v29 }
 0x5cc   :  { %v2551_v37 = vadd.f32 %v2542_v23, %v7245_v2 }
 0x5cd   :  { %v5383_v38 = vmul.f32 -1.442695, %v2493_v39 }
 0x5ce   :  { %v6002_v59 = vpop.eup %6001  ;;  %6005 = vtanh.f32 %v2551_v37 }
 0x5cf   :  { %v2544_v24 = vpop.permute.xlu1 %2543  ;;  %2567 = vrot.lane.b32.xlu0 %v6002_v59, %s6366_s0 }
 0x5d0   :  { %v2552_v19 = vadd.f32 %v2544_v24, %v7243_v20 }
 0x5d2   :  { %v6004_v12 = vpop.eup %6003  ;;  %6007 = vtanh.f32 %v2552_v19 }
 0x5d3   :  { %2565 = vrot.lane.b32.xlu0 %v6004_v12, %s6366_s0  ;;  %v2486_v17 = vpop.permute.xlu1 %2485  ;;  %6009 = vpow2.f32 %v5384_v13 }
 0x5d4   :  { %v2495_v22 = vadd.f32 %v2486_v17, %v7245_v2  ;;  %6011 = vpow2.f32 %v5383_v38 }
 0x5d6   :  { %v5385_v53 = vmul.f32 -1.442695, %v2495_v22 }
 0x5d7   :  { %v2488_v4 = vpop.permute.xlu1 %2487 }
 0x5d8   :  { %v2496_v40 = vadd.f32 %v2488_v4, %v7243_v20  ;;  %6013 = vpow2.f32 %v5385_v53 }
 0x5da   :  { %v5386_v3 = vmul.f32 -1.442695, %v2496_v40 }
 0x5db   :  { %v6006_v49 = vpop.eup %6005 }
 0x5dc   :  { %2569 = vrot.lane.b32.xlu1 %v6006_v49, %s6366_s0  ;;  %6015 = vpow2.f32 %v5386_v3 }
 0x5df   :  { %v6008_v1 = vpop.eup %6007 }
 0x5e0   :  { %2571 = vrot.lane.b32.xlu1 %v6008_v1, %s6366_s0  ;;  %v6010_v0 = vpop.eup %6009 }
 0x5e1   :  { %v6012_v26 = vpop.eup %6011  ;;  %v2510_v54 = vadd.f32 1.0, %v6010_v0 }
 0x5e2   :  { %v2509_v7 = vadd.f32 1.0, %v6012_v26 }
 0x5e3   :  { %6017 = vrcp.f32 %v2510_v54 }
 0x5e4   :  { %6019 = vrcp.f32 %v2509_v7 }
 0x5e5   :  { %v6014_v5 = vpop.eup %6013 }
 0x5e6   :  { %v2511_v27 = vadd.f32 1.0, %v6014_v5 }
 0x5e8   :  { %6021 = vrcp.f32 %v2511_v27 }
 0x5e9   :  { %v6016_v10 = vpop.eup %6015 }
 0x5ea   :  { %v2512_v31 = vadd.f32 1.0, %v6016_v10 }
 0x5ec   :  { %6023 = vrcp.f32 %v2512_v31 }
 0x5f0   :  { %v6018_v46 = vpop.eup %6017 }
 0x5f1   :  { %v6020_v51 = vpop.eup %6019  ;;  %v2558_v11 = vsub.f32 1.0, %v6018_v46  ;;  %v2582_v36 = vmul.f32 0.0, %v6018_v46 }
 0x5f2   :  { %v2557_v35 = vsub.f32 1.0, %v6020_v51  ;;  %v2581_v37 = vmul.f32 0.0, %v6020_v51 }
 0x5f5   :  { %v6022_v9 = vpop.eup %6021 }
 0x5f6   :  { %v2559_v50 = vsub.f32 1.0, %v6022_v9  ;;  %v2583_v57 = vmul.f32 0.0, %v6022_v9 }
 0x5f9   :  { %v6024_v6 = vpop.eup %6023 }
 0x5fa   :  { %v2560_v24 = vsub.f32 1.0, %v6024_v6  ;;  %v2584_v49 = vmul.f32 0.0, %v6024_v6 }
 0x641   :  { %v2568_v34 = vpop.permute.xlu0 %2567 }
 0x642   :  { %v2578_v15 = vmul.f32 %v2568_v34, %v2558_v11 }
 0x644   :  { %v7275_v23 = vadd.f32 %v2582_v36, %v2578_v15 }
 0x645   :  { %v2566_v55 = vpop.permute.xlu0 %2565 }
 0x646   :  { %v2577_v62 = vmul.f32 %v2566_v55, %v2557_v35  ;;  %v2593_v17 = vrot.slane %v7275_v23, 7 }
 0x648   :  { %v7279_v12 = vadd.f32 %v2581_v37, %v2577_v62 }
 0x64a   :  { %v2594_v30 = vsel %vm1013_vm6, %v2593_v17, %v7279_v12 }
 0x64e   :  { %v2570_v41 = vpop.permute.xlu1 %2569 }
 0x64f   :  { %v2579_v32 = vmul.f32 %v2570_v41, %v2559_v50 }
 0x651   :  { %v7277_v59 = vadd.f32 %v2583_v57, %v2579_v32 }
 0x652   :  { %v2572_v19 = vpop.permute.xlu1 %2571 }
 0x653   :  { %v2580_v1 = vmul.f32 %v2572_v19, %v2560_v24  ;;  %v2595_v25 = vrot.slane %v7277_v59, 6 }
 0x655   :  { %v7283_v45 = vadd.f32 %v2584_v49, %v2580_v1  ;;  %v2596_v22 = vsel %vm1015_vm7, %v2595_v25, %v2594_v30 }
 0x657   :  { %v2597_v39 = vrot.slane %v7283_v45, 5 }
 0x659   :  { %v2598_v4 = vsel %vm1017_vm8, %v2597_v39, %v2596_v22 }
 0x65a   :  { %2599 = vrot.lane.b32.xlu0 %v2598_v4, %s6366_s0 }
 0x6cc   :  { %v2600_v13 = vpop.permute.xlu0 %2599 }
 0x6cd   :  { %5719 = vmatmul.mubr.msk.f32.vlgmr.msra.gmra.mxu0 %vm751_vm3, %v2600_v13  ;;  %5730 = vmatmul.mubr.msk.f32.vlgmr.msra.gmra.mxu1 %vm751_vm3, %v2600_v13 }
 0x6ce   :  { %5733 = vmatpush3.msra.mxu0 %v7170_v14  ;;  %5740 = vmatprep.mubr.msk.f32.mxu0 %vm6367_vm14, %v6364_v8 }
 0x6cf   :  { %5734 = vmatprep.subr.mxu0 %v6364_v8  ;;  %5744 = vmatpush3.msra.mxu1 %v7091_v60 }
 0x6d0   :  { %5735 = vmatpush3.msra.mxu0 %v7172_v61  ;;  %5745 = vmatprep.subr.mxu1 %v6364_v8 }
 0x6d1   :  { %5736 = vmatprep.subr.mxu0 %v6364_v8  ;;  %5746 = vmatpush3.msra.mxu1 %v7093_v43 }
 0x6d2   :  { %5737 = vmatpush3.msra.mxu0 %v7177_v33  ;;  %5747 = vmatprep.subr.mxu1 %v6364_v8 }
 0x6d3   :  { %5738 = vmatprep.subr.mxu0 %v6364_v8  ;;  %5748 = vmatpush3.msra.mxu1 %v7099_v52 }
 0x6d4   :  { %5739 = vmatpush3.msra.mxu0 %v7188_v47  ;;  %5749 = vmatprep.subr.mxu1 %v6364_v8 }
 0x6d5   :  { %5741 = vmatmul.mubr.msk.f32.vlgmr.msra.gmra.mxu0 %vm751_vm3, %v2600_v13  ;;  %5754 = vmatprep.subr.mxu0 %v6364_v8 }
 0x6d6   :  { %5755 = vmatpush3.msra.mxu0 %v7190_v21  ;;  %5750 = vmatpush3.msra.mxu1 %v7105_v58 }
 0x6d7   :  { %5756 = vmatprep.subr.mxu0 %v6364_v8  ;;  %5751 = vmatprep.mubr.msk.f32.mxu1 %vm6367_vm14, %v6364_v8 }
 0x6d8   :  { %5757 = vmatpush3.msra.mxu0 %v7198_v48  ;;  %5762 = vmatprep.mubr.msk.f32.mxu0 %vm6367_vm14, %v6364_v8 }
 0x6d9   :  { %5758 = vmatprep.subr.mxu0 %v6364_v8  ;;  %5765 = vmatprep.subr.mxu1 %v6364_v8 }
 0x6da   :  { %5759 = vmatpush3.msra.mxu0 %v7202_v42 }
 0x6db   :  { %5760 = vmatprep.subr.mxu0 %v6364_v8 }
 0x6dc   :  { %5761 = vmatpush3.msra.mxu0 %v7206_v63 }
 0x6dd   :  { %5776 = vmatprep.subr.mxu0 %v6364_v8 }
 0x78d   :  { %v2669_v38 = vpop.f32.mrf.mxu0  ;;  %v2739_v53 = vpop.f32.mrf.mxu1 }
 0x78e   :  { %v2670_v40 = vadd.f32 %v7180_v18, %v2669_v38  ;;  %v2740_v4 = vadd.f32 %v2739_v53, %v7252_v56 }
 0x78f   :  { %v5720_v3 = vpop.f32.mrf.mxu0  ;;  %v5731_v0 = vpop.f32.mrf.mxu1 }
 0x790   :  { %v2814_v26 = vrot.slane %v2670_v40, 7  ;;  %v2815_v5 = vrot.slane %v2670_v40, 1  ;;  %v2816_v54 = vrot.slane %v2670_v40, 2  ;;  %v2822_v7 = vadd.f32 %v2670_v40, %v7237_v44 }
 0x791   :  { %v2850_v40 = vrot.slane %v2740_v4, 7  ;;  %v2851_v3 = vrot.slane %v2740_v4, 1  ;;  %v2852_v0 = vrot.slane %v2740_v4, 2 }
 0x792   :  { %v2821_v27 = vadd.f32 %v2814_v26, %v7239_v29  ;;  %v2823_v10 = vadd.f32 %v2815_v5, %v7245_v2  ;;  %v2824_v31 = vadd.f32 %v2816_v54, %v7243_v20  ;;  %v5391_v34 = vmul.f32 -1.442695, %v2822_v7 }
 0x794   :  { %v5390_v46 = vmul.f32 -1.442695, %v2821_v27  ;;  %6025 = vpow2.f32 %v5391_v34  ;;  %v5392_v51 = vmul.f32 -1.442695, %v2823_v10  ;;  %v5393_v9 = vmul.f32 -1.442695, %v2824_v31 }
 0x795   :  { %v2809_v11 = vpop.f32.mrf.mxu0 }
 0x796   :  { %6027 = vpow2.f32 %v5390_v46  ;;  %v2810_v32 = vadd.f32 %v2809_v11, %v7249_v28 }
 0x797   :  { %6029 = vpow2.f32 %v5392_v51  ;;  %v5742_v55 = vpop.f32.mrf.mxu0 }
 0x798   :  { %6031 = vpow2.f32 %v5393_v9  ;;  %v2894_v37 = vrot.slane %v2810_v32, 7  ;;  %v2895_v19 = vrot.slane %v2810_v32, 1  ;;  %v2896_v22 = vrot.slane %v2810_v32, 2 }
 0x7a1   :  { %v6026_v15 = vpop.eup %6025 }
 0x7a2   :  { %v2838_v41 = vadd.f32 1.0, %v6026_v15 }
 0x7a3   :  { %v6028_v35 = vpop.eup %6027 }
 0x7a4   :  { %v6030_v50 = vpop.eup %6029  ;;  %v2837_v6 = vadd.f32 1.0, %v6028_v35 }
 0x7a5   :  { %v6032_v36 = vpop.eup %6031  ;;  %v2839_v62 = vadd.f32 1.0, %v6030_v50 }
 0x7a6   :  { %v2840_v57 = vadd.f32 1.0, %v6032_v36  ;;  %6033 = vrcp.f32 %v2837_v6 }
 0x7a7   :  { %6035 = vrcp.f32 %v2839_v62 }
 0x7a8   :  { %6037 = vrcp.f32 %v2838_v41 }
 0x7a9   :  { %6039 = vrcp.f32 %v2840_v57 }
 0x7b3   :  { %v6034_v24 = vpop.eup %6033 }
 0x7b4   :  { %v6036_v49 = vpop.eup %6035  ;;  %v2901_v1 = vmul.f32 %v6034_v24, %v2894_v37 }
 0x7b5   :  { %v6038_v25 = vpop.eup %6037  ;;  %v2903_v30 = vmul.f32 %v6036_v49, %v2895_v19 }
 0x7b6   :  { %v6040_v39 = vpop.eup %6039  ;;  %2909 = vrot.lane.b32.xlu1 %v2901_v1, %s6368_s1  ;;  %v2902_v13 = vmul.f32 %v6038_v25, %v2810_v32 }
 0x7b7   :  { %2913 = vrot.lane.b32.xlu0 %v2903_v30, %s6368_s1  ;;  %v2904_v38 = vmul.f32 %v6040_v39, %v2896_v22 }
 0x7ba   :  { %2911 = vrot.lane.b32.xlu1 %v2902_v13, %s6368_s1 }
 0x7bb   :  { %2915 = vrot.lane.b32.xlu0 %v2904_v38, %s6368_s1  ;;  %v2953_v38 = vrot.slane %v7279_v12, 7 }
 0x7be   :  { %2853 = vrot.lane.b32.xlu1 %v2850_v40, %s6369_s21 }
 0x7bf   :  { %2857 = vrot.lane.b32.xlu0 %v2851_v3, %s6369_s21 }
 0x7c2   :  { %2855 = vrot.lane.b32.xlu1 %v2740_v4, %s6369_s21 }
 0x7c3   :  { %2859 = vrot.lane.b32.xlu0 %v2852_v0, %s6369_s21  ;;  %v2954_v0 = vrot.slane %v7277_v59, 7 }
 0x828   :  { %v2910_v26 = vpop.permute.xlu1 %2909 }
 0x829   :  { %v2914_v5 = vpop.permute.xlu0 %2913  ;;  %v2921_v53 = vadd.f32 %v2910_v26, %v7239_v29 }
 0x82a   :  { %v2923_v54 = vadd.f32 %v2914_v5, %v7245_v2 }
 0x82b   :  { %6041 = vtanh.f32 %v2921_v53 }
 0x82c   :  { %6043 = vtanh.f32 %v2923_v54  ;;  %v2912_v7 = vpop.permute.xlu1 %2911 }
 0x82d   :  { %v2916_v27 = vpop.permute.xlu0 %2915  ;;  %v2922_v10 = vadd.f32 %v2912_v7, %v7237_v44 }
 0x82e   :  { %v2924_v31 = vadd.f32 %v2916_v27, %v7243_v20 }
 0x82f   :  { %6045 = vtanh.f32 %v2922_v10 }
 0x830   :  { %6047 = vtanh.f32 %v2924_v31  ;;  %v2854_v11 = vpop.permute.xlu1 %2853 }
 0x831   :  { %v2858_v55 = vpop.permute.xlu0 %2857  ;;  %v2865_v15 = vadd.f32 %v2854_v11, %v7239_v29 }
 0x832   :  { %v2867_v35 = vadd.f32 %v2858_v55, %v7245_v2 }
 0x833   :  { %v5394_v41 = vmul.f32 -1.442695, %v2865_v15 }
 0x834   :  { %v2856_v50 = vpop.permute.xlu1 %2855  ;;  %v5396_v62 = vmul.f32 -1.442695, %v2867_v35 }
 0x835   :  { %v2860_v6 = vpop.permute.xlu0 %2859  ;;  %v2866_v36 = vadd.f32 %v2856_v50, %v7237_v44  ;;  %6049 = vpow2.f32 %v5394_v41 }
 0x836   :  { %v2868_v57 = vadd.f32 %v2860_v6, %v7243_v20  ;;  %6051 = vpow2.f32 %v5396_v62 }
 0x837   :  { %v5395_v32 = vmul.f32 -1.442695, %v2866_v36 }
 0x838   :  { %v6042_v34 = vpop.eup %6041  ;;  %v5397_v37 = vmul.f32 -1.442695, %v2868_v57 }
 0x839   :  { %v6044_v46 = vpop.eup %6043  ;;  %2937 = vrot.lane.b32.xlu1 %v6042_v34, %s6366_s0  ;;  %6053 = vpow2.f32 %v5395_v32 }
 0x83a   :  { %2941 = vrot.lane.b32.xlu0 %v6044_v46, %s6366_s0  ;;  %6055 = vpow2.f32 %v5397_v37 }
 0x83c   :  { %v6046_v51 = vpop.eup %6045 }
 0x83d   :  { %v6048_v9 = vpop.eup %6047  ;;  %2939 = vrot.lane.b32.xlu1 %v6046_v51, %s6366_s0  ;;  %v2955_v51 = vrot.slane %v7283_v45, 7 }
 0x83e   :  { %2943 = vrot.lane.b32.xlu0 %v6048_v9, %s6366_s0 }
 0x842   :  { %v6050_v24 = vpop.eup %6049 }
 0x843   :  { %v6052_v19 = vpop.eup %6051  ;;  %v2881_v49 = vadd.f32 1.0, %v6050_v24 }
 0x844   :  { %v2883_v25 = vadd.f32 1.0, %v6052_v19 }
 0x845   :  { %6057 = vrcp.f32 %v2881_v49 }
 0x846   :  { %v6054_v1 = vpop.eup %6053  ;;  %6059 = vrcp.f32 %v2883_v25 }
 0x847   :  { %v6056_v30 = vpop.eup %6055  ;;  %v2882_v39 = vadd.f32 1.0, %v6054_v1 }
 0x848   :  { %v2884_v22 = vadd.f32 1.0, %v6056_v30 }
 0x849   :  { %6061 = vrcp.f32 %v2882_v39 }
 0x84a   :  { %6063 = vrcp.f32 %v2884_v22 }
 0x852   :  { %v6058_v4 = vpop.eup %6057 }
 0x853   :  { %v6060_v13 = vpop.eup %6059  ;;  %v2929_v40 = vsub.f32 1.0, %v6058_v4  ;;  %v2960_v7 = vmul.f32 %v6058_v4, %v2953_v38 }
 0x854   :  { %v2931_v26 = vsub.f32 1.0, %v6060_v13  ;;  %v2962_v10 = vmul.f32 %v6060_v13, %v2954_v0 }
 0x856   :  { %v6062_v3 = vpop.eup %6061 }
 0x857   :  { %v6064_v53 = vpop.eup %6063  ;;  %v2930_v46 = vsub.f32 1.0, %v6062_v3  ;;  %v2961_v59 = vmul.f32 %v6062_v3, %v2593_v17 }
 0x858   :  { %v2932_v12 = vsub.f32 1.0, %v6064_v53  ;;  %v2963_v35 = vmul.f32 %v6064_v53, %v2955_v51 }
 0x8ab   :  { %v2938_v5 = vpop.permute.xlu1 %2937 }
 0x8ac   :  { %v2942_v54 = vpop.permute.xlu0 %2941  ;;  %v2949_v27 = vmul.f32 %v2938_v5, %v2929_v40 }
 0x8ad   :  { %v2951_v31 = vmul.f32 %v2942_v54, %v2931_v26 }
 0x8ae   :  { %v7355_v34 = vadd.f32 %v2960_v7, %v2949_v27 }
 0x8af   :  { %v7358_v9 = vadd.f32 %v2962_v10, %v2951_v31  ;;  %v2940_v11 = vpop.permute.xlu1 %2939 }
 0x8b0   :  { %v2944_v55 = vpop.permute.xlu0 %2943  ;;  %v2950_v15 = vmul.f32 %v2940_v11, %v2930_v46  ;;  %v2972_v6 = vrot.slane %v7355_v34, 1 }
 0x8b1   :  { %v2952_v50 = vmul.f32 %v2944_v55, %v2932_v12  ;;  %v2974_v36 = vrot.slane %v7358_v9, 7 }
 0x8b2   :  { %v7363_v41 = vadd.f32 %v2961_v59, %v2950_v15 }
 0x8b3   :  { %v7366_v62 = vadd.f32 %v2963_v35, %v2952_v50 }
 0x8b4   :  { %v2973_v45 = vsel %vm1013_vm6, %v7363_v41, %v2972_v6 }
 0x8b5   :  { %v2976_v57 = vrot.slane %v7366_v62, 6  ;;  %v2975_v23 = vsel %vm1015_vm7, %v2974_v36, %v2973_v45 }
 0x8b7   :  { %v2977_v17 = vsel %vm1017_vm8, %v2976_v57, %v2975_v23 }
 0x8b8   :  { %2978 = vrot.lane.b32.xlu1 %v2977_v17, %s6366_s0 }
 0x92a   :  { %v2979_v32 = vpop.permute.xlu1 %2978 }
 0x92b   :  { %5752 = vmatmul.mubr.msk.f32.vlgmr.msra.gmra.mxu1 %vm751_vm3, %v2979_v32  ;;  %5763 = vmatmul.mubr.msk.f32.vlgmr.msra.gmra.mxu0 %vm751_vm3, %v2979_v32 }
 0x92c   :  { %5766 = vmatpush3.msra.mxu1 %v7170_v14  ;;  %5773 = vmatprep.mubr.msk.f32.mxu1 %vm6367_vm14, %v6364_v8 }
 0x92d   :  { %5767 = vmatprep.subr.mxu1 %v6364_v8  ;;  %5777 = vmatpush3.msra.mxu0 %v7091_v60 }
 0x92e   :  { %5768 = vmatpush3.msra.mxu1 %v7172_v61  ;;  %5778 = vmatprep.subr.mxu0 %v6364_v8 }
 0x92f   :  { %5769 = vmatprep.subr.mxu1 %v6364_v8  ;;  %5779 = vmatpush3.msra.mxu0 %v7093_v43 }
 0x930   :  { %5770 = vmatpush3.msra.mxu1 %v7177_v33  ;;  %5780 = vmatprep.subr.mxu0 %v6364_v8 }
 0x931   :  { %5771 = vmatprep.subr.mxu1 %v6364_v8  ;;  %5781 = vmatpush3.msra.mxu0 %v7099_v52 }
 0x932   :  { %5772 = vmatpush3.msra.mxu1 %v7188_v47  ;;  %5782 = vmatprep.subr.mxu0 %v6364_v8 }
 0x933   :  { %5774 = vmatmul.mubr.msk.f32.vlgmr.msra.gmra.mxu1 %vm751_vm3, %v2979_v32  ;;  %5787 = vmatprep.subr.mxu1 %v6364_v8 }
 0x934   :  { %5788 = vmatpush3.msra.mxu1 %v7190_v21  ;;  %5783 = vmatpush3.msra.mxu0 %v7105_v58 }
 0x935   :  { %5789 = vmatprep.subr.mxu1 %v6364_v8  ;;  %5784 = vmatprep.mubr.msk.f32.mxu0 %vm6367_vm14, %v6364_v8 }
 0x936   :  { %5790 = vmatpush3.msra.mxu1 %v7198_v48  ;;  %5795 = vmatprep.mubr.msk.f32.mxu1 %vm6367_vm14, %v6364_v8 }
 0x937   :  { %5791 = vmatprep.subr.mxu1 %v6364_v8  ;;  %5798 = vmatprep.subr.mxu0 %v6364_v8 }
 0x938   :  { %5792 = vmatpush3.msra.mxu1 %v7202_v42 }
 0x939   :  { %5793 = vmatprep.subr.mxu1 %v6364_v8 }
 0x93a   :  { %5794 = vmatpush3.msra.mxu1 %v7206_v63 }
 0x93b   :  { %5809 = vmatprep.subr.mxu1 %v6364_v8 }
 0x9eb   :  { %v3048_v60 = vpop.f32.mrf.mxu1  ;;  %v3118_v43 = vpop.f32.mrf.mxu0 }
 0x9ec   :  { %v3049_v52 = vadd.f32 %v7180_v18, %v3048_v60  ;;  %v3119_v50 = vadd.f32 %v3118_v43, %v7252_v56 }
 0x9ed   :  { %v5753_v58 = vpop.f32.mrf.mxu1  ;;  %v5764_v37 = vpop.f32.mrf.mxu0 }
 0x9ee   :  { %v3193_v24 = vrot.slane %v3049_v52, 6  ;;  %v3194_v19 = vrot.slane %v3049_v52, 7  ;;  %v3195_v49 = vrot.slane %v3049_v52, 1  ;;  %v3202_v1 = vadd.f32 %v3049_v52, %v7245_v2 }
 0x9ef   :  { %v3229_v57 = vrot.slane %v3119_v50, 6  ;;  %v3230_v23 = vrot.slane %v3119_v50, 7  ;;  %v3231_v17 = vrot.slane %v3119_v50, 1 }
 0x9f0   :  { %v3200_v25 = vadd.f32 %v3193_v24, %v7239_v29  ;;  %v3201_v30 = vadd.f32 %v3194_v19, %v7237_v44  ;;  %v3203_v39 = vadd.f32 %v3195_v49, %v7243_v20  ;;  %v5403_v22 = vmul.f32 -1.442695, %v3202_v1 }
 0x9f2   :  { %v5401_v4 = vmul.f32 -1.442695, %v3200_v25  ;;  %v5402_v13 = vmul.f32 -1.442695, %v3201_v30  ;;  %v5404_v38 = vmul.f32 -1.442695, %v3203_v39  ;;  %6065 = vpow2.f32 %v5403_v22 }
 0x9f3   :  { %v3188_v40 = vpop.f32.mrf.mxu1 }
 0x9f4   :  { %6067 = vpow2.f32 %v5401_v4  ;;  %v3189_v10 = vadd.f32 %v3188_v40, %v7249_v28 }
 0x9f5   :  { %6069 = vpow2.f32 %v5402_v13  ;;  %v5775_v18 = vpop.f32.mrf.mxu1 }
 0x9f6   :  { %6071 = vpow2.f32 %v5404_v38  ;;  %v3273_v31 = vrot.slane %v3189_v10, 6  ;;  %v3274_v51 = vrot.slane %v3189_v10, 7  ;;  %v3275_v35 = vrot.slane %v3189_v10, 1 }
 0x9ff   :  { %v6066_v3 = vpop.eup %6065 }
 0xa00   :  { %v3218_v7 = vadd.f32 1.0, %v6066_v3 }
 0xa01   :  { %v6068_v0 = vpop.eup %6067 }
 0xa02   :  { %v6070_v26 = vpop.eup %6069  ;;  %v3216_v5 = vadd.f32 1.0, %v6068_v0 }
 0xa03   :  { %v6072_v53 = vpop.eup %6071  ;;  %v3217_v54 = vadd.f32 1.0, %v6070_v26 }
 0xa04   :  { %v3219_v27 = vadd.f32 1.0, %v6072_v53  ;;  %6073 = vrcp.f32 %v3216_v5 }
 0xa05   :  { %6075 = vrcp.f32 %v3217_v54 }
 0xa06   :  { %6077 = vrcp.f32 %v3219_v27 }
 0xa07   :  { %6079 = vrcp.f32 %v3218_v7 }
 0xa11   :  { %v6074_v46 = vpop.eup %6073 }
 0xa12   :  { %v6076_v12 = vpop.eup %6075  ;;  %v3280_v11 = vmul.f32 %v6074_v46, %v3273_v31 }
 0xa13   :  { %v6078_v55 = vpop.eup %6077  ;;  %v3281_v59 = vmul.f32 %v6076_v12, %v3274_v51 }
 0xa14   :  { %v6080_v15 = vpop.eup %6079  ;;  %3288 = vrot.lane.b32.xlu0 %v3280_v11, %s6368_s1  ;;  %v3283_v6 = vmul.f32 %v6078_v55, %v3275_v35 }
 0xa15   :  { %3290 = vrot.lane.b32.xlu1 %v3281_v59, %s6368_s1  ;;  %v3282_v45 = vmul.f32 %v6080_v15, %v3189_v10  ;;  %v3332_v59 = vrot.slane %v7355_v34, 7 }
 0xa18   :  { %3294 = vrot.lane.b32.xlu0 %v3283_v6, %s6368_s1 }
 0xa19   :  { %3292 = vrot.lane.b32.xlu1 %v3282_v45, %s6368_s1 }
 0xa1c   :  { %3232 = vrot.lane.b32.xlu0 %v3229_v57, %s6369_s21 }
 0xa1d   :  { %3234 = vrot.lane.b32.xlu1 %v3230_v23, %s6369_s21 }
 0xa20   :  { %3238 = vrot.lane.b32.xlu0 %v3231_v17, %s6369_s21 }
 0xa21   :  { %3236 = vrot.lane.b32.xlu1 %v3119_v50, %s6369_s21  ;;  %v3333_v50 = vrot.slane %v7363_v41, 7 }
 0xa86   :  { %v3289_v32 = vpop.permute.xlu0 %3288 }
 0xa87   :  { %v3291_v60 = vpop.permute.xlu1 %3290  ;;  %v3300_v43 = vadd.f32 %v3289_v32, %v7239_v29 }
 0xa88   :  { %v3301_v52 = vadd.f32 %v3291_v60, %v7237_v44 }
 0xa89   :  { %6081 = vtanh.f32 %v3300_v43 }
 0xa8a   :  { %6083 = vtanh.f32 %v3301_v52  ;;  %v3295_v58 = vpop.permute.xlu0 %3294  ;;  %v3334_v52 = vrot.slane %v7366_v62, 7 }
 0xa8b   :  { %v3293_v37 = vpop.permute.xlu1 %3292  ;;  %v3303_v24 = vadd.f32 %v3295_v58, %v7243_v20 }
 0xa8c   :  { %v3302_v19 = vadd.f32 %v3293_v37, %v7245_v2 }
 0xa8d   :  { %6085 = vtanh.f32 %v3303_v24 }
 0xa8e   :  { %6087 = vtanh.f32 %v3302_v19  ;;  %v3233_v39 = vpop.permute.xlu0 %3232 }
 0xa8f   :  { %v3235_v22 = vpop.permute.xlu1 %3234  ;;  %v3244_v4 = vadd.f32 %v3233_v39, %v7239_v29 }
 0xa90   :  { %v3245_v13 = vadd.f32 %v3235_v22, %v7237_v44 }
 0xa91   :  { %v5405_v18 = vmul.f32 -1.442695, %v3244_v4 }
 0xa92   :  { %v3239_v38 = vpop.permute.xlu0 %3238  ;;  %v5406_v0 = vmul.f32 -1.442695, %v3245_v13 }
 0xa93   :  { %v3237_v40 = vpop.permute.xlu1 %3236  ;;  %v3247_v3 = vadd.f32 %v3239_v38, %v7243_v20  ;;  %6089 = vpow2.f32 %v5405_v18 }
 0xa94   :  { %v3246_v26 = vadd.f32 %v3237_v40, %v7245_v2  ;;  %6091 = vpow2.f32 %v5406_v0  ;;  %v7477_v0 = vld [vmem:[#allocation4 + $0x58] sm:$0xff] }
 0xa95   :  { %v5408_v5 = vmul.f32 -1.442695, %v3247_v3  ;;  %v7471_v3 = vld [vmem:[#allocation4 + $0x60] sm:$0xff] }
 0xa96   :  { %v6082_v49 = vpop.eup %6081  ;;  %v5407_v53 = vmul.f32 -1.442695, %v3246_v26  ;;  %v7485_v26 = vld [vmem:[#allocation4 + $0x50] sm:$0xff] }
 0xa97   :  { %v6084_v1 = vpop.eup %6083  ;;  %3316 = vrot.lane.b32.xlu0 %v6082_v49, %s6366_s0  ;;  %6093 = vpow2.f32 %v5408_v5 }
 0xa98   :  { %3318 = vrot.lane.b32.xlu1 %v6084_v1, %s6366_s0  ;;  %6095 = vpow2.f32 %v5407_v53 }
 0xa9a   :  { %v6086_v25 = vpop.eup %6085 }
 0xa9b   :  { %v6088_v30 = vpop.eup %6087  ;;  %3322 = vrot.lane.b32.xlu0 %v6086_v25, %s6366_s0 }
 0xa9c   :  { %3320 = vrot.lane.b32.xlu1 %v6088_v30, %s6366_s0 }
 0xaa0   :  { %v6090_v54 = vpop.eup %6089 }
 0xaa1   :  { %v6092_v7 = vpop.eup %6091  ;;  %v3260_v27 = vadd.f32 1.0, %v6090_v54  ;;  %v7500_v54 = vld [vmem:[#allocation4 + $0x70] ss:$0 sm:$0xff] }
 0xaa2   :  { %v3261_v31 = vadd.f32 1.0, %v6092_v7 }
 0xaa3   :  { %6097 = vrcp.f32 %v3260_v27 }
 0xaa4   :  { %v6094_v10 = vpop.eup %6093  ;;  %6099 = vrcp.f32 %v3261_v31 }
 0xaa5   :  { %v6096_v46 = vpop.eup %6095  ;;  %v3263_v51 = vadd.f32 1.0, %v6094_v10 }
 0xaa6   :  { %v3262_v12 = vadd.f32 1.0, %v6096_v46 }
 0xaa7   :  { %6101 = vrcp.f32 %v3263_v51 }
 0xaa8   :  { %6103 = vrcp.f32 %v3262_v12 }
 0xab0   :  { %v6098_v11 = vpop.eup %6097 }
 0xab1   :  { %v6100_v55 = vpop.eup %6099  ;;  %v3308_v15 = vsub.f32 1.0, %v6098_v11  ;;  %v3339_v17 = vmul.f32 %v6098_v11, %v3332_v59 }
 0xab2   :  { %v3309_v6 = vsub.f32 1.0, %v6100_v55  ;;  %v3340_v60 = vmul.f32 %v6100_v55, %v3333_v50 }
 0xab4   :  { %v6102_v35 = vpop.eup %6101 }
 0xab5   :  { %v6104_v57 = vpop.eup %6103  ;;  %v3311_v37 = vsub.f32 1.0, %v6102_v35  ;;  %v3342_v1 = vmul.f32 %v6102_v35, %v3334_v52 }
 0xab6   :  { %v3310_v34 = vsub.f32 1.0, %v6104_v57  ;;  %v3341_v39 = vmul.f32 %v6104_v57, %v2974_v36  ;;  %v7465_v36 = vld [vmem:[#allocation4 + $0x68] sm:$0xff] }
 0xb09   :  { %v3317_v45 = vpop.permute.xlu0 %3316 }
 0xb0a   :  { %v3319_v23 = vpop.permute.xlu1 %3318  ;;  %v3328_v32 = vmul.f32 %v3317_v45, %v3308_v15 }
 0xb0b   :  { %v3329_v43 = vmul.f32 %v3319_v23, %v3309_v6 }
 0xb0c   :  { %v7439_v58 = vadd.f32 %v3339_v17, %v3328_v32 }
 0xb0d   :  { %v7441_v24 = vadd.f32 %v3340_v60, %v3329_v43  ;;  %v3323_v19 = vpop.permute.xlu0 %3322 }
 0xb0e   :  { %v3351_v49 = vrot.slane %v7439_v58, 2  ;;  %v3321_v41 = vpop.permute.xlu1 %3320  ;;  %v3331_v25 = vmul.f32 %v3323_v19, %v3311_v37 }
 0xb0f   :  { %v3352_v30 = vrot.slane %v7441_v24, 1  ;;  %v3330_v22 = vmul.f32 %v3321_v41, %v3310_v34 }
 0xb10   :  { %v7447_v4 = vadd.f32 %v3342_v1, %v3331_v25 }
 0xb11   :  { %v7449_v62 = vadd.f32 %v3341_v39, %v3330_v22  ;;  %v3353_v13 = vsel %vm1013_vm6, %v3352_v30, %v3351_v49 }
 0xb12   :  { %v3355_v38 = vrot.slane %v7447_v4, 7 }
 0xb13   :  { %v3354_v40 = vsel %vm1015_vm7, %v7449_v62, %v3353_v13 }
 0xb14   :  { %v3356_v18 = vsel %vm1017_vm8, %v3355_v38, %v3354_v40 }
 0xb15   :  { %3357 = vrot.lane.b32.xlu0 %v3356_v18, %s6366_s0 }
 0xb87   :  { %v3358_v9 = vpop.permute.xlu0 %3357 }
 0xb88   :  { %5785 = vmatmul.mubr.msk.f32.vlgmr.msra.gmra.mxu0 %vm751_vm3, %v3358_v9  ;;  %5796 = vmatmul.mubr.msk.f32.vlgmr.msra.gmra.mxu1 %vm751_vm3, %v3358_v9 }
 0xb89   :  { %5799 = vmatpush3.msra.mxu0 %v7170_v14  ;;  %5806 = vmatprep.mubr.msk.f32.mxu0 %vm6367_vm14, %v6364_v8 }
 0xb8a   :  { %5800 = vmatprep.subr.mxu0 %v6364_v8  ;;  %5810 = vmatpush3.msra.mxu1 %v7465_v36 }
 0xb8b   :  { %5801 = vmatpush3.msra.mxu0 %v7172_v61  ;;  %5811 = vmatprep.subr.mxu1 %v6364_v8 }
 0xb8c   :  { %5802 = vmatprep.subr.mxu0 %v6364_v8  ;;  %5812 = vmatpush3.msra.mxu1 %v7471_v3 }
 0xb8d   :  { %5803 = vmatpush3.msra.mxu0 %v7177_v33  ;;  %5813 = vmatprep.subr.mxu1 %v6364_v8 }
 0xb8e   :  { %5804 = vmatprep.subr.mxu0 %v6364_v8  ;;  %5814 = vmatpush3.msra.mxu1 %v7477_v0 }
 0xb8f   :  { %5805 = vmatpush3.msra.mxu0 %v7188_v47  ;;  %5815 = vmatprep.subr.mxu1 %v6364_v8 }
 0xb90   :  { %5807 = vmatmul.mubr.msk.f32.vlgmr.msra.gmra.mxu0 %vm751_vm3, %v3358_v9  ;;  %5820 = vmatprep.subr.mxu0 %v6364_v8 }
 0xb91   :  { %5821 = vmatpush3.msra.mxu0 %v7190_v21  ;;  %5816 = vmatpush3.msra.mxu1 %v7485_v26 }
 0xb92   :  { %5822 = vmatprep.subr.mxu0 %v6364_v8  ;;  %5817 = vmatprep.mubr.msk.f32.mxu1 %vm6367_vm14, %v6364_v8 }
 0xb93   :  { %5823 = vmatpush3.msra.mxu0 %v7198_v48  ;;  %5828 = vmatprep.mubr.msk.f32.mxu0 %vm6367_vm14, %v6364_v8 }
 0xb94   :  { %5824 = vmatprep.subr.mxu0 %v6364_v8  ;;  %5831 = vmatprep.subr.mxu1 %v6364_v8 }
 0xb95   :  { %5825 = vmatpush3.msra.mxu0 %v7202_v42 }
 0xb96   :  { %5826 = vmatprep.subr.mxu0 %v6364_v8 }
 0xb97   :  { %5827 = vmatpush3.msra.mxu0 %v7206_v63 }
 0xb98   :  { %5842 = vmatprep.subr.mxu0 %v6364_v8 }
 0xc48   :  { %v3427_v5 = vpop.f32.mrf.mxu0  ;;  %v3497_v53 = vpop.f32.mrf.mxu1 }
 0xc49   :  { %v3428_v7 = vadd.f32 %v7500_v54, %v3427_v5  ;;  %v3498_v18 = vadd.f32 %v3497_v53, %v7252_v56 }
 0xc4a   :  { %v5786_v27 = vpop.f32.mrf.mxu0  ;;  %v5797_v10 = vpop.f32.mrf.mxu1 }
 0xc4b   :  { %v3572_v31 = vrot.slane %v3428_v7, 5  ;;  %v3573_v46 = vrot.slane %v3428_v7, 6  ;;  %v3574_v51 = vrot.slane %v3428_v7, 7  ;;  %v3582_v12 = vadd.f32 %v3428_v7, %v7243_v20 }
 0xc4c   :  { %v3608_v7 = vrot.slane %v3498_v18, 5  ;;  %v3609_v27 = vrot.slane %v3498_v18, 6  ;;  %v3610_v10 = vrot.slane %v3498_v18, 7 }
 0xc4d   :  { %v3579_v11 = vadd.f32 %v3572_v31, %v7239_v29  ;;  %v3580_v55 = vadd.f32 %v3573_v46, %v7237_v44  ;;  %v3581_v59 = vadd.f32 %v3574_v51, %v7245_v2  ;;  %v5415_v15 = vmul.f32 -1.442695, %v3582_v12 }
 0xc4f   :  { %v5412_v35 = vmul.f32 -1.442695, %v3579_v11  ;;  %v5413_v50 = vmul.f32 -1.442695, %v3580_v55  ;;  %v5414_v6 = vmul.f32 -1.442695, %v3581_v59  ;;  %6105 = vpow2.f32 %v5415_v15 }
 0xc50   :  { %v3567_v45 = vpop.f32.mrf.mxu0 }
 0xc51   :  { %6107 = vpow2.f32 %v5412_v35  ;;  %v3568_v19 = vadd.f32 %v3567_v45, %v7249_v28 }
 0xc52   :  { %6109 = vpow2.f32 %v5413_v50  ;;  %v5808_v57 = vpop.f32.mrf.mxu0 }
 0xc53   :  { %6111 = vpow2.f32 %v5414_v6  ;;  %v3652_v49 = vrot.slane %v3568_v19, 5  ;;  %v3653_v1 = vrot.slane %v3568_v19, 6  ;;  %v3654_v40 = vrot.slane %v3568_v19, 7 }
 0xc5c   :  { %v6106_v23 = vpop.eup %6105 }
 0xc5d   :  { %v3598_v37 = vadd.f32 1.0, %v6106_v23 }
 0xc5e   :  { %v6108_v17 = vpop.eup %6107 }
 0xc5f   :  { %v6110_v32 = vpop.eup %6109  ;;  %v3595_v60 = vadd.f32 1.0, %v6108_v17 }
 0xc60   :  { %v6112_v43 = vpop.eup %6111  ;;  %v3596_v52 = vadd.f32 1.0, %v6110_v32 }
 0xc61   :  { %v3597_v34 = vadd.f32 1.0, %v6112_v43  ;;  %6113 = vrcp.f32 %v3595_v60 }
 0xc62   :  { %6115 = vrcp.f32 %v3596_v52 }
 0xc63   :  { %6117 = vrcp.f32 %v3597_v34 }
 0xc64   :  { %6119 = vrcp.f32 %v3598_v37 }
 0xc6e   :  { %v6114_v41 = vpop.eup %6113 }
 0xc6f   :  { %v6116_v25 = vpop.eup %6115  ;;  %v3659_v30 = vmul.f32 %v6114_v41, %v3652_v49 }
 0xc70   :  { %v6118_v39 = vpop.eup %6117  ;;  %v3660_v22 = vmul.f32 %v6116_v25, %v3653_v1 }
 0xc71   :  { %v6120_v13 = vpop.eup %6119  ;;  %3667 = vrot.lane.b32.xlu1 %v3659_v30, %s6368_s1  ;;  %v3661_v9 = vmul.f32 %v6118_v39, %v3654_v40 }
 0xc72   :  { %3669 = vrot.lane.b32.xlu0 %v3660_v22, %s6368_s1  ;;  %v3662_v5 = vmul.f32 %v6120_v13, %v3568_v19 }
 0xc75   :  { %3671 = vrot.lane.b32.xlu1 %v3661_v9, %s6368_s1 }
 0xc76   :  { %3673 = vrot.lane.b32.xlu0 %v3662_v5, %s6368_s1  ;;  %v3711_v5 = vrot.slane %v7439_v58, 7 }
 0xc79   :  { %3611 = vrot.lane.b32.xlu1 %v3608_v7, %s6369_s21 }
 0xc7a   :  { %3613 = vrot.lane.b32.xlu0 %v3609_v27, %s6369_s21 }
 0xc7d   :  { %3615 = vrot.lane.b32.xlu1 %v3610_v10, %s6369_s21  ;;  %v3712_v10 = vrot.slane %v7441_v24, 7 }
 0xc7e   :  { %3617 = vrot.lane.b32.xlu0 %v3498_v18, %s6369_s21 }
 0xce3   :  { %v3668_v31 = vpop.permute.xlu1 %3667 }
 0xce4   :  { %v3670_v46 = vpop.permute.xlu0 %3669  ;;  %v3679_v53 = vadd.f32 %v3668_v31, %v7239_v29 }
 0xce5   :  { %v3680_v51 = vadd.f32 %v3670_v46, %v7237_v44 }
 0xce6   :  { %6121 = vtanh.f32 %v3679_v53 }
 0xce7   :  { %6123 = vtanh.f32 %v3680_v51  ;;  %v3672_v12 = vpop.permute.xlu1 %3671 }
 0xce8   :  { %v3674_v11 = vpop.permute.xlu0 %3673  ;;  %v3681_v55 = vadd.f32 %v3672_v12, %v7245_v2 }
 0xce9   :  { %v3682_v59 = vadd.f32 %v3674_v11, %v7243_v20 }
 0xcea   :  { %6125 = vtanh.f32 %v3681_v55 }
 0xceb   :  { %6127 = vtanh.f32 %v3682_v59  ;;  %v3612_v45 = vpop.permute.xlu1 %3611 }
 0xcec   :  { %v3614_v57 = vpop.permute.xlu0 %3613  ;;  %v3623_v23 = vadd.f32 %v3612_v45, %v7239_v29 }
 0xced   :  { %v3624_v17 = vadd.f32 %v3614_v57, %v7237_v44 }
 0xcee   :  { %v5416_v43 = vmul.f32 -1.442695, %v3623_v23 }
 0xcef   :  { %v3616_v32 = vpop.permute.xlu1 %3615  ;;  %v5417_v37 = vmul.f32 -1.442695, %v3624_v17 }
 0xcf0   :  { %v3618_v60 = vpop.permute.xlu0 %3617  ;;  %v3625_v52 = vadd.f32 %v3616_v32, %v7245_v2  ;;  %6129 = vpow2.f32 %v5416_v43 }
 0xcf1   :  { %v3626_v34 = vadd.f32 %v3618_v60, %v7243_v20  ;;  %6131 = vpow2.f32 %v5417_v37 }
 0xcf2   :  { %v5418_v19 = vmul.f32 -1.442695, %v3625_v52 }
 0xcf3   :  { %v6122_v15 = vpop.eup %6121  ;;  %v5419_v49 = vmul.f32 -1.442695, %v3626_v34 }
 0xcf4   :  { %v6124_v35 = vpop.eup %6123  ;;  %3695 = vrot.lane.b32.xlu1 %v6122_v15, %s6366_s0  ;;  %6133 = vpow2.f32 %v5418_v19  ;;  %v3713_v15 = vrot.slane %v7449_v62, 7 }
 0xcf5   :  { %3697 = vrot.lane.b32.xlu0 %v6124_v35, %s6366_s0  ;;  %6135 = vpow2.f32 %v5419_v49 }
 0xcf7   :  { %v6126_v50 = vpop.eup %6125 }
 0xcf8   :  { %v6128_v6 = vpop.eup %6127  ;;  %3699 = vrot.lane.b32.xlu1 %v6126_v50, %s6366_s0 }
 0xcf9   :  { %3701 = vrot.lane.b32.xlu0 %v6128_v6, %s6366_s0 }
 0xcfd   :  { %v6130_v41 = vpop.eup %6129 }
 0xcfe   :  { %v6132_v1 = vpop.eup %6131  ;;  %v3639_v25 = vadd.f32 1.0, %v6130_v41 }
 0xcff   :  { %v3640_v39 = vadd.f32 1.0, %v6132_v1 }
 0xd00   :  { %6137 = vrcp.f32 %v3639_v25 }
 0xd01   :  { %v6134_v30 = vpop.eup %6133  ;;  %6139 = vrcp.f32 %v3640_v39 }
 0xd02   :  { %v6136_v22 = vpop.eup %6135  ;;  %v3641_v13 = vadd.f32 1.0, %v6134_v30 }
 0xd03   :  { %v3642_v40 = vadd.f32 1.0, %v6136_v22 }
 0xd04   :  { %6141 = vrcp.f32 %v3641_v13 }
 0xd05   :  { %6143 = vrcp.f32 %v3642_v40 }
 0xd0d   :  { %v6138_v18 = vpop.eup %6137 }
 0xd0e   :  { %v6140_v9 = vpop.eup %6139  ;;  %v3687_v7 = vsub.f32 1.0, %v6138_v18  ;;  %v3718_v12 = vmul.f32 %v6138_v18, %v3711_v5 }
 0xd0f   :  { %v3688_v31 = vsub.f32 1.0, %v6140_v9  ;;  %v3719_v55 = vmul.f32 %v6140_v9, %v3712_v10 }
 0xd11   :  { %v6142_v27 = vpop.eup %6141 }
 0xd12   :  { %v6144_v53 = vpop.eup %6143  ;;  %v3689_v50 = vsub.f32 1.0, %v6142_v27  ;;  %v3720_v23 = vmul.f32 %v6142_v27, %v3713_v15 }
 0xd13   :  { %v3690_v58 = vsub.f32 1.0, %v6144_v53  ;;  %v3721_v62 = vmul.f32 %v6144_v53, %v3355_v38 }
 0xd66   :  { %v3696_v46 = vpop.permute.xlu1 %3695 }
 0xd67   :  { %v3698_v51 = vpop.permute.xlu0 %3697  ;;  %v3707_v11 = vmul.f32 %v3696_v46, %v3687_v7 }
 0xd68   :  { %v3708_v59 = vmul.f32 %v3698_v51, %v3688_v31 }
 0xd69   :  { %v7532_v35 = vadd.f32 %v3718_v12, %v3707_v11 }
 0xd6a   :  { %v7534_v6 = vadd.f32 %v3719_v55, %v3708_v59  ;;  %v3700_v45 = vpop.permute.xlu1 %3699 }
 0xd6b   :  { %v3730_v57 = vrot.slane %v7532_v35, 3  ;;  %v3702_v24 = vpop.permute.xlu0 %3701  ;;  %v3709_v17 = vmul.f32 %v3700_v45, %v3689_v50 }
 0xd6c   :  { %v3731_v32 = vrot.slane %v7534_v6, 2  ;;  %v3710_v60 = vmul.f32 %v3702_v24, %v3690_v58 }
 0xd6d   :  { %v7538_v43 = vadd.f32 %v3720_v23, %v3709_v17 }
 0xd6e   :  { %v3732_v52 = vsel %vm1013_vm6, %v3731_v32, %v3730_v57  ;;  %v7544_v34 = vadd.f32 %v3721_v62, %v3710_v60 }
 0xd6f   :  { %v3733_v37 = vrot.slane %v7538_v43, 1 }
 0xd71   :  { %v3734_v19 = vsel %vm1015_vm7, %v3733_v37, %v3732_v52 }
 0xd72   :  { %v3735_v49 = vsel %vm1017_vm8, %v7544_v34, %v3734_v19 }
 0xd73   :  { %3736 = vrot.lane.b32.xlu1 %v3735_v49, %s6366_s0 }
 0xde5   :  { %v3737_v41 = vpop.permute.xlu1 %3736 }
 0xde6   :  { %5818 = vmatmul.mubr.msk.f32.vlgmr.msra.gmra.mxu1 %vm751_vm3, %v3737_v41  ;;  %5829 = vmatmul.mubr.msk.f32.vlgmr.msra.gmra.mxu0 %vm751_vm3, %v3737_v41 }
 0xde7   :  { %5832 = vmatpush3.msra.mxu1 %v7170_v14  ;;  %5839 = vmatprep.mubr.msk.f32.mxu1 %vm6367_vm14, %v6364_v8 }
 0xde8   :  { %5833 = vmatprep.subr.mxu1 %v6364_v8  ;;  %5843 = vmatpush3.msra.mxu0 %v7465_v36 }
 0xde9   :  { %5834 = vmatpush3.msra.mxu1 %v7172_v61  ;;  %5844 = vmatprep.subr.mxu0 %v6364_v8 }
 0xdea   :  { %5835 = vmatprep.subr.mxu1 %v6364_v8  ;;  %5845 = vmatpush3.msra.mxu0 %v7471_v3 }
 0xdeb   :  { %5836 = vmatpush3.msra.mxu1 %v7177_v33  ;;  %5846 = vmatprep.subr.mxu0 %v6364_v8 }
 0xdec   :  { %5837 = vmatprep.subr.mxu1 %v6364_v8  ;;  %5847 = vmatpush3.msra.mxu0 %v7477_v0 }
 0xded   :  { %5838 = vmatpush3.msra.mxu1 %v7188_v47  ;;  %5848 = vmatprep.subr.mxu0 %v6364_v8 }
 0xdee   :  { %5840 = vmatmul.mubr.msk.f32.vlgmr.msra.gmra.mxu1 %vm751_vm3, %v3737_v41  ;;  %5853 = vmatprep.subr.mxu1 %v6364_v8 }
 0xdef   :  { %5854 = vmatpush3.msra.mxu1 %v7190_v21  ;;  %5849 = vmatpush3.msra.mxu0 %v7485_v26 }
 0xdf0   :  { %5855 = vmatprep.subr.mxu1 %v6364_v8  ;;  %5850 = vmatprep.mubr.msk.f32.mxu0 %vm6367_vm14, %v6364_v8 }
 0xdf1   :  { %5856 = vmatpush3.msra.mxu1 %v7198_v48  ;;  %5861 = vmatprep.mubr.msk.f32.mxu1 %vm6367_vm14, %v6364_v8 }
 0xdf2   :  { %5857 = vmatprep.subr.mxu1 %v6364_v8  ;;  %5864 = vmatprep.subr.mxu0 %v6364_v8 }
 0xdf3   :  { %5858 = vmatpush3.msra.mxu1 %v7202_v42 }
 0xdf4   :  { %5859 = vmatprep.subr.mxu1 %v6364_v8 }
 0xdf5   :  { %5860 = vmatpush3.msra.mxu1 %v7206_v63 }
 0xdf6   :  { %5875 = vmatprep.subr.mxu1 %v6364_v8 }
 0xea6   :  { %v3806_v4 = vpop.f32.mrf.mxu1  ;;  %v3876_v38 = vpop.f32.mrf.mxu0 }
 0xea7   :  { %v3807_v1 = vadd.f32 %v7500_v54, %v3806_v4  ;;  %v3877_v41 = vadd.f32 %v3876_v38, %v7252_v56 }
 0xea8   :  { %v5819_v25 = vpop.f32.mrf.mxu1  ;;  %v5830_v30 = vpop.f32.mrf.mxu0 }
 0xea9   :  { %v3951_v39 = vrot.slane %v3807_v1, 4  ;;  %v3952_v22 = vrot.slane %v3807_v1, 5  ;;  %v3953_v13 = vrot.slane %v3807_v1, 6  ;;  %v3954_v40 = vrot.slane %v3807_v1, 7 }
 0xeaa   :  { %v3988_v25 = vrot.slane %v3877_v41, 4  ;;  %v3989_v30 = vrot.slane %v3877_v41, 5 }
 0xeab   :  { %v3959_v18 = vadd.f32 %v3951_v39, %v7239_v29  ;;  %v3960_v9 = vadd.f32 %v3952_v22, %v7237_v44  ;;  %v3961_v5 = vadd.f32 %v3953_v13, %v7245_v2  ;;  %v3962_v7 = vadd.f32 %v3954_v40, %v7243_v20 }
 0xeac   :  { %v3990_v39 = vrot.slane %v3877_v41, 6  ;;  %v3991_v22 = vrot.slane %v3877_v41, 7 }
 0xead   :  { %v5423_v27 = vmul.f32 -1.442695, %v3959_v18  ;;  %v5424_v10 = vmul.f32 -1.442695, %v3960_v9  ;;  %v5425_v31 = vmul.f32 -1.442695, %v3961_v5 }
 0xeae   :  { %v5426_v46 = vmul.f32 -1.442695, %v3962_v7  ;;  %v3946_v53 = vpop.f32.mrf.mxu1 }
 0xeaf   :  { %6145 = vpow2.f32 %v5423_v27  ;;  %v3947_v57 = vadd.f32 %v3946_v53, %v7249_v28 }
 0xeb0   :  { %6147 = vpow2.f32 %v5424_v10  ;;  %v5841_v51 = vpop.f32.mrf.mxu1 }
 0xeb1   :  { %6149 = vpow2.f32 %v5425_v31  ;;  %v4033_v24 = vrot.slane %v3947_v57, 4  ;;  %v4034_v17 = vrot.slane %v3947_v57, 5  ;;  %v4035_v19 = vrot.slane %v3947_v57, 6 }
 0xeb2   :  { %6151 = vpow2.f32 %v5426_v46  ;;  %v4036_v49 = vrot.slane %v3947_v57, 7 }
 0xebc   :  { %v6146_v12 = vpop.eup %6145 }
 0xebd   :  { %v6148_v11 = vpop.eup %6147  ;;  %v3975_v55 = vadd.f32 1.0, %v6146_v12 }
 0xebe   :  { %v6150_v59 = vpop.eup %6149  ;;  %v3976_v15 = vadd.f32 1.0, %v6148_v11 }
 0xebf   :  { %v6152_v50 = vpop.eup %6151  ;;  %v3977_v58 = vadd.f32 1.0, %v6150_v59  ;;  %6153 = vrcp.f32 %v3975_v55 }
 0xec0   :  { %v3978_v45 = vadd.f32 1.0, %v6152_v50  ;;  %6155 = vrcp.f32 %v3976_v15 }
 0xec1   :  { %6157 = vrcp.f32 %v3977_v58 }
 0xec2   :  { %6159 = vrcp.f32 %v3978_v45 }
 0xecc   :  { %v6154_v23 = vpop.eup %6153 }
 0xecd   :  { %v6156_v32 = vpop.eup %6155  ;;  %v4041_v60 = vmul.f32 %v6154_v23, %v4033_v24 }
 0xece   :  { %v6158_v62 = vpop.eup %6157  ;;  %v4042_v52 = vmul.f32 %v6156_v32, %v4034_v17 }
 0xecf   :  { %v6160_v37 = vpop.eup %6159  ;;  %4049 = vrot.lane.b32.xlu0 %v4041_v60, %s6368_s1  ;;  %v4043_v4 = vmul.f32 %v6158_v62, %v4035_v19 }
 0xed0   :  { %4051 = vrot.lane.b32.xlu1 %v4042_v52, %s6368_s1  ;;  %v4044_v1 = vmul.f32 %v6160_v37, %v4036_v49 }
 0xed3   :  { %4053 = vrot.lane.b32.xlu0 %v4043_v4, %s6368_s1 }
 0xed4   :  { %4055 = vrot.lane.b32.xlu1 %v4044_v1, %s6368_s1  ;;  %v4093_v1 = vrot.slane %v7532_v35, 7 }
 0xed7   :  { %3992 = vrot.lane.b32.xlu0 %v3988_v25, %s6369_s21 }
 0xed8   :  { %3994 = vrot.lane.b32.xlu1 %v3989_v30, %s6369_s21 }
 0xedb   :  { %3996 = vrot.lane.b32.xlu0 %v3990_v39, %s6369_s21  ;;  %v4094_v39 = vrot.slane %v7534_v6, 7 }
 0xedc   :  { %3998 = vrot.lane.b32.xlu1 %v3991_v22, %s6369_s21 }
 0xf41   :  { %v4050_v13 = vpop.permute.xlu0 %4049 }
 0xf42   :  { %v4052_v38 = vpop.permute.xlu1 %4051  ;;  %v4061_v40 = vadd.f32 %v4050_v13, %v7239_v29 }
 0xf43   :  { %v4062_v18 = vadd.f32 %v4052_v38, %v7237_v44 }
 0xf44   :  { %6161 = vtanh.f32 %v4061_v40 }
 0xf45   :  { %6163 = vtanh.f32 %v4062_v18  ;;  %v4054_v9 = vpop.permute.xlu0 %4053 }
 0xf46   :  { %v4056_v5 = vpop.permute.xlu1 %4055  ;;  %v4063_v7 = vadd.f32 %v4054_v9, %v7245_v2 }
 0xf47   :  { %v4064_v27 = vadd.f32 %v4056_v5, %v7243_v20 }
 0xf48   :  { %6165 = vtanh.f32 %v4063_v7 }
 0xf49   :  { %6167 = vtanh.f32 %v4064_v27  ;;  %v3993_v51 = vpop.permute.xlu0 %3992  ;;  %v4095_v27 = vrot.slane %v7538_v43, 7 }
 0xf4a   :  { %v3995_v12 = vpop.permute.xlu1 %3994  ;;  %v4004_v11 = vadd.f32 %v3993_v51, %v7239_v29 }
 0xf4b   :  { %v4005_v55 = vadd.f32 %v3995_v12, %v7237_v44 }
 0xf4c   :  { %v5427_v50 = vmul.f32 -1.442695, %v4004_v11 }
 0xf4d   :  { %v3997_v59 = vpop.permute.xlu0 %3996  ;;  %v5428_v45 = vmul.f32 -1.442695, %v4005_v55 }
 0xf4e   :  { %v3999_v15 = vpop.permute.xlu1 %3998  ;;  %v4006_v58 = vadd.f32 %v3997_v59, %v7245_v2  ;;  %6169 = vpow2.f32 %v5427_v50 }
 0xf4f   :  { %v4007_v57 = vadd.f32 %v3999_v15, %v7243_v20  ;;  %6171 = vpow2.f32 %v5428_v45 }
 0xf50   :  { %v5429_v24 = vmul.f32 -1.442695, %v4006_v58 }
 0xf51   :  { %v6162_v10 = vpop.eup %6161  ;;  %v5430_v23 = vmul.f32 -1.442695, %v4007_v57 }
 0xf52   :  { %v6164_v31 = vpop.eup %6163  ;;  %4077 = vrot.lane.b32.xlu0 %v6162_v10, %s6366_s0  ;;  %6173 = vpow2.f32 %v5429_v24 }
 0xf53   :  { %4079 = vrot.lane.b32.xlu1 %v6164_v31, %s6366_s0  ;;  %6175 = vpow2.f32 %v5430_v23 }
 0xf55   :  { %v6166_v46 = vpop.eup %6165 }
 0xf56   :  { %v6168_v53 = vpop.eup %6167  ;;  %4081 = vrot.lane.b32.xlu0 %v6166_v46, %s6366_s0  ;;  %v4096_v46 = vrot.slane %v7544_v34, 7 }
 0xf57   :  { %4083 = vrot.lane.b32.xlu1 %v6168_v53, %s6366_s0 }
 0xf5b   :  { %v6170_v17 = vpop.eup %6169 }
 0xf5c   :  { %v6172_v32 = vpop.eup %6171  ;;  %v4020_v60 = vadd.f32 1.0, %v6170_v17 }
 0xf5d   :  { %v4021_v52 = vadd.f32 1.0, %v6172_v32 }
 0xf5e   :  { %6177 = vrcp.f32 %v4020_v60 }
 0xf5f   :  { %v6174_v62 = vpop.eup %6173  ;;  %6179 = vrcp.f32 %v4021_v52 }
 0xf60   :  { %v6176_v37 = vpop.eup %6175  ;;  %v4022_v19 = vadd.f32 1.0, %v6174_v62 }
 0xf61   :  { %v4023_v49 = vadd.f32 1.0, %v6176_v37 }
 0xf62   :  { %6181 = vrcp.f32 %v4022_v19 }
 0xf63   :  { %6183 = vrcp.f32 %v4023_v49 }
 0xf6b   :  { %v6178_v41 = vpop.eup %6177 }
 0xf6c   :  { %v6180_v4 = vpop.eup %6179  ;;  %v4069_v25 = vsub.f32 1.0, %v6178_v41  ;;  %v4101_v18 = vmul.f32 %v6178_v41, %v4093_v1 }
 0xf6d   :  { %v4070_v22 = vsub.f32 1.0, %v6180_v4  ;;  %v4102_v5 = vmul.f32 %v6180_v4, %v4094_v39 }
 0xf6f   :  { %v6182_v30 = vpop.eup %6181 }
 0xf70   :  { %v6184_v38 = vpop.eup %6183  ;;  %v4071_v31 = vsub.f32 1.0, %v6182_v30  ;;  %v4103_v11 = vmul.f32 %v6182_v30, %v4095_v27 }
 0xf71   :  { %v4072_v53 = vsub.f32 1.0, %v6184_v38  ;;  %v4104_v15 = vmul.f32 %v6184_v38, %v4096_v46 }
 0xfc4   :  { %v4078_v13 = vpop.permute.xlu0 %4077 }
 0xfc5   :  { %v4080_v40 = vpop.permute.xlu1 %4079  ;;  %v4089_v9 = vmul.f32 %v4078_v13, %v4069_v25 }
 0xfc6   :  { %v4090_v7 = vmul.f32 %v4080_v40, %v4070_v22 }
 0xfc7   :  { %v7613_v10 = vadd.f32 %v4101_v18, %v4089_v9 }
 0xfc8   :  { %v7616_v35 = vadd.f32 %v4102_v5, %v4090_v7  ;;  %v4082_v51 = vpop.permute.xlu0 %4081 }
 0xfc9   :  { %v4113_v6 = vrot.slane %v7613_v10, 4  ;;  %v4084_v12 = vpop.permute.xlu1 %4083  ;;  %v4091_v55 = vmul.f32 %v4082_v51, %v4071_v31 }
 0xfca   :  { %v4114_v59 = vrot.slane %v7616_v35, 3  ;;  %v4092_v50 = vmul.f32 %v4084_v12, %v4072_v53 }
 0xfcb   :  { %v7620_v58 = vadd.f32 %v4103_v11, %v4091_v55 }
 0xfcc   :  { %v7622_v43 = vadd.f32 %v4104_v15, %v4092_v50  ;;  %v4115_v45 = vsel %vm1013_vm6, %v4114_v59, %v4113_v6 }
 0xfcd   :  { %v4116_v34 = vrot.slane %v7620_v58, 2 }
 0xfce   :  { %v4118_v57 = vrot.slane %v7622_v43, 1 }
 0xfcf   :  { %v4117_v24 = vsel %vm1015_vm7, %v4116_v34, %v4115_v45 }
 0xfd0   :  { %v4119_v23 = vsel %vm1017_vm8, %v4118_v57, %v4117_v24 }
 0xfd1   :  { %4120 = vrot.lane.b32.xlu0 %v4119_v23, %s6366_s0 }
0x1043   :  { %v4121_v17 = vpop.permute.xlu0 %4120 }
0x1044   :  { %5851 = vmatmul.mubr.msk.f32.vlgmr.msra.gmra.mxu0 %vm751_vm3, %v4121_v17  ;;  %5862 = vmatmul.mubr.msk.f32.vlgmr.msra.gmra.mxu1 %vm751_vm3, %v4121_v17 }
0x1045   :  { %5865 = vmatpush3.msra.mxu0 %v7170_v14  ;;  %5872 = vmatprep.mubr.msk.f32.mxu0 %vm6367_vm14, %v6364_v8 }
0x1046   :  { %5866 = vmatprep.subr.mxu0 %v6364_v8  ;;  %5876 = vmatpush3.msra.mxu1 %v7465_v36 }
0x1047   :  { %5867 = vmatpush3.msra.mxu0 %v7172_v61  ;;  %5877 = vmatprep.subr.mxu1 %v6364_v8 }
0x1048   :  { %5868 = vmatprep.subr.mxu0 %v6364_v8  ;;  %5878 = vmatpush3.msra.mxu1 %v7471_v3 }
0x1049   :  { %5869 = vmatpush3.msra.mxu0 %v7177_v33  ;;  %5879 = vmatprep.subr.mxu1 %v6364_v8 }
0x104a   :  { %5870 = vmatprep.subr.mxu0 %v6364_v8  ;;  %5880 = vmatpush3.msra.mxu1 %v7477_v0 }
0x104b   :  { %5871 = vmatpush3.msra.mxu0 %v7188_v47  ;;  %5881 = vmatprep.subr.mxu1 %v6364_v8 }
0x104c   :  { %5873 = vmatmul.mubr.msk.f32.vlgmr.msra.gmra.mxu0 %vm751_vm3, %v4121_v17  ;;  %5886 = vmatprep.subr.mxu0 %v6364_v8 }
0x104d   :  { %5887 = vmatpush3.msra.mxu0 %v7190_v21  ;;  %5882 = vmatpush3.msra.mxu1 %v7485_v26 }
0x104e   :  { %5888 = vmatprep.subr.mxu0 %v6364_v8  ;;  %5883 = vmatprep.mubr.msk.f32.mxu1 %vm6367_vm14, %v6364_v8 }
0x104f   :  { %5889 = vmatpush3.msra.mxu0 %v7198_v48  ;;  %5894 = vmatprep.mubr.msk.f32.mxu0 %vm6367_vm14, %v6364_v8 }
0x1050   :  { %5890 = vmatprep.subr.mxu0 %v6364_v8  ;;  %5897 = vmatprep.subr.mxu1 %v6364_v8 }
0x1051   :  { %5891 = vmatpush3.msra.mxu0 %v7202_v42 }
0x1052   :  { %5892 = vmatprep.subr.mxu0 %v6364_v8 }
0x1053   :  { %5893 = vmatpush3.msra.mxu0 %v7206_v63 }
0x1054   :  { %5908 = vmatprep.subr.mxu0 %v6364_v8 }
0x1104   :  { %v4190_v36 = vpop.f32.mrf.mxu0  ;;  %v4260_v3 = vpop.f32.mrf.mxu1 }
0x1105   :  { %v4191_v0 = vadd.f32 %v7500_v54, %v4190_v36  ;;  %v4261_v45 = vadd.f32 %v4260_v3, %v7252_v56 }
0x1106   :  { %v5852_v26 = vpop.f32.mrf.mxu0  ;;  %v5863_v32 = vpop.f32.mrf.mxu1 }
0x1107   :  { %v4335_v60 = vrot.slane %v4191_v0, 3  ;;  %v4336_v62 = vrot.slane %v4191_v0, 4  ;;  %v4337_v52 = vrot.slane %v4191_v0, 5  ;;  %v4338_v37 = vrot.slane %v4191_v0, 6 }
0x1108   :  { %v4372_v24 = vrot.slane %v4261_v45, 3  ;;  %v4373_v23 = vrot.slane %v4261_v45, 4  ;;  %v4374_v17 = vrot.slane %v4261_v45, 5  ;;  %v4375_v36 = vrot.slane %v4261_v45, 6 }
0x1109   :  { %v4343_v19 = vadd.f32 %v4335_v60, %v7239_v29  ;;  %v4344_v49 = vadd.f32 %v4336_v62, %v7237_v44  ;;  %v4345_v41 = vadd.f32 %v4337_v52, %v7245_v2  ;;  %v4346_v4 = vadd.f32 %v4338_v37, %v7243_v20 }
0x110a   :  { %v4478_v45 = vrot.slane %v7616_v35, 7 }
0x110b   :  { %v5434_v1 = vmul.f32 -1.442695, %v4343_v19  ;;  %v5435_v25 = vmul.f32 -1.442695, %v4344_v49  ;;  %v5436_v30 = vmul.f32 -1.442695, %v4345_v41 }
0x110c   :  { %v5437_v39 = vmul.f32 -1.442695, %v4346_v4  ;;  %v4330_v22 = vpop.f32.mrf.mxu0 }
0x110d   :  { %6185 = vpow2.f32 %v5434_v1  ;;  %v4331_v31 = vadd.f32 %v4330_v22, %v7249_v28 }
0x110e   :  { %6187 = vpow2.f32 %v5435_v25  ;;  %v5874_v54 = vpop.f32.mrf.mxu0 }
0x110f   :  { %6189 = vpow2.f32 %v5436_v30  ;;  %v4417_v46 = vrot.slane %v4331_v31, 3  ;;  %v4418_v51 = vrot.slane %v4331_v31, 4  ;;  %v4419_v15 = vrot.slane %v4331_v31, 5 }
0x1110   :  { %6191 = vpow2.f32 %v5437_v39  ;;  %v4420_v50 = vrot.slane %v4331_v31, 6 }
0x111a   :  { %v6186_v13 = vpop.eup %6185 }
0x111b   :  { %v6188_v38 = vpop.eup %6187  ;;  %v4359_v40 = vadd.f32 1.0, %v6186_v13 }
0x111c   :  { %v6190_v18 = vpop.eup %6189  ;;  %v4360_v9 = vadd.f32 1.0, %v6188_v38 }
0x111d   :  { %v6192_v5 = vpop.eup %6191  ;;  %v4361_v7 = vadd.f32 1.0, %v6190_v18  ;;  %6193 = vrcp.f32 %v4359_v40 }
0x111e   :  { %v4362_v27 = vadd.f32 1.0, %v6192_v5  ;;  %6195 = vrcp.f32 %v4360_v9 }
0x111f   :  { %6197 = vrcp.f32 %v4361_v7 }
0x1120   :  { %6199 = vrcp.f32 %v4362_v27 }
0x112a   :  { %v6194_v53 = vpop.eup %6193 }
0x112b   :  { %v6196_v6 = vpop.eup %6195  ;;  %v4425_v12 = vmul.f32 %v6194_v53, %v4417_v46 }
0x112c   :  { %v6198_v11 = vpop.eup %6197  ;;  %v4426_v55 = vmul.f32 %v6196_v6, %v4418_v51 }
0x112d   :  { %v6200_v59 = vpop.eup %6199  ;;  %4433 = vrot.lane.b32.xlu1 %v4425_v12, %s6368_s1  ;;  %v4427_v34 = vmul.f32 %v6198_v11, %v4419_v15 }
0x112e   :  { %4435 = vrot.lane.b32.xlu0 %v4426_v55, %s6368_s1  ;;  %v4428_v57 = vmul.f32 %v6200_v59, %v4420_v50  ;;  %v4477_v59 = vrot.slane %v7613_v10, 7 }
0x1131   :  { %4437 = vrot.lane.b32.xlu1 %v4427_v34, %s6368_s1 }
0x1132   :  { %4439 = vrot.lane.b32.xlu0 %v4428_v57, %s6368_s1 }
0x1135   :  { %4376 = vrot.lane.b32.xlu1 %v4372_v24, %s6369_s21 }
0x1136   :  { %4378 = vrot.lane.b32.xlu0 %v4373_v23, %s6369_s21 }
0x1139   :  { %4380 = vrot.lane.b32.xlu1 %v4374_v17, %s6369_s21 }
0x113a   :  { %4382 = vrot.lane.b32.xlu0 %v4375_v36, %s6369_s21 }
0x119f   :  { %v4434_v0 = vpop.permute.xlu1 %4433 }
0x11a0   :  { %v4436_v3 = vpop.permute.xlu0 %4435  ;;  %v4445_v26 = vadd.f32 %v4434_v0, %v7239_v29 }
0x11a1   :  { %v4446_v32 = vadd.f32 %v4436_v3, %v7237_v44 }
0x11a2   :  { %6201 = vtanh.f32 %v4445_v26  ;;  %v4479_v26 = vrot.slane %v7620_v58, 7 }
0x11a3   :  { %6203 = vtanh.f32 %v4446_v32  ;;  %v4438_v60 = vpop.permute.xlu1 %4437 }
0x11a4   :  { %v4440_v62 = vpop.permute.xlu0 %4439  ;;  %v4447_v52 = vadd.f32 %v4438_v60, %v7245_v2 }
0x11a5   :  { %v4448_v37 = vadd.f32 %v4440_v62, %v7243_v20  ;;  %v4480_v62 = vrot.slane %v7622_v43, 7 }
0x11a6   :  { %6205 = vtanh.f32 %v4447_v52 }
0x11a7   :  { %6207 = vtanh.f32 %v4448_v37  ;;  %v4377_v1 = vpop.permute.xlu1 %4376 }
0x11a8   :  { %v4379_v25 = vpop.permute.xlu0 %4378  ;;  %v4388_v30 = vadd.f32 %v4377_v1, %v7239_v29 }
0x11a9   :  { %v4389_v39 = vadd.f32 %v4379_v25, %v7237_v44 }
0x11aa   :  { %v5438_v13 = vmul.f32 -1.442695, %v4388_v30 }
0x11ab   :  { %v4381_v22 = vpop.permute.xlu1 %4380  ;;  %v5439_v40 = vmul.f32 -1.442695, %v4389_v39 }
0x11ac   :  { %v4383_v54 = vpop.permute.xlu0 %4382  ;;  %v4390_v38 = vadd.f32 %v4381_v22, %v7245_v2  ;;  %6209 = vpow2.f32 %v5438_v13 }
0x11ad   :  { %v4391_v18 = vadd.f32 %v4383_v54, %v7243_v20  ;;  %6211 = vpow2.f32 %v5439_v40  ;;  %v6311_v40 = vld [vmem:[#allocation4 + $0x68] sm:$0xff] }
0x11ae   :  { %v5440_v9 = vmul.f32 -1.442695, %v4390_v38 }
0x11af   :  { %v6202_v19 = vpop.eup %6201  ;;  %v5441_v5 = vmul.f32 -1.442695, %v4391_v18  ;;  %v6312_v18 = vld [vmem:[#allocation4 + $0x60] sm:$0xff] }
0x11b0   :  { %v6204_v49 = vpop.eup %6203  ;;  %4461 = vrot.lane.b32.xlu1 %v6202_v19, %s6366_s0  ;;  %6213 = vpow2.f32 %v5440_v9  ;;  %v6313_v9 = vld [vmem:[#allocation4 + $0x58] sm:$0xff] }
0x11b1   :  { %4463 = vrot.lane.b32.xlu0 %v6204_v49, %s6366_s0  ;;  %6215 = vpow2.f32 %v5441_v5  ;;  %v6314_v5 = vld [vmem:[#allocation4 + $0x50] sm:$0xff] }
0x11b3   :  { %v6206_v41 = vpop.eup %6205 }
0x11b4   :  { %v6208_v4 = vpop.eup %6207  ;;  %4465 = vrot.lane.b32.xlu1 %v6206_v41, %s6366_s0 }
0x11b5   :  { %4467 = vrot.lane.b32.xlu0 %v6208_v4, %s6366_s0 }
0x11b9   :  { %v6210_v7 = vpop.eup %6209 }
0x11ba   :  { %v6212_v27 = vpop.eup %6211  ;;  %v4404_v31 = vadd.f32 1.0, %v6210_v7 }
0x11bb   :  { %v4405_v53 = vadd.f32 1.0, %v6212_v27  ;;  %v7738_v27 = vld [vmem:[#allocation4 + $0x70] ss:$0 sm:$0xff] }
0x11bc   :  { %6217 = vrcp.f32 %v4404_v31 }
0x11bd   :  { %v6214_v46 = vpop.eup %6213  ;;  %6219 = vrcp.f32 %v4405_v53 }
0x11be   :  { %v6216_v51 = vpop.eup %6215  ;;  %v4406_v6 = vadd.f32 1.0, %v6214_v46 }
0x11bf   :  { %v4407_v12 = vadd.f32 1.0, %v6216_v51 }
0x11c0   :  { %6221 = vrcp.f32 %v4406_v6 }
0x11c1   :  { %6223 = vrcp.f32 %v4407_v12 }
0x11c9   :  { %v6218_v11 = vpop.eup %6217 }
0x11ca   :  { %v6220_v55 = vpop.eup %6219  ;;  %v4453_v15 = vsub.f32 1.0, %v6218_v11  ;;  %v4485_v17 = vmul.f32 %v6218_v11, %v4477_v59 }
0x11cb   :  { %v4454_v34 = vsub.f32 1.0, %v6220_v55  ;;  %v4486_v0 = vmul.f32 %v6220_v55, %v4478_v45 }
0x11cd   :  { %v6222_v50 = vpop.eup %6221 }
0x11ce   :  { %v6224_v24 = vpop.eup %6223  ;;  %v4455_v60 = vsub.f32 1.0, %v6222_v50  ;;  %v4487_v49 = vmul.f32 %v6222_v50, %v4479_v26 }
0x11cf   :  { %v4456_v52 = vsub.f32 1.0, %v6224_v24  ;;  %v4488_v1 = vmul.f32 %v6224_v24, %v4480_v62 }
0x1222   :  { %v4462_v57 = vpop.permute.xlu1 %4461 }
0x1223   :  { %v4464_v23 = vpop.permute.xlu0 %4463  ;;  %v4473_v36 = vmul.f32 %v4462_v57, %v4453_v15 }
0x1224   :  { %v4474_v3 = vmul.f32 %v4464_v23, %v4454_v34 }
0x1225   :  { %v7693_v32 = vadd.f32 %v4485_v17, %v4473_v36 }
0x1226   :  { %v7696_v10 = vadd.f32 %v4486_v0, %v4474_v3  ;;  %v4466_v37 = vpop.permute.xlu1 %4465 }
0x1227   :  { %v4497_v35 = vrot.slane %v7693_v32, 5  ;;  %v4468_v19 = vpop.permute.xlu0 %4467  ;;  %v4475_v41 = vmul.f32 %v4466_v37, %v4455_v60 }
0x1228   :  { %v4498_v4 = vrot.slane %v7696_v10, 4  ;;  %v4476_v25 = vmul.f32 %v4468_v19, %v4456_v52 }
0x1229   :  { %v7700_v30 = vadd.f32 %v4487_v49, %v4475_v41 }
0x122a   :  { %v7702_v58 = vadd.f32 %v4488_v1, %v4476_v25  ;;  %v4499_v39 = vsel %vm1013_vm6, %v4498_v4, %v4497_v35 }
0x122b   :  { %v4500_v43 = vrot.slane %v7700_v30, 3 }
0x122c   :  { %v4502_v22 = vrot.slane %v7702_v58, 2 }
0x122d   :  { %v4501_v54 = vsel %vm1015_vm7, %v4500_v43, %v4499_v39 }
0x122e   :  { %v4503_v13 = vsel %vm1017_vm8, %v4502_v22, %v4501_v54 }
0x122f   :  { %4504 = vrot.lane.b32.xlu1 %v4503_v13, %s6366_s0 }
0x12a1   :  { %v4505_v38 = vpop.permute.xlu1 %4504 }
0x12a2   :  { %5884 = vmatmul.mubr.msk.f32.vlgmr.msra.gmra.mxu1 %vm751_vm3, %v4505_v38  ;;  %5895 = vmatmul.mubr.msk.f32.vlgmr.msra.gmra.mxu0 %vm751_vm3, %v4505_v38 }
0x12a3   :  { %5898 = vmatpush3.msra.mxu1 %v7170_v14  ;;  %5905 = vmatprep.mubr.msk.f32.mxu1 %vm6367_vm14, %v6364_v8 }
0x12a4   :  { %5899 = vmatprep.subr.mxu1 %v6364_v8  ;;  %5909 = vmatpush3.msra.mxu0 %v6311_v40 }
0x12a5   :  { %5900 = vmatpush3.msra.mxu1 %v7172_v61  ;;  %5910 = vmatprep.subr.mxu0 %v6364_v8 }
0x12a6   :  { %5901 = vmatprep.subr.mxu1 %v6364_v8  ;;  %5911 = vmatpush3.msra.mxu0 %v6312_v18 }
0x12a7   :  { %5902 = vmatpush3.msra.mxu1 %v7177_v33  ;;  %5912 = vmatprep.subr.mxu0 %v6364_v8 }
0x12a8   :  { %5903 = vmatprep.subr.mxu1 %v6364_v8  ;;  %5913 = vmatpush3.msra.mxu0 %v6313_v9 }
0x12a9   :  { %5904 = vmatpush3.msra.mxu1 %v7188_v47  ;;  %5914 = vmatprep.subr.mxu0 %v6364_v8 }
0x12aa   :  { %5906 = vmatmul.mubr.msk.f32.vlgmr.msra.gmra.mxu1 %vm751_vm3, %v4505_v38  ;;  %5919 = vmatprep.subr.mxu1 %v6364_v8 }
0x12ab   :  { %5920 = vmatpush3.msra.mxu1 %v7190_v21  ;;  %5915 = vmatpush3.msra.mxu0 %v6314_v5 }
0x12ac   :  { %5921 = vmatprep.subr.mxu1 %v6364_v8  ;;  %5916 = vmatprep.mubr.msk.f32.mxu0 %vm6367_vm14, %v6364_v8 }
0x12ad   :  { %5922 = vmatpush3.msra.mxu1 %v7198_v48  ;;  %5927 = vmatprep.mubr.msk.f32.mxu1 %vm6367_vm14, %v6364_v8 }
0x12ae   :  { %5923 = vmatprep.subr.mxu1 %v6364_v8  ;;  %5930 = vmatprep.subr.mxu0 %v6364_v8 }
0x12af   :  { %5924 = vmatpush3.msra.mxu1 %v7202_v42 }
0x12b0   :  { %5925 = vmatprep.subr.mxu1 %v6364_v8 }
0x12b1   :  { %5926 = vmatpush3.msra.mxu1 %v7206_v63 }
0x1362   :  { %v4574_v21 = vpop.f32.mrf.mxu1  ;;  %v4644_v7 = vpop.f32.mrf.mxu0 }
0x1363   :  { %v4575_v31 = vadd.f32 %v7738_v27, %v4574_v21  ;;  %v4645_v43 = vadd.f32 %v4644_v7, %v7252_v56 }
0x1364   :  { %v5885_v48 = vpop.f32.mrf.mxu1  ;;  %v5896_v46 = vpop.f32.mrf.mxu0 }
0x1365   :  { %v4719_v53 = vrot.slane %v4575_v31, 2  ;;  %v4720_v51 = vrot.slane %v4575_v31, 3  ;;  %v4721_v6 = vrot.slane %v4575_v31, 4  ;;  %v4722_v12 = vrot.slane %v4575_v31, 5 }
0x1366   :  { %v4756_v13 = vrot.slane %v4645_v43, 2  ;;  %v4757_v38 = vrot.slane %v4645_v43, 3  ;;  %v4758_v40 = vrot.slane %v4645_v43, 4  ;;  %v4759_v18 = vrot.slane %v4645_v43, 5 }
0x1367   :  { %v4727_v11 = vadd.f32 %v4719_v53, %v7239_v29  ;;  %v4728_v42 = vadd.f32 %v4720_v51, %v7237_v44  ;;  %v4729_v55 = vadd.f32 %v4721_v6, %v7245_v2  ;;  %v4730_v63 = vadd.f32 %v4722_v12, %v7243_v20 }
0x1369   :  { %v5445_v59 = vmul.f32 -1.442695, %v4727_v11  ;;  %v5446_v15 = vmul.f32 -1.442695, %v4728_v42  ;;  %v5447_v50 = vmul.f32 -1.442695, %v4729_v55 }
0x136a   :  { %v5448_v45 = vmul.f32 -1.442695, %v4730_v63  ;;  %v4714_v34 = vpop.f32.mrf.mxu1 }
0x136b   :  { %6225 = vpow2.f32 %v5445_v59  ;;  %v4715_v62 = vadd.f32 %v4714_v34, %v7249_v28 }
0x136c   :  { %6227 = vpow2.f32 %v5446_v15  ;;  %v5907_v57 = vpop.f32.mrf.mxu1 }
0x136d   :  { %6229 = vpow2.f32 %v5447_v50  ;;  %v4801_v52 = vrot.slane %v4715_v62, 2  ;;  %v4802_v35 = vrot.slane %v4715_v62, 3  ;;  %v4803_v25 = vrot.slane %v4715_v62, 4 }
0x136e   :  { %6231 = vpow2.f32 %v5448_v45  ;;  %v4804_v39 = vrot.slane %v4715_v62, 5 }
0x1378   :  { %v6226_v24 = vpop.eup %6225 }
0x1379   :  { %v6228_v23 = vpop.eup %6227  ;;  %v4743_v17 = vadd.f32 1.0, %v6226_v24 }
0x137a   :  { %v6230_v36 = vpop.eup %6229  ;;  %v4744_v0 = vadd.f32 1.0, %v6228_v23 }
0x137b   :  { %v6232_v3 = vpop.eup %6231  ;;  %v4745_v26 = vadd.f32 1.0, %v6230_v36  ;;  %6233 = vrcp.f32 %v4743_v17 }
0x137c   :  { %v4746_v60 = vadd.f32 1.0, %v6232_v3  ;;  %6235 = vrcp.f32 %v4744_v0 }
0x137d   :  { %6237 = vrcp.f32 %v4745_v26 }
0x137e   :  { %6239 = vrcp.f32 %v4746_v60 }
0x1388   :  { %v6234_v37 = vpop.eup %6233 }
0x1389   :  { %v6236_v19 = vpop.eup %6235  ;;  %v4809_v49 = vmul.f32 %v6234_v37, %v4801_v52 }
0x138a   :  { %v6238_v41 = vpop.eup %6237  ;;  %v4810_v4 = vmul.f32 %v6236_v19, %v4802_v35 }
0x138b   :  { %v6240_v1 = vpop.eup %6239  ;;  %4817 = vrot.lane.b32.xlu0 %v4809_v49, %s6368_s1  ;;  %v4811_v22 = vmul.f32 %v6238_v41, %v4803_v25  ;;  %v4861_v49 = vrot.slane %v7693_v32, 7 }
0x138c   :  { %4819 = vrot.lane.b32.xlu1 %v4810_v4, %s6368_s1  ;;  %v4812_v54 = vmul.f32 %v6240_v1, %v4804_v39  ;;  %v4862_v1 = vrot.slane %v7696_v10, 7 }
0x138f   :  { %4821 = vrot.lane.b32.xlu0 %v4811_v22, %s6368_s1 }
0x1390   :  { %4823 = vrot.lane.b32.xlu1 %v4812_v54, %s6368_s1 }
0x1393   :  { %4760 = vrot.lane.b32.xlu0 %v4756_v13, %s6369_s21 }
0x1394   :  { %4762 = vrot.lane.b32.xlu1 %v4757_v38, %s6369_s21 }
0x1397   :  { %4764 = vrot.lane.b32.xlu0 %v4758_v40, %s6369_s21 }
0x1398   :  { %4766 = vrot.lane.b32.xlu1 %v4759_v18, %s6369_s21  ;;  %v4863_v18 = vrot.slane %v7700_v30, 7 }
0x13fd   :  { %v4818_v9 = vpop.permute.xlu0 %4817 }
0x13fe   :  { %v4820_v5 = vpop.permute.xlu1 %4819  ;;  %v4829_v21 = vadd.f32 %v4818_v9, %v7239_v29 }
0x13ff   :  { %v4830_v7 = vadd.f32 %v4820_v5, %v7237_v44 }
0x1400   :  { %6241 = vtanh.f32 %v4829_v21  ;;  %v4864_v21 = vrot.slane %v7702_v58, 7 }
0x1401   :  { %6243 = vtanh.f32 %v4830_v7  ;;  %v4822_v31 = vpop.permute.xlu0 %4821 }
0x1402   :  { %v4824_v48 = vpop.permute.xlu1 %4823  ;;  %v4831_v46 = vadd.f32 %v4822_v31, %v7245_v2 }
0x1403   :  { %v4832_v53 = vadd.f32 %v4824_v48, %v7243_v20 }
0x1404   :  { %6245 = vtanh.f32 %v4831_v46 }
0x1405   :  { %6247 = vtanh.f32 %v4832_v53  ;;  %v4761_v42 = vpop.permute.xlu0 %4760 }
0x1406   :  { %v4763_v55 = vpop.permute.xlu1 %4762  ;;  %v4772_v63 = vadd.f32 %v4761_v42, %v7239_v29 }
0x1407   :  { %v4773_v59 = vadd.f32 %v4763_v55, %v7237_v44 }
0x1408   :  { %v5449_v45 = vmul.f32 -1.442695, %v4772_v63 }
0x1409   :  { %v4765_v15 = vpop.permute.xlu0 %4764  ;;  %v5450_v57 = vmul.f32 -1.442695, %v4773_v59 }
0x140a   :  { %v4767_v50 = vpop.permute.xlu1 %4766  ;;  %v4774_v34 = vadd.f32 %v4765_v15, %v7245_v2  ;;  %6249 = vpow2.f32 %v5449_v45 }
0x140b   :  { %v4775_v24 = vadd.f32 %v4767_v50, %v7243_v20  ;;  %6251 = vpow2.f32 %v5450_v57 }
0x140c   :  { %v5451_v23 = vmul.f32 -1.442695, %v4774_v34 }
0x140d   :  { %v6242_v51 = vpop.eup %6241  ;;  %v5452_v17 = vmul.f32 -1.442695, %v4775_v24 }
0x140e   :  { %v6244_v6 = vpop.eup %6243  ;;  %4845 = vrot.lane.b32.xlu0 %v6242_v51, %s6366_s0  ;;  %6253 = vpow2.f32 %v5451_v23 }
0x140f   :  { %4847 = vrot.lane.b32.xlu1 %v6244_v6, %s6366_s0  ;;  %6255 = vpow2.f32 %v5452_v17 }
0x1411   :  { %v6246_v12 = vpop.eup %6245 }
0x1412   :  { %v6248_v11 = vpop.eup %6247  ;;  %4849 = vrot.lane.b32.xlu0 %v6246_v12, %s6366_s0 }
0x1413   :  { %4851 = vrot.lane.b32.xlu1 %v6248_v11, %s6366_s0 }
0x1417   :  { %v6250_v36 = vpop.eup %6249 }
0x1418   :  { %v6252_v0 = vpop.eup %6251  ;;  %v4788_v3 = vadd.f32 1.0, %v6250_v36 }
0x1419   :  { %v4789_v60 = vadd.f32 1.0, %v6252_v0 }
0x141a   :  { %6257 = vrcp.f32 %v4788_v3 }
0x141b   :  { %v6254_v26 = vpop.eup %6253  ;;  %6259 = vrcp.f32 %v4789_v60 }
0x141c   :  { %v6256_v62 = vpop.eup %6255  ;;  %v4790_v52 = vadd.f32 1.0, %v6254_v26 }
0x141d   :  { %v4791_v37 = vadd.f32 1.0, %v6256_v62 }
0x141e   :  { %6261 = vrcp.f32 %v4790_v52 }
0x141f   :  { %6263 = vrcp.f32 %v4791_v37 }
0x1427   :  { %v6258_v35 = vpop.eup %6257 }
0x1428   :  { %v6260_v19 = vpop.eup %6259  ;;  %v4837_v41 = vsub.f32 1.0, %v6258_v35  ;;  %v4869_v54 = vmul.f32 %v6258_v35, %v4861_v49 }
0x1429   :  { %v4838_v25 = vsub.f32 1.0, %v6260_v19  ;;  %v4870_v38 = vmul.f32 %v6260_v19, %v4862_v1 }
0x142b   :  { %v6262_v4 = vpop.eup %6261 }
0x142c   :  { %v6264_v43 = vpop.eup %6263  ;;  %v4839_v5 = vsub.f32 1.0, %v6262_v4  ;;  %v4871_v46 = vmul.f32 %v6262_v4, %v4863_v18 }
0x142d   :  { %v4840_v7 = vsub.f32 1.0, %v6264_v43  ;;  %v4872_v6 = vmul.f32 %v6264_v43, %v4864_v21 }
0x1480   :  { %v4846_v39 = vpop.permute.xlu0 %4845 }
0x1481   :  { %v4848_v22 = vpop.permute.xlu1 %4847  ;;  %v4857_v13 = vmul.f32 %v4846_v39, %v4837_v41 }
0x1482   :  { %v4858_v40 = vmul.f32 %v4848_v22, %v4838_v25 }
0x1483   :  { %v7770_v9 = vadd.f32 %v4869_v54, %v4857_v13 }
0x1484   :  { %v7773_v32 = vadd.f32 %v4870_v38, %v4858_v40  ;;  %v4850_v31 = vpop.permute.xlu0 %4849 }
0x1485   :  { %v4881_v10 = vrot.slane %v7770_v9, 6  ;;  %v4852_v48 = vpop.permute.xlu1 %4851  ;;  %v4859_v53 = vmul.f32 %v4850_v31, %v4839_v5 }
0x1486   :  { %v4882_v51 = vrot.slane %v7773_v32, 5  ;;  %v4860_v12 = vmul.f32 %v4852_v48, %v4840_v7 }
0x1487   :  { %v7777_v11 = vadd.f32 %v4871_v46, %v4859_v53 }
0x1488   :  { %v7779_v30 = vadd.f32 %v4872_v6, %v4860_v12  ;;  %v4883_v42 = vsel %vm1013_vm6, %v4882_v51, %v4881_v10 }
0x1489   :  { %v4884_v58 = vrot.slane %v7777_v11, 4 }
0x148a   :  { %v4886_v55 = vrot.slane %v7779_v30, 3 }
0x148b   :  { %v4885_v63 = vsel %vm1015_vm7, %v4884_v58, %v4883_v42 }
0x148c   :  { %v4887_v59 = vsel %vm1017_vm8, %v4886_v55, %v4885_v63 }
0x148d   :  { %4888 = vrot.lane.b32.xlu0 %v4887_v59, %s6366_s0 }
0x14ff   :  { %v4889_v15 = vpop.permute.xlu0 %4888 }
0x1500   :  { %5917 = vmatmul.mubr.msk.f32.vlgmr.msra.gmra.mxu0 %vm751_vm3, %v4889_v15  ;;  %5928 = vmatmul.mubr.msk.f32.vlgmr.msra.gmra.mxu1 %vm751_vm3, %v4889_v15 }
0x1501   :  { %5931 = vmatpush3.msra.mxu0 %v7170_v14  ;;  %5938 = vmatprep.mubr.msk.f32.mxu0 %vm6367_vm14, %v6364_v8 }
0x1502   :  { %5932 = vmatprep.subr.mxu0 %v6364_v8 }
0x1503   :  { %5933 = vmatpush3.msra.mxu0 %v7172_v61 }
0x1504   :  { %5934 = vmatprep.subr.mxu0 %v6364_v8 }
0x1505   :  { %5935 = vmatpush3.msra.mxu0 %v7177_v33 }
0x1506   :  { %5936 = vmatprep.subr.mxu0 %v6364_v8 }
0x1507   :  { %5937 = vmatpush3.msra.mxu0 %v7188_v47 }
0x1508   :  { %5939 = vmatmul.mubr.msk.f32.vlgmr.msra.gmra.mxu0 %vm751_vm3, %v4889_v15  ;;  %vm5292_vm3 = vcmask 256000  }
0x15c0   :  { %v4958_v50 = vpop.f32.mrf.mxu0  ;;  %v5028_v45 = vpop.f32.mrf.mxu1 }
0x15c1   :  { %v4959_v14 = vadd.f32 %v7738_v27, %v4958_v50  ;;  %v5029_v7 = vadd.f32 %v5028_v45, %v7252_v56 }
0x15c2   :  { %v5918_v34 = vpop.f32.mrf.mxu0  ;;  %v5929_v57 = vpop.f32.mrf.mxu1 }
0x15c3   :  { %v5103_v24 = vrot.slane %v4959_v14, 1  ;;  %v5104_v23 = vrot.slane %v4959_v14, 2  ;;  %v5105_v17 = vrot.slane %v4959_v14, 3  ;;  %v5106_v61 = vrot.slane %v4959_v14, 4  ;;  %v5464_v14 = vld [vmem:[#allocation4 + $0x78] ss:$0 sm:$0xff] }
0x15c4   :  { %v5141_v48 = vrot.slane %v5029_v7, 2  ;;  %v5142_v46 = vrot.slane %v5029_v7, 3  ;;  %v5143_v53 = vrot.slane %v5029_v7, 4 }
0x15c5   :  { %v5111_v36 = vadd.f32 %v5103_v24, %v7239_v29  ;;  %v5112_v33 = vadd.f32 %v5104_v23, %v7237_v44  ;;  %v5113_v8 = vadd.f32 %v5105_v17, %v7245_v2  ;;  %v5114_v47 = vadd.f32 %v5106_v61, %v7243_v20 }
0x15c7   :  { %v5456_v0 = vmul.f32 -1.442695, %v5111_v36  ;;  %v5457_v3 = vmul.f32 -1.442695, %v5112_v33  ;;  %v5458_v26 = vmul.f32 -1.442695, %v5113_v8 }
0x15c8   :  { %v5459_v60 = vmul.f32 -1.442695, %v5114_v47  ;;  %v5098_v62 = vpop.f32.mrf.mxu0 }
0x15c9   :  { %6265 = vpow2.f32 %v5456_v0  ;;  %v5099_v25 = vadd.f32 %v5098_v62, %v7249_v28  ;;  %v5140_v28 = vrot.slane %v5029_v7, 1 }
0x15ca   :  { %6267 = vpow2.f32 %v5457_v3  ;;  %v5940_v27 = vpop.f32.mrf.mxu0 }
0x15cb   :  { %6269 = vpow2.f32 %v5458_v26  ;;  %v5185_v39 = vrot.slane %v5099_v25, 1  ;;  %v5186_v22 = vrot.slane %v5099_v25, 2  ;;  %v5187_v5 = vrot.slane %v5099_v25, 3 }
0x15cc   :  { %6271 = vpow2.f32 %v5459_v60  ;;  %v5188_v21 = vrot.slane %v5099_v25, 4  ;;  %v5246_v25 = vrot.slane %v7773_v32, 7 }
0x15d6   :  { %v6266_v52 = vpop.eup %6265 }
0x15d7   :  { %v6268_v37 = vpop.eup %6267  ;;  %v5127_v35 = vadd.f32 1.0, %v6266_v52 }
0x15d8   :  { %v6270_v19 = vpop.eup %6269  ;;  %v5128_v49 = vadd.f32 1.0, %v6268_v37 }
0x15d9   :  { %v6272_v41 = vpop.eup %6271  ;;  %v5129_v4 = vadd.f32 1.0, %v6270_v19  ;;  %6273 = vrcp.f32 %v5127_v35 }
0x15da   :  { %v5130_v1 = vadd.f32 1.0, %v6272_v41  ;;  %6275 = vrcp.f32 %v5128_v49 }
0x15db   :  { %6277 = vrcp.f32 %v5129_v4 }
0x15dc   :  { %6279 = vrcp.f32 %v5130_v1 }
0x15e6   :  { %v6274_v43 = vpop.eup %6273 }
0x15e7   :  { %v6276_v54 = vpop.eup %6275  ;;  %v5193_v13 = vmul.f32 %v6274_v43, %v5185_v39  ;;  %v5245_v39 = vrot.slane %v7770_v9, 7  ;;  %v5247_v43 = vrot.slane %v7777_v11, 7 }
0x15e8   :  { %v6278_v38 = vpop.eup %6277  ;;  %v5194_v40 = vmul.f32 %v6276_v54, %v5186_v22 }
0x15e9   :  { %v6280_v18 = vpop.eup %6279  ;;  %5201 = vrot.lane.b32.xlu1 %v5193_v13, %s6368_s1  ;;  %v5195_v31 = vmul.f32 %v6278_v38, %v5187_v5  ;;  %v5248_v38 = vrot.slane %v7779_v30, 7 }
0x15ea   :  { %5203 = vrot.lane.b32.xlu0 %v5194_v40, %s6368_s1  ;;  %v5196_v10 = vmul.f32 %v6280_v18, %v5188_v21 }
0x15ed   :  { %5205 = vrot.lane.b32.xlu1 %v5195_v31, %s6368_s1 }
0x15ee   :  { %5207 = vrot.lane.b32.xlu0 %v5196_v10, %s6368_s1 }
0x15f1   :  { %5144 = vrot.lane.b32.xlu1 %v5140_v28, %s6369_s21 }
0x15f2   :  { %5146 = vrot.lane.b32.xlu0 %v5141_v48, %s6369_s21 }
0x15f5   :  { %5148 = vrot.lane.b32.xlu1 %v5142_v46, %s6369_s21 }
0x15f6   :  { %5150 = vrot.lane.b32.xlu0 %v5143_v53, %s6369_s21 }
0x165b   :  { %v5202_v51 = vpop.permute.xlu1 %5201 }
0x165c   :  { %v5204_v56 = vpop.permute.xlu0 %5203  ;;  %v5213_v6 = vadd.f32 %v5202_v51, %v7239_v29 }
0x165d   :  { %v5214_v12 = vadd.f32 %v5204_v56, %v7237_v44 }
0x165e   :  { %6281 = vtanh.f32 %v5213_v6 }
0x165f   :  { %6283 = vtanh.f32 %v5214_v12  ;;  %v5206_v42 = vpop.permute.xlu1 %5205 }
0x1660   :  { %v5208_v58 = vpop.permute.xlu0 %5207  ;;  %v5215_v55 = vadd.f32 %v5206_v42, %v7245_v2 }
0x1661   :  { %v5216_v63 = vadd.f32 %v5208_v58, %v7243_v20 }
0x1662   :  { %6285 = vtanh.f32 %v5215_v55 }
0x1663   :  { %6287 = vtanh.f32 %v5216_v63  ;;  %v5145_v34 = vpop.permute.xlu1 %5144 }
0x1664   :  { %v5147_v57 = vpop.permute.xlu0 %5146  ;;  %v5156_v24 = vadd.f32 %v5145_v34, %v7239_v29 }
0x1665   :  { %v5157_v17 = vadd.f32 %v5147_v57, %v7237_v44 }
0x1666   :  { %v5460_v33 = vmul.f32 -1.442695, %v5156_v24 }
0x1667   :  { %v5149_v23 = vpop.permute.xlu1 %5148  ;;  %v5461_v47 = vmul.f32 -1.442695, %v5157_v17 }
0x1668   :  { %v5151_v61 = vpop.permute.xlu0 %5150  ;;  %v5158_v36 = vadd.f32 %v5149_v23, %v7245_v2  ;;  %6289 = vpow2.f32 %v5460_v33 }
0x1669   :  { %v5159_v8 = vadd.f32 %v5151_v61, %v7243_v20  ;;  %6291 = vpow2.f32 %v5461_v47 }
0x166a   :  { %v5462_v0 = vmul.f32 -1.442695, %v5158_v36 }
0x166b   :  { %v6282_v59 = vpop.eup %6281  ;;  %v5463_v3 = vmul.f32 -1.442695, %v5159_v8 }
0x166c   :  { %v6284_v15 = vpop.eup %6283  ;;  %5229 = vrot.lane.b32.xlu1 %v6282_v59, %s6366_s0  ;;  %6293 = vpow2.f32 %v5462_v0 }
0x166d   :  { %5231 = vrot.lane.b32.xlu0 %v6284_v15, %s6366_s0  ;;  %6295 = vpow2.f32 %v5463_v3 }
0x166f   :  { %v6286_v50 = vpop.eup %6285 }
0x1670   :  { %v6288_v45 = vpop.eup %6287  ;;  %5233 = vrot.lane.b32.xlu1 %v6286_v50, %s6366_s0 }
0x1671   :  { %5235 = vrot.lane.b32.xlu0 %v6288_v45, %s6366_s0 }
0x1674   :  { %5266 = vrot.lane.b32.xlu1 %v5464_v14, %s6369_s21  ;;  %v5465_v14 = vld [vmem:[#allocation4 + $0x80] ss:$0 sm:$0xff] }
0x1675   :  { %v6290_v26 = vpop.eup %6289 }
0x1676   :  { %v6292_v60 = vpop.eup %6291  ;;  %v5172_v29 = vadd.f32 1.0, %v6290_v26 }
0x1677   :  { %v5173_v52 = vadd.f32 1.0, %v6292_v60 }
0x1678   :  { %6297 = vrcp.f32 %v5172_v29 }
0x1679   :  { %v6294_v62 = vpop.eup %6293  ;;  %6299 = vrcp.f32 %v5173_v52 }
0x167a   :  { %v6296_v27 = vpop.eup %6295  ;;  %v5174_v44 = vadd.f32 1.0, %v6294_v62 }
0x167b   :  { %v5175_v37 = vadd.f32 1.0, %v6296_v27 }
0x167c   :  { %6301 = vrcp.f32 %v5174_v44 }
0x167d   :  { %6303 = vrcp.f32 %v5175_v37 }
0x1685   :  { %v6298_v20 = vpop.eup %6297 }
0x1686   :  { %v6300_v2 = vpop.eup %6299  ;;  %v5221_v1 = vsub.f32 1.0, %v6298_v20  ;;  %v5253_v21 = vmul.f32 %v6298_v20, %v5245_v39 }
0x1687   :  { %v5222_v41 = vsub.f32 1.0, %v6300_v2  ;;  %v5254_v5 = vmul.f32 %v6300_v2, %v5246_v25 }
0x1689   :  { %v6302_v35 = vpop.eup %6301 }
0x168a   :  { %v6304_v49 = vpop.eup %6303  ;;  %v5223_v13 = vsub.f32 1.0, %v6302_v35  ;;  %v5255_v31 = vmul.f32 %v6302_v35, %v5247_v43 }
0x168b   :  { %v5224_v40 = vsub.f32 1.0, %v6304_v49  ;;  %v5256_v28 = vmul.f32 %v6304_v49, %v5248_v38 }
0x16de   :  { %v5230_v19 = vpop.permute.xlu1 %5229 }
0x16df   :  { %v5232_v4 = vpop.permute.xlu0 %5231  ;;  %v5241_v54 = vmul.f32 %v5230_v19, %v5221_v1 }
0x16e0   :  { %v5242_v22 = vmul.f32 %v5232_v4, %v5222_v41 }
0x16e1   :  { %v5257_v32 = vadd.f32 %v5253_v21, %v5241_v54 }
0x16e2   :  { %v5234_v18 = vpop.permute.xlu1 %5233  ;;  %v5258_v46 = vadd.f32 %v5254_v5, %v5242_v22 }
0x16e3   :  { %v5236_v7 = vpop.permute.xlu0 %5235  ;;  %v5243_v10 = vmul.f32 %v5234_v18, %v5223_v13 }
0x16e4   :  { %v5244_v48 = vmul.f32 %v5236_v7, %v5224_v40 }
0x16e5   :  { %v5259_v53 = vadd.f32 %v5255_v31, %v5243_v10 }
0x16e6   :  { %v5260_v9 = vadd.f32 %v5256_v28, %v5244_v48  ;;  %v5267_v51 = vpop.permute.xlu1 %5266 }
0x16e7   :  { %v5269_v11 = vmul.f32 %v5267_v51, %v5257_v32  ;;  %v5270_v56 = vmul.f32 %v5267_v51, %v5258_v46  ;;  %v5271_v6 = vmul.f32 %v5267_v51, %v5259_v53 }
0x16e8   :  { %v5272_v12 = vmul.f32 %v5267_v51, %v5260_v9 }
0x16e9   :  { %v5277_v42 = vrot.slane %v5270_v56, 7  ;;  %v5278_v30 = vrot.slane %v5271_v6, 6  ;;  %5282 = vrot.lane.b32.xlu0 %v5269_v11, %s6366_s0 }
0x16ea   :  { %v5280_v58 = vrot.slane %v5272_v12, 5 }
0x16eb   :  { %v5279_v55 = vsel %vm1013_vm6, %v5278_v30, %v5277_v42 }
0x16ec   :  { %v5281_v63 = vsel %vm1015_vm7, %v5280_v58, %v5279_v55 }
0x16ed   :  { %5284 = vrot.lane.b32.xlu1 %v5281_v63, %s6366_s0 }
0x175b   :  { %v5283_v59 = vpop.permute.xlu0 %5282 }
0x175c   :  { %v5289_v15 = vsel %vm5288_vm0, %v5283_v59, 0.0 }
0x175d   :  { %5290 = vadd.xlane.f32.xlu0 %v5289_v15 }
0x175f   :  { %v5285_v50 = vpop.permute.xlu1 %5284 }
0x1760   :  { %v5293_v45 = vsel %vm5292_vm3, %v5285_v50, 0.0 }
0x1761   :  { %5294 = vadd.xlane.f32.xlu1 %v5293_v45 }
0x17e6   :  { %v5291_v34 = vpop.xlane.xlu0 %5290 }
0x17e7   :  { %v5300_v57 = vadd.f32 %v5465_v14, %v5291_v34 }
0x17e9   :  { %v5304_v24 = vcombine.high %v5300_v57, %v5300_v57 }
0x17ea   :  { %v5295_v23 = vpop.xlane.xlu1 %5294 }
0x17eb   :  { %v5311_v17 = vrot.slane %v5304_v24, %v6404_v16  ;;  %v5301_v61 = vadd.f32 %v5465_v14, %v5295_v23 }
0x17ed   :  { %v5312_v36 = vcombine.high %v5311_v17, %v5311_v17  ;;  %v5327_v33 = vrot.slane %v5301_v61, %v6404_v16 }
0x17ef   :  { %v5319_v8 = vrot.slane %v5312_v36, %v6404_v16  ;;  %v5328_v47 = vcombine.high %v5327_v33, %v5327_v33  ;;  %v5335_v0 = vrot.slane %v5327_v33, %v6404_v16 }
0x17f1   :  { %v5320_v3 = vcombine.high %v5319_v8, %v5319_v8  ;;  %v5342_v26 = vrot.slane %v5328_v47, %v6404_v16  ;;  %v5343_v60 = vcombine.high %v5335_v0, %v5335_v0  ;;  %5350 = vst.msk [vmem:[%s7854_s2 + $0x1] sm:$0x1] %vm5348_vm15, %v5335_v0 }
0x17f3   :  { %5349 = vst.msk [vmem:[%s7854_s2] sm:$0x1] %vm5348_vm15, %v5320_v3  ;;  %5351 = vst.msk [vmem:[%s7854_s2 + $0x2] sm:$0x1] %vm5348_vm15, %v5342_v26 }
0x17f4   :  { %5352 = vst.msk [vmem:[%s7854_s2 + $0x3] sm:$0x1] %vm5348_vm15, %v5343_v60 }
0x17f5   :  { %5357 = vsyncpa [#allocation3], 1 }
0x17f6   :  { %5358 = vsyncpa [#allocation5], 1 }

</bundles_post_ra>
